<compile_context>
chip_gen: v7x
topology: tpu7x:2x2x1
jax: 0.10.0
libtpu: 0.0.40
codegen_flags: <defaults>
</compile_context>

<pallas_src>
import jax
import jax.numpy as jnp
from jax import lax
from jax.experimental import pallas as pl
from jax.experimental.pallas import tpu as pltpu

BETA = 1.0
EPS = 1e-10


def _avu_kernel(th_ref, nvalid_ref, logits_ref, labels_ref, out_ref,
                acc_match_ref, acc_total_ref):
    """One batch tile.

    logits_ref : (tile_n, C) VMEM   (f32 or bf16; cast to f32 in-kernel)
    labels_ref : (tile_n//128, 128) int32 VMEM (lane-dense row labels)
    th_ref, nvalid_ref : (1,) SMEM scalars (threshold, true batch size)
    out_ref    : (1, 1) SMEM  final loss, written on the last tile only
    acc_*_ref  : (tile_n//128, 128) f32 VMEM running partial sums, carried
                 across the sequential batch-tile grid axis.
    """
    i = pl.program_id(0)

    @pl.when(i == 0)
    def _init():
        acc_match_ref[...] = jnp.zeros_like(acc_match_ref)
        acc_total_ref[...] = jnp.zeros_like(acc_total_ref)

    tile_n, c = logits_ref.shape
    r = tile_n // 128

    # Leading-dim split (layout preserving): the axis=-1 reductions below then
    # produce lane-dense (r, 128) results instead of lane-sparse (tile_n, 1).
    x = logits_ref[...].astype(jnp.float32).reshape(r, 128, c)

    # ---- softmax statistics without materializing probs --------------------
    m = jnp.max(x, axis=-1, keepdims=True)                       # (r, 128, 1)
    xm = x - m
    e = jnp.exp(xm)                                              # one exp / element
    s = jnp.sum(e, axis=-1)                                      # (r, 128)
    d = jnp.sum(e * xm, axis=-1)                                 # (r, 128)

    inv_s = pl.reciprocal(s, approx=True)                        # EUP, lane-dense
    conf = inv_s                                                 # max prob = exp(0)/s
    # entropy  H = -sum p*log p = log(s) - (1/s) * sum_j e_j * (x_j - m)
    unc = jnp.log(s) - d * inv_s                                 # (r, 128)

    # first-occurrence argmax straight from the logits (softmax is monotone;
    # keeps exact torch.argmax tie semantics)
    col = lax.broadcasted_iota(jnp.int32, (r, 128, c), 2)
    pred = jnp.min(jnp.where(x >= m, col, jnp.int32(c)), axis=-1)  # (r,128) i32

    labels = labels_ref[...]                                     # (r, 128) i32
    th = th_ref[0]

    # rows past the real batch (ragged last tile / host padding) contribute 0
    rows = (i * tile_n
            + lax.broadcasted_iota(jnp.int32, (r, 128), 0) * 128
            + lax.broadcasted_iota(jnp.int32, (r, 128), 1))
    valid = rows < nvalid_ref[0]

    accurate = labels == pred
    certain = unc <= th
    t = jnp.tanh(unc)

    # w is the row's contribution to whichever of the 4 buckets it falls into
    w = jnp.where(accurate, conf, 1.0 - conf) * jnp.where(certain, 1.0 - t, t)
    w = jnp.where(valid, w, 0.0)
    match = (accurate & certain) | ((~accurate) & (~certain))    # ac or iu

    acc_total_ref[...] += w                                      # n_ac+n_au+n_ic+n_iu
    acc_match_ref[...] += jnp.where(match, w, 0.0)               # n_ac + n_iu

    @pl.when(i == pl.num_programs(0) - 1)
    def _finalize():
        s_match = jnp.sum(acc_match_ref[...])
        s_total = jnp.sum(acc_total_ref[...])
        avu = s_match / (s_total + EPS)
        out_ref[0, 0] = -BETA * jnp.log(avu + EPS)


def _round_up(v, m):
    return (v + m - 1) // m * m


def avu_loss(logits, labels, optimal_uncertainty_threshold, *, tile_n=None):
    """logits: (N, C) float (f32 or bf16); labels: (N,) int; threshold: float."""
    n, c = logits.shape
    n_orig = n

    # --- pick the batch tile (rows) -----------------------------------------
    # Multi-tile blocks are a multiple of 1024 rows so labels / accumulators
    # keep an (8k, 128) layout; ~1M f32 elements per logits tile (~4 MiB) keeps
    # double-buffered inputs + in-kernel f32 temporaries well inside the 48 MiB
    # budget (v7x physical VMEM is 64 MiB; v5e/v6e have 128 MiB).
    if tile_n is None:
        max_tile = (1 << 20) // max(c, 1) // 1024 * 1024
    else:
        max_tile = int(tile_n) // 1024 * 1024
    max_tile = max(1024, min(16384, max_tile))

    if n <= max_tile:
        # single tile: pad the (small) batch up to a 128-row multiple
        tile = _round_up(max(n, 1), 128)
        if tile != n:
            logits = jnp.pad(logits, ((0, tile - n), (0, 0)))
        n = tile
    else:
        tile = max_tile           # multiple of 1024; ragged last tile is masked

    grid = (pl.cdiv(n, tile),)
    r = tile // 128

    # labels: pad to grid*tile rows (tiny copy) and pre-shape lane-dense
    n_lab = grid[0] * tile
    lab = labels.astype(jnp.int32).reshape(-1)
    if n_lab != n_orig:
        lab = jnp.pad(lab, (0, n_lab - n_orig))
    lab2d = lab.reshape(n_lab // 128, 128)

    th = jnp.asarray([optimal_uncertainty_threshold], dtype=jnp.float32)
    n_arr = jnp.asarray([n_orig], dtype=jnp.int32)

    out = pl.pallas_call(
        _avu_kernel,
        out_shape=jax.ShapeDtypeStruct((1, 1), jnp.float32),
        grid=grid,
        in_specs=[
            pl.BlockSpec(memory_space=pltpu.MemorySpace.SMEM),    # threshold
            pl.BlockSpec(memory_space=pltpu.MemorySpace.SMEM),    # true batch size
            pl.BlockSpec((tile, c), lambda i: (i, 0)),            # logits tile
            pl.BlockSpec((r, 128), lambda i: (i, 0)),             # labels tile
        ],
        out_specs=pl.BlockSpec(memory_space=pltpu.MemorySpace.SMEM),
        scratch_shapes=[pltpu.VMEM((r, 128), jnp.float32),        # sum(w | ac or iu)
                        pltpu.VMEM((r, 128), jnp.float32)],       # sum(w)
        compiler_params=pltpu.CompilerParams(
            dimension_semantics=("arbitrary",),                   # accumulators carried
            vmem_limit_bytes=48 * 1024 * 1024,
        ),
    )(th, n_arr, logits, lab2d)
    return out[0, 0]   # scalar, matches avu_loss.sum()


def _avu_loss_ref(logits, labels, threshold):
    """Pure-JAX reference mirroring the PyTorch forward pass (type=0)."""
    probs = jax.nn.softmax(logits.astype(jnp.float32), axis=1)
    conf = jnp.max(probs, axis=1)
    pred = jnp.argmax(probs, axis=1)
    unc = -jnp.sum(probs * jnp.log(probs + EPS), axis=-1)
    acc = labels == pred
    cert = unc <= threshold
    t = jnp.tanh(unc)
    n_ac = jnp.sum(jnp.where(acc & cert, conf * (1 - t), 0.0))
    n_au = jnp.sum(jnp.where(acc & ~cert, conf * t, 0.0))
    n_ic = jnp.sum(jnp.where(~acc & cert, (1 - conf) * (1 - t), 0.0))
    n_iu = jnp.sum(jnp.where(~acc & ~cert, (1 - conf) * t, 0.0))
    avu = (n_ac + n_iu) / (n_ac + n_au + n_ic + n_iu + EPS)
    return -BETA * jnp.log(avu + EPS)


def _pick_threshold(logits):
    # Place the certain/uncertain threshold in the middle of the widest gap of
    # the per-row entropy distribution, so no row sits within float noise of
    # the decision boundary (the review's threshold-boundary concern).
    p = jax.nn.softmax(logits.astype(jnp.float32), axis=1)
    u = jnp.sort(-jnp.sum(p * jnp.log(p + EPS), axis=-1))
    m = u.shape[0]
    lo, hi = m // 4, max(m // 4 + 1, 3 * m // 4)
    gaps = u[1:] - u[:-1]
    k = lo + int(jnp.argmax(gaps[lo:hi]))
    return float((u[k] + u[k + 1]) / 2)


if __name__ == "__main__":
    key = jax.random.PRNGKey(0)
    k1, k2, k3, k4, k5 = jax.random.split(key, 5)

    # Case 1: small single-tile batch (host-padded up to the 128-row minimum).
    N1, C1 = 8, 16
    logits1 = jax.random.normal(k1, (N1, C1), dtype=jnp.float32) * 2.0
    labels1 = jax.random.randint(k2, (N1,), 0, C1, dtype=jnp.int32)
    th1 = _pick_threshold(logits1)
    loss1 = avu_loss(logits1, labels1, th1)
    jax.block_until_ready(loss1)
    ref1 = _avu_loss_ref(logits1, labels1, th1)
    assert jnp.allclose(loss1, ref1, rtol=5e-3, atol=5e-3), (loss1, ref1)

    # Case 2: multi-tile grid with a ragged last tile (exercises the carried
    # VMEM accumulators, label padding and the row-validity mask).
    N2, C2 = 2500, 16
    logits2 = jax.random.normal(k3, (N2, C2), dtype=jnp.float32) * 2.0
    labels2 = jax.random.randint(k4, (N2,), 0, C2, dtype=jnp.int32)
    th2 = _pick_threshold(logits2)
    loss2 = avu_loss(logits2, labels2, th2, tile_n=1024)
    jax.block_until_ready(loss2)
    ref2 = _avu_loss_ref(logits2, labels2, th2)
    assert jnp.allclose(loss2, ref2, rtol=5e-3, atol=5e-3), (loss2, ref2)

    # Case 3: bf16 logits (half the HBM traffic; kernel up-casts in VMEM).
    logits3 = (jax.random.normal(k5, (N2, C2), dtype=jnp.float32) * 2.0
               ).astype(jnp.bfloat16)
    th3 = _pick_threshold(logits3)
    loss3 = avu_loss(logits3, labels2, th3, tile_n=1024)
    jax.block_until_ready(loss3)
    ref3 = _avu_loss_ref(logits3, labels2, th3)
    assert jnp.allclose(loss3, ref3, rtol=5e-3, atol=5e-3), (loss3, ref3)

    print("KERNEL_OK")
</pallas_src>

<mosaic_0001>
module attributes {stable_mosaic.version = 11 : i64} {
  func.func @_avu_kernel(%arg0: i32, %arg1: memref<1xf32, #tpu.memory_space<smem>>, %arg2: memref<1xi32, #tpu.memory_space<smem>>, %arg3: memref<128x16xf32, #tpu.memory_space<vmem>>, %arg4: memref<1x128xi32, #tpu.memory_space<vmem>>, %arg5: memref<1x1xf32, #tpu.memory_space<smem>>, %arg6: memref<1x128xf32, #tpu.memory_space<vmem>>, %arg7: memref<1x128xf32, #tpu.memory_space<vmem>>) attributes {dimension_semantics = [#tpu.dimension_semantics<arbitrary>], iteration_bounds = array<i64: 1>, scalar_prefetch = 0 : i64, scratch_operands = 2 : i64, tpu.core_type = #tpu.core_type<tc>, window_params = [{transform_indices = @transform_0, window_bounds = array<i64: 1>}, {transform_indices = @transform_1, window_bounds = array<i64: 1>}, {transform_indices = @transform_2, window_bounds = array<i64: 128, 16>}, {transform_indices = @transform_3, window_bounds = array<i64: 1, 128>}, {transform_indices = @transform_4, window_bounds = array<i64: 1, 1>}]} {
    %c0_i32 = arith.constant 0 : i32
    %0 = arith.cmpi eq, %arg0, %c0_i32 : i32
    %1 = arith.extui %0 : i1 to i32
    %c0_i32_0 = arith.constant 0 : i32
    %2 = arith.cmpi ne, %1, %c0_i32_0 : i32
    scf.if %2 {
      %cst_26 = arith.constant 0.000000e+00 : f32
      %65 = vector.broadcast %cst_26 : f32 to vector<1x128xf32>
      %c0_27 = arith.constant 0 : index
      %c0_28 = arith.constant 0 : index
      %66 = vector.load %arg6[%c0_27, %c0_28] : memref<1x128xf32, #tpu.memory_space<vmem>>, vector<1x128xf32>
      tpu.vector_store %arg6[%c0_27, %c0_28], %65 {strides = array<i32>} : memref<1x128xf32, #tpu.memory_space<vmem>>, vector<1x128xf32>,
      %cst_29 = arith.constant 0.000000e+00 : f32
      %67 = vector.broadcast %cst_29 : f32 to vector<1x128xf32>
      %c0_30 = arith.constant 0 : index
      %c0_31 = arith.constant 0 : index
      %68 = vector.load %arg7[%c0_30, %c0_31] : memref<1x128xf32, #tpu.memory_space<vmem>>, vector<1x128xf32>
      tpu.vector_store %arg7[%c0_30, %c0_31], %67 {strides = array<i32>} : memref<1x128xf32, #tpu.memory_space<vmem>>, vector<1x128xf32>,
    } else {
    }
    %c0 = arith.constant 0 : index
    %c0_1 = arith.constant 0 : index
    %3 = vector.load %arg3[%c0, %c0_1] : memref<128x16xf32, #tpu.memory_space<vmem>>, vector<128x16xf32>
    %4 = vector.shape_cast %3 : vector<128x16xf32> to vector<1x128x16xf32>
    %cst = arith.constant dense<0xFF800000> : vector<1x128xf32>
    %5 = vector.multi_reduction <maximumf>, %4, %cst [2] : vector<1x128x16xf32> to vector<1x128xf32>
    %6 = vector.shape_cast %5 : vector<1x128xf32> to vector<1x128x1xf32>
    %7 = vector.broadcast %6 : vector<1x128x1xf32> to vector<1x128x16xf32>
    %8 = arith.subf %4, %7 : vector<1x128x16xf32>
    %9 = math.exp %8 : vector<1x128x16xf32>
    %cst_2 = arith.constant dense<0.000000e+00> : vector<1x128xf32>
    %10 = vector.multi_reduction <add>, %9, %cst_2 [2] : vector<1x128x16xf32> to vector<1x128xf32>
    %11 = arith.mulf %9, %8 : vector<1x128x16xf32>
    %cst_3 = arith.constant dense<0.000000e+00> : vector<1x128xf32>
    %12 = vector.multi_reduction <add>, %11, %cst_3 [2] : vector<1x128x16xf32> to vector<1x128xf32>
    %13 = tpu.reciprocal %10 {approx = true} : vector<1x128xf32> -> vector<1x128xf32>
    %14 = math.log %10 : vector<1x128xf32>
    %15 = arith.mulf %12, %13 : vector<1x128xf32>
    %16 = arith.subf %14, %15 : vector<1x128xf32>
    %17 = tpu.iota {dimensions = array<i32: 2>} : vector<1x128x16xi32>
    %18 = vector.broadcast %6 : vector<1x128x1xf32> to vector<1x128x16xf32>
    %19 = arith.cmpf oge, %4, %18 : vector<1x128x16xf32>
    %c16_i32 = arith.constant 16 : i32
    %20 = vector.broadcast %c16_i32 : i32 to vector<1x128x16xi32>
    %21 = arith.select %19, %17, %20 : vector<1x128x16xi1>, vector<1x128x16xi32>
    %cst_4 = arith.constant dense<2147483647> : vector<1x128xi32>
    %22 = vector.multi_reduction <minsi>, %21, %cst_4 [2] : vector<1x128x16xi32> to vector<1x128xi32>
    %c0_5 = arith.constant 0 : index
    %c0_6 = arith.constant 0 : index
    %23 = vector.load %arg4[%c0_5, %c0_6] : memref<1x128xi32, #tpu.memory_space<vmem>>, vector<1x128xi32>
    %c0_7 = arith.constant 0 : index
    %24 = memref.load %arg1[%c0_7] : memref<1xf32, #tpu.memory_space<smem>>
    %c128_i32 = arith.constant 128 : i32
    %25 = arith.muli %arg0, %c128_i32 : i32
    %26 = tpu.iota {dimensions = array<i32: 0>} : vector<1x128xi32>
    %c128_i32_8 = arith.constant 128 : i32
    %27 = vector.broadcast %c128_i32_8 : i32 to vector<1x128xi32>
    %28 = arith.muli %26, %27 : vector<1x128xi32>
    %29 = vector.broadcast %25 : i32 to vector<1x128xi32>
    %30 = arith.addi %29, %28 : vector<1x128xi32>
    %31 = tpu.iota {dimensions = array<i32: 1>} : vector<1x128xi32>
    %32 = arith.addi %30, %31 : vector<1x128xi32>
    %c0_9 = arith.constant 0 : index
    %33 = memref.load %arg2[%c0_9] : memref<1xi32, #tpu.memory_space<smem>>
    %34 = vector.broadcast %33 : i32 to vector<1x128xi32>
    %35 = arith.cmpi slt, %32, %34 : vector<1x128xi32>
    %36 = arith.cmpi eq, %23, %22 : vector<1x128xi32>
    %37 = vector.broadcast %24 : f32 to vector<1x128xf32>
    %38 = arith.cmpf ole, %16, %37 : vector<1x128xf32>
    %39 = math.tanh %16 : vector<1x128xf32>
    %cst_10 = arith.constant 1.000000e+00 : f32
    %40 = vector.broadcast %cst_10 : f32 to vector<1x128xf32>
    %41 = arith.subf %40, %13 : vector<1x128xf32>
    %42 = arith.select %36, %13, %41 : vector<1x128xi1>, vector<1x128xf32>
    %cst_11 = arith.constant 1.000000e+00 : f32
    %43 = vector.broadcast %cst_11 : f32 to vector<1x128xf32>
    %44 = arith.subf %43, %39 : vector<1x128xf32>
    %45 = arith.select %38, %44, %39 : vector<1x128xi1>, vector<1x128xf32>
    %46 = arith.mulf %42, %45 : vector<1x128xf32>
    %cst_12 = arith.constant 0.000000e+00 : f32
    %47 = vector.broadcast %cst_12 : f32 to vector<1x128xf32>
    %48 = arith.select %35, %46, %47 : vector<1x128xi1>, vector<1x128xf32>
    %49 = arith.andi %36, %38 : vector<1x128xi1>
    %cst_13 = arith.constant dense<true> : vector<1x128xi1>
    %50 = arith.xori %36, %cst_13 : vector<1x128xi1>
    %cst_14 = arith.constant dense<true> : vector<1x128xi1>
    %51 = arith.xori %38, %cst_14 : vector<1x128xi1>
    %52 = arith.andi %50, %51 : vector<1x128xi1>
    %53 = arith.ori %49, %52 : vector<1x128xi1>
    %c0_15 = arith.constant 0 : index
    %c0_16 = arith.constant 0 : index
    %54 = vector.load %arg7[%c0_15, %c0_16] : memref<1x128xf32, #tpu.memory_space<vmem>>, vector<1x128xf32>
    %55 = arith.addf %54, %48 : vector<1x128xf32>
    %c0_17 = arith.constant 0 : index
    %c0_18 = arith.constant 0 : index
    %56 = vector.load %arg7[%c0_17, %c0_18] : memref<1x128xf32, #tpu.memory_space<vmem>>, vector<1x128xf32>
    tpu.vector_store %arg7[%c0_17, %c0_18], %55 {strides = array<i32>} : memref<1x128xf32, #tpu.memory_space<vmem>>, vector<1x128xf32>,
    %c0_19 = arith.constant 0 : index
    %c0_20 = arith.constant 0 : index
    %57 = vector.load %arg6[%c0_19, %c0_20] : memref<1x128xf32, #tpu.memory_space<vmem>>, vector<1x128xf32>
    %cst_21 = arith.constant 0.000000e+00 : f32
    %58 = vector.broadcast %cst_21 : f32 to vector<1x128xf32>
    %59 = arith.select %53, %48, %58 : vector<1x128xi1>, vector<1x128xf32>
    %60 = arith.addf %57, %59 : vector<1x128xf32>
    %c0_22 = arith.constant 0 : index
    %c0_23 = arith.constant 0 : index
    %61 = vector.load %arg6[%c0_22, %c0_23] : memref<1x128xf32, #tpu.memory_space<vmem>>, vector<1x128xf32>
    tpu.vector_store %arg6[%c0_22, %c0_23], %60 {strides = array<i32>} : memref<1x128xf32, #tpu.memory_space<vmem>>, vector<1x128xf32>,
    %c0_i32_24 = arith.constant 0 : i32
    %62 = arith.cmpi eq, %arg0, %c0_i32_24 : i32
    %63 = arith.extui %62 : i1 to i32
    %c0_i32_25 = arith.constant 0 : i32
    %64 = arith.cmpi ne, %63, %c0_i32_25 : i32
    scf.if %64 {
      %c0_26 = arith.constant 0 : index
      %c0_27 = arith.constant 0 : index
      %65 = vector.load %arg6[%c0_26, %c0_27] : memref<1x128xf32, #tpu.memory_space<vmem>>, vector<1x128xf32>
      %66 = vector.shape_cast %65 : vector<1x128xf32> to vector<1x1x128xf32>
      %cst_28 = arith.constant dense<0.000000e+00> : vector<1xf32>
      %67 = vector.multi_reduction <add>, %66, %cst_28 [1, 2] : vector<1x1x128xf32> to vector<1xf32>
      %68 = vector.shape_cast %67 : vector<1xf32> to vector<1x1x1xf32>
      %69 = vector.extract %68[0, 0, 0] : f32 from vector<1x1x1xf32>
      %c0_29 = arith.constant 0 : index
      %c0_30 = arith.constant 0 : index
      %70 = vector.load %arg7[%c0_29, %c0_30] : memref<1x128xf32, #tpu.memory_space<vmem>>, vector<1x128xf32>
      %71 = vector.shape_cast %70 : vector<1x128xf32> to vector<1x1x128xf32>
      %cst_31 = arith.constant dense<0.000000e+00> : vector<1xf32>
      %72 = vector.multi_reduction <add>, %71, %cst_31 [1, 2] : vector<1x1x128xf32> to vector<1xf32>
      %73 = vector.shape_cast %72 : vector<1xf32> to vector<1x1x1xf32>
      %74 = vector.extract %73[0, 0, 0] : f32 from vector<1x1x1xf32>
      %cst_32 = arith.constant 1.000000e-10 : f32
      %75 = arith.addf %74, %cst_32 : f32
      %76 = arith.divf %69, %75 : f32
      %cst_33 = arith.constant 1.000000e-10 : f32
      %77 = arith.addf %76, %cst_33 : f32
      %78 = math.log %77 : f32
      %cst_34 = arith.constant -1.000000e+00 : f32
      %79 = arith.mulf %cst_34, %78 : f32
      %c0_35 = arith.constant 0 : index
      %c0_36 = arith.constant 0 : index
      %80 = memref.load %arg5[%c0_35, %c0_36] : memref<1x1xf32, #tpu.memory_space<smem>>
      memref.store %79, %arg5[%c0_35, %c0_36] : memref<1x1xf32, #tpu.memory_space<smem>>
    } else {
    }
    return
  }
  func.func @transform_0(%arg0: i32) -> i32 {
    %c0_i32 = arith.constant 0 : i32
    %c0_i32_0 = arith.constant 0 : i32
    return %c0_i32 : i32
  }
  func.func @transform_1(%arg0: i32) -> i32 {
    %c0_i32 = arith.constant 0 : i32
    %c0_i32_0 = arith.constant 0 : i32
    return %c0_i32 : i32
  }
  func.func @transform_2(%arg0: i32) -> (i32, i32) {
    %c0_i32 = arith.constant 0 : i32
    %c0_i32_0 = arith.constant 0 : i32
    return %arg0, %c0_i32 : i32, i32
  }
  func.func @transform_3(%arg0: i32) -> (i32, i32) {
    %c0_i32 = arith.constant 0 : i32
    %c0_i32_0 = arith.constant 0 : i32
    return %arg0, %c0_i32 : i32, i32
  }
  func.func @transform_4(%arg0: i32) -> (i32, i32) {
    %c0_i32 = arith.constant 0 : i32
    %c0_i32_0 = arith.constant 0 : i32
    %c0_i32_1 = arith.constant 0 : i32
    return %c0_i32, %c0_i32_0 : i32, i32
  }
}

</mosaic_0001>

<bundles_post_ra>
// kernel: tpu_custom_call.1
= control target key start
LH: loop header
LB: loop body
LE: loop exit
PB: predicated region body
PF: predicated region fallthrough
CT: control target
= control target key end

     0   :  { %vm42_vm0 = vcmask 130048   ;;  %s13092_s0 = inlined_call_operand.<no memory space> [shape: f32[1], index: 0, kind: input, shape index: {}]   ;;  %s13093_s1 = inlined_call_operand.<no memory space> [shape: s32[1], index: 1, kind: input, shape index: {}]   ;;  %s13094_s2 = inlined_call_operand.vmem [shape: f32[128,16], index: 2, kind: input, shape index: {}]   ;;  %s13095_s3 = inlined_call_operand.vmem [shape: s32[1,128], index: 3, kind: input, shape index: {}]   ;;  %s13096_s4 = inlined_call_operand.hbm [shape: f32[1,1], index: 4, kind: output, shape index: {}]  }
   0x1   :  { %v9710_v0 = vld [vmem:[%s13094_s2 + $0x10] sm:$0xff]  ;;  %v9715_v1 = vld [vmem:[%s13094_s2] sm:$0xff]  ;;  %v9720_v2 = vld [vmem:[%s13094_s2 + $0x18] sm:$0xff] }
   0x2   :  { %v49_v3 = vsel %vm42_vm0, %v9710_v0, -inf  ;;  %v43_v4 = vsel %vm42_vm0, %v9715_v1, -inf  ;;  %v9729_v5 = vld [vmem:[%s13094_s2 + $0x8] sm:$0xff]  ;;  %v52_v6 = vsel %vm42_vm0, %v9720_v2, -inf  ;;  %v9743_v9 = vld [vmem:[%s13094_s2 + $0x20] sm:$0xff] }
   0x3   :  { %50 = vmax.xlane.f32.xlu1 %v49_v3  ;;  %44 = vmax.xlane.f32.xlu0 %v43_v4  ;;  %v46_v7 = vsel %vm42_vm0, %v9729_v5, -inf  ;;  %v9738_v8 = vld [vmem:[%s13094_s2 + $0x28] sm:$0xff] }
   0x4   :  { %11 = vsyncpa [#allocation7], 0  ;;  %v58_v10 = vsel %vm42_vm0, %v9738_v8, -inf  ;;  %v55_v11 = vsel %vm42_vm0, %v9743_v9, -inf  ;;  %v9752_v12 = vld [vmem:[%s13094_s2 + $0x38] sm:$0xff]  ;;  %v9757_v13 = vld [vmem:[%s13094_s2 + $0x30] sm:$0xff]  ;;  %v13097_v32 = vlaneseq }
   0x5   :  { %v64_v14 = vsel %vm42_vm0, %v9752_v12, -inf  ;;  %v61_v15 = vsel %vm42_vm0, %v9757_v13, -inf  ;;  %v9766_v16 = vld [vmem:[%s13094_s2 + $0x48] sm:$0xff]  ;;  %v9771_v17 = vld [vmem:[%s13094_s2 + $0x40] sm:$0xff]  ;;  %v9780_v20 = vld [vmem:[%s13094_s2 + $0x58] sm:$0xff]  ;;  %s9665_s7 = scalar_lea.hbm %s13096_s4, 16 }
   0x6   :  { %v70_v18 = vsel %vm42_vm0, %v9766_v16, -inf  ;;  %v67_v19 = vsel %vm42_vm0, %v9771_v17, -inf  ;;  %v9785_v21 = vld [vmem:[%s13094_s2 + $0x50] sm:$0xff]  ;;  %v76_v22 = vsel %vm42_vm0, %v9780_v20, -inf  ;;  %v9794_v24 = vld [vmem:[%s13094_s2 + $0x68] sm:$0xff]  ;;  %v9799_v25 = vld [vmem:[%s13094_s2 + $0x60] sm:$0xff]  ;;  %p9666_p0 = scmp.ne.s32.totalorder %s13096_s4, %s9665_s7  ;;  %p9669_p1 = scmp.lt.u32.totalorder %s9665_s7, %s13096_s4 }
   0x7   :  { %53 = vmax.xlane.f32.xlu1 %v52_v6  ;;  %47 = vmax.xlane.f32.xlu0 %v46_v7  ;;  %v73_v23 = vsel %vm42_vm0, %v9785_v21, -inf  ;;  %v82_v26 = vsel %vm42_vm0, %v9794_v24, -inf  ;;  %v79_v27 = vsel %vm42_vm0, %v9799_v25, -inf  ;;  %v9808_v28 = vld [vmem:[%s13094_s2 + $0x78] sm:$0xff]  ;;  %v9813_v29 = vld [vmem:[%s13094_s2 + $0x70] sm:$0xff]  ;;  %v9820_v33 = vand.u32 127, %v13097_v32 }
   0x8   :  { %v88_v30 = vsel %vm42_vm0, %v9808_v28, -inf  ;;  %v85_v31 = vsel %vm42_vm0, %v9813_v29, -inf  ;;  %p9671_p2 = pnand %p9669_p1, %p9666_p0 }
   0x9   :  { %13153 = vst [vmem:[#allocation9_spill] sm:$0xff] %v9820_v33 }
   0xb   :  { %59 = vmax.xlane.f32.xlu1 %v58_v10  ;;  %56 = vmax.xlane.f32.xlu0 %v55_v11 }
   0xf   :  { %65 = vmax.xlane.f32.xlu1 %v64_v14  ;;  %62 = vmax.xlane.f32.xlu0 %v61_v15 }
  0x13   :  { %71 = vmax.xlane.f32.xlu1 %v70_v18  ;;  %68 = vmax.xlane.f32.xlu0 %v67_v19 }
  0x17   :  { %77 = vmax.xlane.f32.xlu1 %v76_v22  ;;  %74 = vmax.xlane.f32.xlu0 %v73_v23 }
  0x1b   :  { %83 = vmax.xlane.f32.xlu1 %v82_v26  ;;  %80 = vmax.xlane.f32.xlu0 %v79_v27 }
  0x1f   :  { %89 = vmax.xlane.f32.xlu1 %v88_v30  ;;  %86 = vmax.xlane.f32.xlu0 %v85_v31 }
  0x90   :  { %v9822_v34 = vpop.xlane.xlu1 %50  ;;  %v9824_v35 = vpop.xlane.xlu0 %44 }
  0x91   :  { %vm335_vm1 = vcmp.ge.f32.partialorder %v9710_v0, %v9822_v34  ;;  %vm333_vm2 = vcmp.ge.f32.partialorder %v9715_v1, %v9824_v35 }
  0x92   :  { %v349_v36 = vsel %vm333_vm2, %v9820_v33, 16  ;;  %v351_v37 = vsel %vm335_vm1, %v9820_v33, 16 }
  0x93   :  { %v9833_v38 = vsel %vm42_vm0, %v349_v36, 2147483647  ;;  %v9839_v42 = vsel %vm42_vm0, %v351_v37, 2147483647 }
  0x94   :  { %v9835_v39 = vpop.xlane.xlu1 %53  ;;  %v48_v40 = vpop.xlane.xlu0 %47  ;;  %v367_v41 = vshra.s32 %v9833_v38, 16  ;;  %v397_v44 = vshra.s32 %v9839_v42, 16 }
  0x95   :  { %vm336_vm3 = vcmp.ge.f32.partialorder %v9720_v2, %v9835_v39  ;;  %vm334_vm4 = vcmp.ge.f32.partialorder %v9729_v5, %v48_v40  ;;  %v9919_v26 = vsub.f32 %v9729_v5, %v48_v40 }
  0x96   :  { %v9844_v43 = vcvt.s32.f32 %v367_v41  ;;  %v350_v45 = vsel %vm334_vm4, %v9820_v33, 16  ;;  %v352_v46 = vsel %vm336_vm3, %v9820_v33, 16  ;;  %v9854_v49 = vcvt.s32.f32 %v397_v44 }
  0x97   :  { %v9857_v50 = vsel %vm42_vm0, %v350_v45, 2147483647  ;;  %v9860_v51 = vsel %vm42_vm0, %v352_v46, 2147483647  ;;  %v9945_v44 = vsub.f32 %v9715_v1, %v9824_v35  ;;  %v9964_v1 = vsub.f32 %v9720_v2, %v9835_v39 }
  0x98   :  { %v9849_v47 = vpop.xlane.xlu1 %59  ;;  %370 = vmin.xlane.f32.xlu1 %v9844_v43  ;;  %v9852_v48 = vpop.xlane.xlu0 %56  ;;  %v382_v52 = vshra.s32 %v9857_v50, 16  ;;  %v412_v53 = vshra.s32 %v9860_v51, 16 }
  0x99   :  { %vm338_vm5 = vcmp.ge.f32.partialorder %v9738_v8, %v9849_v47  ;;  %vm337_vm6 = vcmp.ge.f32.partialorder %v9743_v9, %v9852_v48 }
  0x9a   :  { %v353_v54 = vsel %vm337_vm6, %v9820_v33, 16  ;;  %v354_v55 = vsel %vm338_vm5, %v9820_v33, 16  ;;  %v9873_v57 = vcvt.s32.f32 %v382_v52  ;;  %v9888_v61 = vcvt.s32.f32 %v412_v53 }
  0x9b   :  { %v9878_v59 = vsel %vm42_vm0, %v353_v54, 2147483647  ;;  %v9881_v60 = vsel %vm42_vm0, %v354_v55, 2147483647  ;;  %v109_v52 = vmul.f32 1.442695, %v9919_v26 }
  0x9c   :  { %v9870_v56 = vpop.xlane.xlu1 %65  ;;  %400 = vmin.xlane.f32.xlu1 %v9854_v49  ;;  %v9875_v58 = vpop.xlane.xlu0 %62  ;;  %385 = vmin.xlane.f32.xlu0 %v9873_v57  ;;  %v427_v62 = vshra.s32 %v9878_v59, 16  ;;  %v442_v63 = vshra.s32 %v9881_v60, 16 }
  0x9d   :  { %vm340_vm7 = vcmp.ge.f32.partialorder %v9752_v12, %v9870_v56  ;;  %vm339_vm8 = vcmp.ge.f32.partialorder %v9757_v13, %v9875_v58  ;;  %9533 = vpow2.f32 %v109_v52  ;;  %v9998_v52 = vsub.f32 %v9738_v8, %v9849_v47 }
  0x9e   :  { %v355_v3 = vsel %vm339_vm8, %v9820_v33, 16  ;;  %v356_v4 = vsel %vm340_vm7, %v9820_v33, 16  ;;  %v9896_v7 = vcvt.s32.f32 %v427_v62  ;;  %v9912_v15 = vcvt.s32.f32 %v442_v63 }
  0x9f   :  { %v9901_v11 = vsel %vm42_vm0, %v355_v3, 2147483647  ;;  %v9904_v14 = vsel %vm42_vm0, %v356_v4, 2147483647 }
  0xa0   :  { %v9894_v6 = vpop.xlane.xlu1 %71  ;;  %v9898_v10 = vpop.xlane.xlu0 %68  ;;  %415 = vmin.xlane.f32.xlu0 %v9888_v61  ;;  %430 = vmin.xlane.f32.xlu1 %v9896_v7  ;;  %v457_v18 = vshra.s32 %v9901_v11, 16  ;;  %v472_v19 = vshra.s32 %v9904_v14, 16 }
  0xa1   :  { %vm342_vm9 = vcmp.ge.f32.partialorder %v9766_v16, %v9894_v6  ;;  %vm341_vm10 = vcmp.ge.f32.partialorder %v9771_v17, %v9898_v10 }
  0xa2   :  { %v357_v22 = vsel %vm341_vm10, %v9820_v33, 16  ;;  %v358_v23 = vsel %vm342_vm9, %v9820_v33, 16  ;;  %v9923_v30 = vcvt.s32.f32 %v457_v18  ;;  %v9939_v5 = vcvt.s32.f32 %v472_v19 }
  0xa3   :  { %v9928_v36 = vsel %vm42_vm0, %v357_v22, 2147483647  ;;  %v9931_v37 = vsel %vm42_vm0, %v358_v23, 2147483647  ;;  %v107_v18 = vmul.f32 1.442695, %v9945_v44 }
  0xa4   :  { %v9921_v27 = vpop.xlane.xlu1 %77  ;;  %v9925_v31 = vpop.xlane.xlu0 %74  ;;  %445 = vmin.xlane.f32.xlu0 %v9912_v15  ;;  %460 = vmin.xlane.f32.xlu1 %v9923_v30  ;;  %v487_v40 = vshra.s32 %v9928_v36, 16  ;;  %v502_v41 = vshra.s32 %v9931_v37, 16 }
  0xa5   :  { %vm344_vm11 = vcmp.ge.f32.partialorder %v9780_v20, %v9921_v27  ;;  %vm343_vm12 = vcmp.ge.f32.partialorder %v9785_v21, %v9925_v31  ;;  %9535 = vpow2.f32 %v107_v18 }
  0xa6   :  { %v359_v45 = vsel %vm343_vm12, %v9820_v33, 16  ;;  %v360_v46 = vsel %vm344_vm11, %v9820_v33, 16  ;;  %v9952_v54 = vcvt.s32.f32 %v487_v40  ;;  %v9972_v35 = vcvt.s32.f32 %v502_v41 }
  0xa7   :  { %v9957_v62 = vsel %vm42_vm0, %v359_v45, 2147483647  ;;  %v9960_v63 = vsel %vm42_vm0, %v360_v46, 2147483647  ;;  %v9993_v45 = vsub.f32 %v9710_v0, %v9822_v34  ;;  %v113_v46 = vmul.f32 1.442695, %v9964_v1 }
  0xa8   :  { %v9950_v53 = vpop.xlane.xlu1 %83  ;;  %v9954_v55 = vpop.xlane.xlu0 %80  ;;  %13154 = vst [vmem:[#allocation10_spill] sm:$0xff] %v9960_v63  ;;  %475 = vmin.xlane.f32.xlu0 %v9939_v5  ;;  %490 = vmin.xlane.f32.xlu1 %v9952_v54  ;;  %v517_v3 = vshra.s32 %v9957_v62, 16  ;;  %v532_v4 = vshra.s32 %v9960_v63, 16 }
  0xa9   :  { %vm346_vm13 = vcmp.ge.f32.partialorder %v9794_v24, %v9950_v53  ;;  %vm345_vm14 = vcmp.ge.f32.partialorder %v9799_v25, %v9954_v55  ;;  %v111_v63 = vmul.f32 1.442695, %v9993_v45  ;;  %9537 = vpow2.f32 %v113_v46 }
  0xaa   :  { %v361_v2 = vsel %vm345_vm14, %v9820_v33, 16  ;;  %v362_v39 = vsel %vm346_vm13, %v9820_v33, 16  ;;  %v9981_v22 = vcvt.s32.f32 %v517_v3  ;;  %v10006_v3 = vcvt.s32.f32 %v532_v4 }
  0xab   :  { %v9986_v40 = vsel %vm42_vm0, %v361_v2, 2147483647  ;;  %v9989_v41 = vsel %vm42_vm0, %v362_v39, 2147483647  ;;  %v10014_v2 = vsub.f32 %v9743_v9, %v9852_v48  ;;  %9539 = vpow2.f32 %v111_v63 }
  0xac   :  { %v9979_v19 = vpop.xlane.xlu1 %89  ;;  %v9983_v23 = vpop.xlane.xlu0 %86  ;;  %13155 = vst [vmem:[#allocation11_spill] sm:$0xff] %v9989_v41  ;;  %505 = vmin.xlane.f32.xlu0 %v9972_v35  ;;  %520 = vmin.xlane.f32.xlu1 %v9981_v22  ;;  %13156 = vst [vmem:[#allocation12_spill] sm:$0xff] %v10006_v3  ;;  %v547_v0 = vshra.s32 %v9986_v40, 16  ;;  %v562_v34 = vshra.s32 %v9989_v41, 16  ;;  %v117_v41 = vmul.f32 1.442695, %v9998_v52 }
  0xad   :  { %vm348_vm15 = vcmp.ge.f32.partialorder %v9808_v28, %v9979_v19  ;;  %vm347_vm1 = vcmp.ge.f32.partialorder %v9813_v29, %v9983_v23  ;;  %v115_v46 = vmul.f32 1.442695, %v10014_v2 }
  0xae   :  { %v363_v8 = vsel %vm347_vm1, %v9820_v33, 16  ;;  %v364_v47 = vsel %vm348_vm15, %v9820_v33, 16  ;;  %v10016_v39 = vcvt.s32.f32 %v547_v0  ;;  %v10029_v33 = vsub.f32 %v9752_v12, %v9870_v56 }
  0xaf   :  { %v10019_v32 = vsel %vm42_vm0, %v363_v8, 2147483647  ;;  %v10022_v4 = vsel %vm42_vm0, %v364_v47, 2147483647  ;;  %v10033_v9 = vcvt.s32.f32 %v562_v34  ;;  %v10041_v8 = vsub.f32 %v9757_v13, %v9875_v58  ;;  %v10043_v47 = vpop.eup %9533 }
  0xb0   :  { %13157 = vst [vmem:[#allocation13_spill] sm:$0xff] %v10016_v39  ;;  %13158 = vst [vmem:[#allocation14_spill] sm:$0xff] %v10019_v32  ;;  %v577_v18 = vshra.s32 %v10019_v32, 16  ;;  %535 = vmin.xlane.f32.xlu0 %v10006_v3  ;;  %550 = vmin.xlane.f32.xlu1 %v10016_v39  ;;  %v592_v48 = vshra.s32 %v10022_v4, 16  ;;  %9541 = vpow2.f32 %v117_v41  ;;  %v121_v12 = vmul.f32 1.442695, %v10029_v33  ;;  %v10059_v63 = vpop.eup %9535 }
  0xb1   :  { %13159 = vst [vmem:[#allocation15_spill] sm:$0xff] %v10022_v4  ;;  %13160 = vst [vmem:[#allocation16_spill] sm:$0xff] %v10033_v9  ;;  %v10048_v56 = vsub.f32 %v9766_v16, %v9894_v6  ;;  %9543 = vpow2.f32 %v115_v46  ;;  %v119_v13 = vmul.f32 1.442695, %v10041_v8  ;;  %v10057_v58 = vsub.f32 %v9771_v17, %v9898_v10 }
  0xb2   :  { %v10036_v0 = vcvt.s32.f32 %v577_v18  ;;  %v10052_v34 = vcvt.s32.f32 %v592_v48  ;;  %v142_v41 = vsel %vm42_vm0, %v10043_v47, 0.0  ;;  %9545 = vpow2.f32 %v121_v12 }
  0xb3   :  { %v125_v16 = vmul.f32 1.442695, %v10048_v56  ;;  %v10066_v6 = vsub.f32 %v9780_v20, %v9921_v27  ;;  %v10069_v18 = vpop.eup %9537  ;;  %9547 = vpow2.f32 %v119_v13  ;;  %v123_v17 = vmul.f32 1.442695, %v10057_v58 }
  0xb4   :  { %13161 = vst [vmem:[#allocation17_spill] sm:$0xff] %v10036_v0  ;;  %565 = vmin.xlane.f32.xlu0 %v10033_v9  ;;  %580 = vmin.xlane.f32.xlu1 %v10036_v0  ;;  %13162 = vst [vmem:[#allocation18_spill] sm:$0xff] %v10052_v34  ;;  %v10074_v10 = vsub.f32 %v9785_v21, %v9925_v31  ;;  %v139_v48 = vsel %vm42_vm0, %v10059_v63, 0.0  ;;  %v148_v46 = vsel %vm42_vm0, %v10069_v18, 0.0 }
  0xb5   :  { %9549 = vpow2.f32 %v125_v16  ;;  %v129_v20 = vmul.f32 1.442695, %v10066_v6  ;;  %v10083_v27 = vsub.f32 %v9794_v24, %v9950_v53  ;;  %v9540_v12 = vpop.eup %9539  ;;  %v10088_v31 = vsub.f32 %v9799_v25, %v9954_v55 }
  0xb6   :  { %9551 = vpow2.f32 %v123_v17  ;;  %v127_v21 = vmul.f32 1.442695, %v10074_v10  ;;  %v10097_v53 = vsub.f32 %v9808_v28, %v9979_v19  ;;  %v10102_v55 = vsub.f32 %v9813_v29, %v9983_v23 }
  0xb7   :  { %9553 = vpow2.f32 %v129_v20  ;;  %v133_v24 = vmul.f32 1.442695, %v10083_v27  ;;  %v131_v25 = vmul.f32 1.442695, %v10088_v31  ;;  %v190_v39 = vmul.f32 %v10069_v18, %v9964_v1 }
  0xb8   :  { %595 = vmin.xlane.f32.xlu0 %v10052_v34  ;;  %143 = vadd.xlane.f32.xlu1 %v142_v41  ;;  %v145_v41 = vsel %vm42_vm0, %v9540_v12, 0.0  ;;  %9555 = vpow2.f32 %v127_v21  ;;  %v137_v28 = vmul.f32 1.442695, %v10097_v53  ;;  %v135_v21 = vmul.f32 1.442695, %v10102_v55 }
  0xb9   :  { %9557 = vpow2.f32 %v133_v24 }
  0xba   :  { %v9542_v13 = vpop.eup %9541  ;;  %9559 = vpow2.f32 %v131_v25 }
  0xbb   :  { %v154_v16 = vsel %vm42_vm0, %v9542_v13, 0.0  ;;  %v10092_v34 = vpop.eup %9543  ;;  %9561 = vpow2.f32 %v137_v28 }
  0xbc   :  { %140 = vadd.xlane.f32.xlu0 %v139_v48  ;;  %149 = vadd.xlane.f32.xlu1 %v148_v46  ;;  %v9546_v17 = vpop.eup %9545  ;;  %v151_v48 = vsel %vm42_vm0, %v10092_v34, 0.0  ;;  %9563 = vpow2.f32 %v135_v21 }
  0xbd   :  { %v160_v46 = vsel %vm42_vm0, %v9546_v17, 0.0  ;;  %v9548_v20 = vpop.eup %9547 }
  0xbe   :  { %v193_v18 = vmul.f32 %v9548_v20, %v10041_v8 }
  0xbf   :  { %v9550_v19 = vpop.eup %9549 }
  0xc0   :  { %146 = vadd.xlane.f32.xlu0 %v145_v41  ;;  %155 = vadd.xlane.f32.xlu1 %v154_v16  ;;  %v157_v41 = vsel %vm42_vm0, %v9548_v20, 0.0  ;;  %v166_v29 = vsel %vm42_vm0, %v9550_v19, 0.0  ;;  %v9552_v23 = vpop.eup %9551 }
  0xc1   :  { %v9554_v16 = vpop.eup %9553  ;;  %v163_v24 = vsel %vm42_vm0, %v9552_v23, 0.0 }
  0xc2   :  { %v172_v4 = vsel %vm42_vm0, %v9554_v16, 0.0 }
  0xc4   :  { %152 = vadd.xlane.f32.xlu0 %v151_v48  ;;  %161 = vadd.xlane.f32.xlu1 %v160_v46  ;;  %v9556_v48 = vpop.eup %9555 }
  0xc5   :  { %v9558_v25 = vpop.eup %9557  ;;  %v169_v46 = vsel %vm42_vm0, %v9556_v48, 0.0  ;;  %v197_v8 = vmul.f32 %v9556_v48, %v10074_v10  ;;  %v366_v48 = vand.u32 65535, %v9833_v38 }
  0xc6   :  { %v178_v9 = vsel %vm42_vm0, %v9558_v25, 0.0  ;;  %v9560_v0 = vpop.eup %9559 }
  0xc7   :  { %v9562_v28 = vpop.eup %9561 }
  0xc8   :  { %158 = vadd.xlane.f32.xlu0 %v157_v41  ;;  %167 = vadd.xlane.f32.xlu1 %v166_v29  ;;  %v175_v41 = vsel %vm42_vm0, %v9560_v0, 0.0  ;;  %v184_v21 = vsel %vm42_vm0, %v9562_v28, 0.0  ;;  %v188_v29 = vmul.f32 %v10043_v47, %v9919_v26  ;;  %v9564_v3 = vpop.eup %9563  ;;  %v192_v26 = vmul.f32 %v9542_v13, %v9998_v52 }
  0xc9   :  { %v189_v47 = vmul.f32 %v9540_v12, %v9993_v45  ;;  %v196_v52 = vmul.f32 %v9550_v19, %v10048_v56  ;;  %v221_v13 = vsel %vm42_vm0, %v193_v18, 0.0  ;;  %v200_v56 = vmul.f32 %v9558_v25, %v10083_v27 }
  0xca   :  { %v218_v1 = vsel %vm42_vm0, %v192_v26, 0.0  ;;  %v233_v19 = vsel %vm42_vm0, %v197_v8, 0.0  ;;  %v202_v27 = vmul.f32 %v9562_v28, %v10097_v53  ;;  %v426_v28 = vand.u32 65535, %v9878_v59 }
  0xcb   :  { %v230_v12 = vsel %vm42_vm0, %v196_v52, 0.0  ;;  %v242_v20 = vsel %vm42_vm0, %v200_v56, 0.0  ;;  %v411_v59 = vand.u32 65535, %v9860_v51  ;;  %v441_v51 = vand.u32 65535, %v9881_v60  ;;  %v13178_v56 = vld [vmem:[#allocation13_spill] sm:$0xff] }
  0xcc   :  { %164 = vadd.xlane.f32.xlu0 %v163_v24  ;;  %173 = vadd.xlane.f32.xlu1 %v172_v4  ;;  %v206_v4 = vsel %vm42_vm0, %v188_v29, 0.0  ;;  %v181_v24 = vsel %vm42_vm0, %v9564_v3, 0.0  ;;  %v248_v10 = vsel %vm42_vm0, %v202_v27, 0.0  ;;  %v396_v29 = vand.u32 65535, %v9839_v42  ;;  %v13183_v27 = vld [vmem:[#allocation17_spill] sm:$0xff] }
  0xcd   :  { %v471_v60 = vand.u32 65535, %v9904_v14  ;;  %v501_v14 = vand.u32 65535, %v9931_v37 }
  0xcf   :  { %v473_v18 = vcvt.s32.f32 %v471_v60 }
  0xd0   :  { %170 = vadd.xlane.f32.xlu0 %v169_v46  ;;  %179 = vadd.xlane.f32.xlu1 %v178_v9  ;;  %v187_v9 = vmul.f32 %v10059_v63, %v9945_v44  ;;  %v212_v46 = vsel %vm42_vm0, %v190_v39, 0.0  ;;  %v209_v44 = vsel %vm42_vm0, %v189_v47, 0.0  ;;  %v194_v63 = vmul.f32 %v9546_v17, %v10029_v33 }
  0xd1   :  { %v191_v39 = vmul.f32 %v10092_v34, %v10014_v2  ;;  %v198_v33 = vmul.f32 %v9554_v16, %v10066_v6  ;;  %v195_v2 = vmul.f32 %v9552_v23, %v10057_v58  ;;  %v199_v6 = vmul.f32 %v9560_v0, %v10088_v31 }
  0xd2   :  { %v203_v32 = vsel %vm42_vm0, %v187_v9, 0.0  ;;  %v224_v45 = vsel %vm42_vm0, %v194_v63, 0.0  ;;  %v201_v23 = vmul.f32 %v9564_v3, %v10102_v55  ;;  %v368_v0 = vcvt.s32.f32 %v366_v48 }
  0xd3   :  { %v236_v34 = vsel %vm42_vm0, %v198_v33, 0.0  ;;  %v227_v17 = vsel %vm42_vm0, %v195_v2, 0.0  ;;  %v239_v58 = vsel %vm42_vm0, %v199_v6, 0.0  ;;  %v381_v3 = vand.u32 65535, %v9857_v50 }
  0xd4   :  { %176 = vadd.xlane.f32.xlu0 %v175_v41  ;;  %185 = vadd.xlane.f32.xlu1 %v184_v21  ;;  %v13109_v41 = vmov 0   ;;  %v245_v16 = vsel %vm42_vm0, %v201_v23, 0.0  ;;  %v456_v9 = vand.u32 65535, %v9901_v11  ;;  %v413_v47 = vcvt.s32.f32 %v411_v59  ;;  %v13182_v23 = vld [vmem:[#allocation11_spill] sm:$0xff] }
  0xd5   :  { %9532 = vset.pattern.permute.xlu0 %v13109_v41  ;;  %9531 = vset.pattern.permute.xlu1 %v13109_v41  ;;  %v383_v53 = vcvt.s32.f32 %v381_v3  ;;  %v486_v11 = vand.u32 65535, %v9928_v36  ;;  %v516_v36 = vand.u32 65535, %v9957_v62  ;;  %v546_v62 = vand.u32 65535, %v9986_v40 }
  0xd6   :  { %v458_v26 = vcvt.s32.f32 %v456_v9  ;;  %v503_v2 = vcvt.s32.f32 %v501_v14  ;;  %v13188_v59 = vlaneseq }
  0xd7   :  { %v488_v63 = vcvt.s32.f32 %v486_v11  ;;  %v518_v52 = vcvt.s32.f32 %v516_v36  ;;  %v548_v33 = vcvt.s32.f32 %v546_v62 }
  0xd8   :  { %207 = vadd.xlane.f32.xlu1 %v206_v4  ;;  %182 = vadd.xlane.f32.xlu0 %v181_v24  ;;  %v428_v4 = vcvt.s32.f32 %v426_v28  ;;  %v398_v24 = vcvt.s32.f32 %v396_v29  ;;  %v13186_v28 = vld [vmem:[#allocation15_spill] sm:$0xff] }
  0xd9   :  { %v591_v29 = vand.u32 65535, %v13186_v28 }
  0xdc   :  { %213 = vadd.xlane.f32.xlu1 %v212_v46  ;;  %204 = vadd.xlane.f32.xlu0 %v203_v32  ;;  %v215_v32 = vsel %vm42_vm0, %v191_v39, 0.0  ;;  %v443_v39 = vcvt.s32.f32 %v441_v51 }
  0xe0   :  { %219 = vadd.xlane.f32.xlu1 %v218_v1  ;;  %210 = vadd.xlane.f32.xlu0 %v209_v44 }
  0xe4   :  { %225 = vadd.xlane.f32.xlu1 %v224_v45  ;;  %216 = vadd.xlane.f32.xlu0 %v215_v32 }
  0xe8   :  { %231 = vadd.xlane.f32.xlu1 %v230_v12  ;;  %222 = vadd.xlane.f32.xlu0 %v221_v13 }
  0xec   :  { %237 = vadd.xlane.f32.xlu1 %v236_v34  ;;  %228 = vadd.xlane.f32.xlu0 %v227_v17  ;;  %v13176_v34 = vld [vmem:[#allocation14_spill] sm:$0xff] }
  0xed   :  { %v576_v40 = vand.u32 65535, %v13176_v34  ;;  %v13177_v17 = vld [vmem:[#allocation10_spill] sm:$0xff] }
  0xee   :  { %v531_v37 = vand.u32 65535, %v13177_v17 }
  0xef   :  { %v578_v6 = vcvt.s32.f32 %v576_v40 }
  0xf0   :  { %243 = vadd.xlane.f32.xlu1 %v242_v20  ;;  %234 = vadd.xlane.f32.xlu0 %v233_v19  ;;  %v13179_v20 = vld [vmem:[#allocation12_spill] sm:$0xff] }
  0xf4   :  { %240 = vadd.xlane.f32.xlu0 %v239_v58  ;;  %v533_v58 = vcvt.s32.f32 %v531_v37 }
  0xf8   :  { %246 = vadd.xlane.f32.xlu0 %v245_v16  ;;  %v561_v16 = vand.u32 65535, %v13182_v23 }
  0xfc   :  { %249 = vadd.xlane.f32.xlu0 %v248_v10 }
 0x125   :  { %v10157_v25 = vpop.xlane.xlu1 %370 }
 0x126   :  { %13163 = vst [vmem:[#allocation19_spill] sm:$0xff] %v10157_v25  ;;  %vm372_vm2 = vcmp.eq.f32.partialorder %v9844_v43, %v10157_v25 }
 0x127   :  { %v373_v31 = vsel %vm372_vm2, %v368_v0, inf  ;;  %v13184_v0 = vld [vmem:[#allocation16_spill] sm:$0xff] }
 0x128   :  { %374 = vmin.xlane.f32.xlu0 %v373_v31 }
 0x129   :  { %v10162_v55 = vpop.xlane.xlu1 %400  ;;  %v10164_v21 = vpop.xlane.xlu0 %385 }
 0x12a   :  { %13164 = vst [vmem:[#allocation20_spill] sm:$0xff] %v10162_v55  ;;  %13165 = vst [vmem:[#allocation21_spill] sm:$0xff] %v10164_v21  ;;  %vm387_vm0 = vcmp.eq.f32.partialorder %v9873_v57, %v10164_v21  ;;  %vm402_vm3 = vcmp.eq.f32.partialorder %v9854_v49, %v10162_v55 }
 0x12b   :  { %v388_v38 = vsel %vm387_vm0, %v383_v53, inf  ;;  %v403_v57 = vsel %vm402_vm3, %v398_v24, inf  ;;  %v563_v53 = vcvt.s32.f32 %v561_v16  ;;  %v9678_v24 = vmov 1966171168  }
 0x12c   :  { %389 = vmin.xlane.f32.xlu1 %v388_v38  ;;  %v1134_v9 = vunpack.c.l.s4 %v9678_v24 }
 0x12d   :  { %v10172_v43 = vpop.xlane.xlu1 %430  ;;  %v10174_v50 = vpop.xlane.xlu0 %415 }
 0x12e   :  { %13166 = vst [vmem:[#allocation22_spill] sm:$0xff] %v10172_v43  ;;  %13167 = vst [vmem:[#allocation23_spill] sm:$0xff] %v10174_v50  ;;  %vm432_vm4 = vcmp.eq.f32.partialorder %v9896_v7, %v10172_v43  ;;  %vm417_vm5 = vcmp.eq.f32.partialorder %v9888_v61, %v10174_v50  ;;  %v1135_v51 = vunpack.c.0.s8 %v1134_v9 }
 0x12f   :  { %v433_v42 = vsel %vm432_vm4, %v428_v4, inf  ;;  %v418_v1 = vsel %vm417_vm5, %v413_v47, inf  ;;  %v13187_v4 = vld [vmem:[#allocation18_spill] sm:$0xff]  ;;  %v593_v47 = vcvt.s32.f32 %v591_v29 }
 0x130   :  { %434 = vmin.xlane.f32.xlu0 %v433_v42  ;;  %404 = vmin.xlane.f32.xlu1 %v403_v57  ;;  %v10237_v42 = vshrl.u32 %v13188_v59, 7 }
 0x131   :  { %v10182_v49 = vpop.xlane.xlu1 %460  ;;  %v10184_v46 = vpop.xlane.xlu0 %445 }
 0x132   :  { %13168 = vst [vmem:[#allocation24_spill] sm:$0xff] %v10182_v49  ;;  %13169 = vst [vmem:[#allocation25_spill] sm:$0xff] %v10184_v46  ;;  %vm462_vm6 = vcmp.eq.f32.partialorder %v9923_v30, %v10182_v49  ;;  %vm447_vm7 = vcmp.eq.f32.partialorder %v9912_v15, %v10184_v46  ;;  %v10250_v36 = vsub.s32 2, %v10237_v42  ;;  %v10253_v60 = vsub.s32 3, %v10237_v42 }
 0x133   :  { %v463_v7 = vsel %vm462_vm6, %v458_v26, inf  ;;  %v448_v45 = vsel %vm447_vm7, %v443_v39, inf  ;;  %13189 = vst [vmem:[#allocation12_spill] sm:$0xff] %v10237_v42  ;;  %v10247_v39 = vsub.s32 1, %v10237_v42  ;;  %v10270_v14 = vsub.s32 %v1135_v51, %v10237_v42 }
 0x134   :  { %464 = vmin.xlane.f32.xlu0 %v463_v7  ;;  %419 = vmin.xlane.f32.xlu1 %v418_v1 }
 0x135   :  { %v10192_v61 = vpop.xlane.xlu1 %490  ;;  %v10194_v44 = vpop.xlane.xlu0 %475 }
 0x136   :  { %13170 = vst [vmem:[#allocation26_spill] sm:$0xff] %v10192_v61  ;;  %13171 = vst [vmem:[#allocation27_spill] sm:$0xff] %v10194_v44  ;;  %vm492_vm8 = vcmp.eq.f32.partialorder %v9952_v54, %v10192_v61  ;;  %vm477_vm9 = vcmp.eq.f32.partialorder %v9939_v5, %v10194_v44 }
 0x137   :  { %v493_v30 = vsel %vm492_vm8, %v488_v63, inf  ;;  %v478_v12 = vsel %vm477_vm9, %v473_v18, inf  ;;  %v10244_v63 = vsub.s32 0, %v10237_v42  ;;  %v10265_v18 = vsub.s32 7, %v10237_v42 }
 0x138   :  { %494 = vmin.xlane.f32.xlu0 %v493_v30  ;;  %449 = vmin.xlane.f32.xlu1 %v448_v45  ;;  %v10256_v30 = vsub.s32 4, %v10237_v42  ;;  %v10259_v45 = vsub.s32 5, %v10237_v42 }
 0x139   :  { %v10202_v15 = vpop.xlane.xlu1 %520  ;;  %v10204_v32 = vpop.xlane.xlu0 %505 }
 0x13a   :  { %13172 = vst [vmem:[#allocation28_spill] sm:$0xff] %v10202_v15  ;;  %13173 = vst [vmem:[#allocation29_spill] sm:$0xff] %v10204_v32  ;;  %vm522_vm10 = vcmp.eq.f32.partialorder %v9981_v22, %v10202_v15  ;;  %vm507_vm11 = vcmp.eq.f32.partialorder %v9972_v35, %v10204_v32 }
 0x13b   :  { %v523_v54 = vsel %vm522_vm10, %v518_v52, inf  ;;  %v508_v8 = vsel %vm507_vm11, %v503_v2, inf  ;;  %v10262_v52 = vsub.s32 6, %v10237_v42 }
 0x13c   :  { %524 = vmin.xlane.f32.xlu0 %v523_v54  ;;  %479 = vmin.xlane.f32.xlu1 %v478_v12 }
 0x13d   :  { %v10212_v5 = vpop.xlane.xlu1 %550  ;;  %v10214_v13 = vpop.xlane.xlu0 %535 }
 0x13e   :  { %13174 = vst [vmem:[#allocation30_spill] sm:$0xff] %v10212_v5  ;;  %13175 = vst [vmem:[#allocation31_spill] sm:$0xff] %v10214_v13  ;;  %vm552_vm12 = vcmp.eq.f32.partialorder %v13178_v56, %v10212_v5  ;;  %vm537_vm13 = vcmp.eq.f32.partialorder %v13179_v20, %v10214_v13 }
 0x13f   :  { %v553_v22 = vsel %vm552_vm12, %v548_v33, inf  ;;  %v538_v48 = vsel %vm537_vm13, %v533_v58, inf }
 0x140   :  { %554 = vmin.xlane.f32.xlu0 %v553_v22  ;;  %509 = vmin.xlane.f32.xlu1 %v508_v8 }
 0x141   :  { %v10222_v35 = vpop.xlane.xlu1 %580  ;;  %v10224_v19 = vpop.xlane.xlu0 %565 }
 0x142   :  { %13180 = vst [vmem:[#allocation14_spill] sm:$0xff] %v10222_v35  ;;  %13181 = vst [vmem:[#allocation10_spill] sm:$0xff] %v10224_v19  ;;  %vm582_vm14 = vcmp.eq.f32.partialorder %v13183_v27, %v10222_v35  ;;  %vm567_vm15 = vcmp.eq.f32.partialorder %v13184_v0, %v10224_v19 }
 0x143   :  { %v583_v10 = vsel %vm582_vm14, %v578_v6, inf  ;;  %v568_v38 = vsel %vm567_vm15, %v563_v53, inf  ;;  %vm9679_vm15 = vmmov 1  }
 0x144   :  { %584 = vmin.xlane.f32.xlu0 %v583_v10  ;;  %539 = vmin.xlane.f32.xlu1 %v538_v48 }
 0x145   :  { %v144_v31 = vpop.xlane.xlu1 %143  ;;  %v10231_v3 = vpop.xlane.xlu0 %595 }
 0x146   :  { %13185 = vst [vmem:[#allocation13_spill] sm:$0xff] %v10231_v3  ;;  %9565 = vrcp.f32 %v144_v31  ;;  %vm597_vm1 = vcmp.eq.f32.partialorder %v13187_v4, %v10231_v3 }
 0x147   :  { %v598_v11 = vsel %vm597_vm1, %v593_v47, inf }
 0x148   :  { %569 = vmin.xlane.f32.xlu1 %v568_v38 }
 0x149   :  { %v150_v57 = vpop.xlane.xlu1 %149  ;;  %v141_v26 = vpop.xlane.xlu0 %140 }
 0x14a   :  { %9567 = vrcp.f32 %v141_v26 }
 0x14c   :  { %599 = vmin.xlane.f32.xlu1 %v598_v11 }
 0x14d   :  { %v10239_v7 = vpop.xlane.xlu1 %155  ;;  %v10241_v1 = vpop.xlane.xlu0 %146 }
 0x14e   :  { %9569 = vrcp.f32 %v10241_v1 }
 0x14f   :  { %9571 = vlog2.f32 %v144_v31 }
 0x150   :  { %v10267_v62 = vpop.eup %9565  ;;  %9573 = vrcp.f32 %v150_v57 }
 0x151   :  { %v10273_v54 = vpop.xlane.xlu1 %161  ;;  %v10275_v12 = vpop.xlane.xlu0 %152  ;;  %v2185_v33 = vrot.slane %v10267_v62, %v10244_v63  ;;  %v2189_v2 = vrot.slane %v10267_v62, %v10247_v39  ;;  %v2193_v34 = vrot.slane %v10267_v62, %v10250_v36  ;;  %v2197_v40 = vrot.slane %v10267_v62, %v10253_v60 }
 0x152   :  { %v2201_v17 = vrot.slane %v10267_v62, %v10256_v30  ;;  %v2205_v37 = vrot.slane %v10267_v62, %v10259_v45  ;;  %v2209_v56 = vrot.slane %v10267_v62, %v10262_v52  ;;  %v2213_v22 = vrot.slane %v10267_v62, %v10265_v18 }
 0x153   :  { %v2711_v8 = vcombine.low %v2185_v33, %v2189_v2  ;;  %v2712_v20 = vcombine.low %v2193_v34, %v2197_v40  ;;  %9575 = vlog2.f32 %v150_v57 }
 0x154   :  { %v2713_v6 = vcombine.low %v2201_v17, %v2205_v37  ;;  %v2714_v16 = vcombine.low %v2209_v56, %v2213_v22  ;;  %v10298_v10 = vpop.eup %9567  ;;  %9577 = vlog2.f32 %v141_v26 }
 0x155   :  { %v10293_v58 = vpop.xlane.xlu1 %167  ;;  %v10295_v23 = vpop.xlane.xlu0 %158  ;;  %v2721_v27 = vrot.slane %v2711_v8, %v10270_v14  ;;  %v2728_v48 = vrot.slane %v2712_v20, %v10270_v14  ;;  %v2153_v28 = vrot.slane %v10298_v10, %v10244_v63  ;;  %v2157_v29 = vrot.slane %v10298_v10, %v10247_v39 }
 0x156   :  { %v2735_v0 = vrot.slane %v2713_v6, %v10270_v14  ;;  %v2742_v53 = vrot.slane %v2714_v16, %v10270_v14  ;;  %v2161_v4 = vrot.slane %v10298_v10, %v10250_v36  ;;  %v2165_v31 = vrot.slane %v10298_v10, %v10253_v60 }
 0x157   :  { %v2743_v38 = vcombine.low %v2721_v27, %v2728_v48  ;;  %v2169_v47 = vrot.slane %v10298_v10, %v10256_v30  ;;  %v2173_v11 = vrot.slane %v10298_v10, %v10259_v45  ;;  %v2177_v33 = vrot.slane %v10298_v10, %v10262_v52 }
 0x158   :  { %v2744_v59 = vcombine.low %v2735_v0, %v2742_v53  ;;  %v2181_v2 = vrot.slane %v10298_v10, %v10265_v18  ;;  %v10324_v34 = vpop.eup %9569  ;;  %v2662_v17 = vcombine.low %v2153_v28, %v2157_v29  ;;  %v2663_v37 = vcombine.low %v2161_v4, %v2165_v31 }
 0x159   :  { %v10311_v24 = vpop.xlane.xlu1 %173  ;;  %v10313_v9 = vpop.xlane.xlu0 %164  ;;  %v2751_v51 = vrot.slane %v2743_v38, %v10270_v14  ;;  %v2664_v56 = vcombine.low %v2169_v47, %v2173_v11  ;;  %9579 = vrcp.f32 %v10239_v7  ;;  %v2217_v26 = vrot.slane %v10324_v34, %v10244_v63 }
 0x15a   :  { %v2758_v40 = vrot.slane %v2744_v59, %v10270_v14  ;;  %v2665_v22 = vcombine.low %v2177_v33, %v2181_v2  ;;  %v2672_v16 = vrot.slane %v2662_v17, %v10270_v14  ;;  %v2679_v27 = vrot.slane %v2663_v37, %v10270_v14  ;;  %v9572_v38 = vpop.eup %9571 }
 0x15b   :  { %v2686_v57 = vrot.slane %v2664_v56, %v10270_v14  ;;  %v2221_v0 = vrot.slane %v10324_v34, %v10247_v39  ;;  %9581 = vlog2.f32 %v10239_v7  ;;  %v2225_v28 = vrot.slane %v10324_v34, %v10250_v36  ;;  %v10350_v47 = vpop.eup %9573 }
 0x15c   :  { %v2759_v20 = vcombine.low %v2751_v51, %v2758_v40  ;;  %v2693_v48 = vrot.slane %v2665_v22, %v10270_v14  ;;  %v2694_v53 = vcombine.low %v2672_v16, %v2679_v27  ;;  %v2229_v29 = vrot.slane %v10324_v34, %v10253_v60 }
 0x15d   :  { %v10328_v8 = vpop.xlane.xlu1 %179  ;;  %v10330_v6 = vpop.xlane.xlu0 %170  ;;  %9583 = vrcp.f32 %v10275_v12  ;;  %v2233_v31 = vrot.slane %v10324_v34, %v10256_v30  ;;  %v2237_v59 = vrot.slane %v10324_v34, %v10259_v45  ;;  %v2241_v51 = vrot.slane %v10324_v34, %v10262_v52 }
 0x15e   :  { %3450 = vperm.xlu0 %9532, %v2759_v20   ;;  %v2695_v4 = vcombine.low %v2686_v57, %v2693_v48  ;;  %9585 = vlog2.f32 %v10241_v1  ;;  %v2702_v11 = vrot.slane %v2694_v53, %v10270_v14  ;;  %v2245_v33 = vrot.slane %v10324_v34, %v10265_v18  ;;  %v9576_v48 = vpop.eup %9575 }
 0x15f   :  { %9587 = vrcp.f32 %v10273_v54  ;;  %v2760_v40 = vcombine.low %v2217_v26, %v2221_v0  ;;  %v2761_v17 = vcombine.low %v2225_v28, %v2229_v29  ;;  %v270_v1 = vmul.f32 0.6931472, %v9572_v38  ;;  %v9578_v29 = vpop.eup %9577 }
 0x160   :  { %v2709_v2 = vrot.slane %v2695_v4, %v10270_v14  ;;  %9589 = vlog2.f32 %v10273_v54  ;;  %v2762_v56 = vcombine.low %v2233_v31, %v2237_v59  ;;  %v2763_v22 = vcombine.low %v2241_v51, %v2245_v33 }
 0x161   :  { %v10353_v7 = vpop.xlane.xlu1 %185  ;;  %v10363_v37 = vpop.xlane.xlu0 %176  ;;  %v2770_v16 = vrot.slane %v2760_v40, %v10270_v14  ;;  %v2777_v27 = vrot.slane %v2761_v17, %v10270_v14  ;;  %v2249_v57 = vrot.slane %v10350_v47, %v10244_v63  ;;  %v2253_v54 = vrot.slane %v10350_v47, %v10247_v39 }
 0x162   :  { %13190 = vst [vmem:[#allocation11_spill] sm:$0xff] %v10353_v7  ;;  %v2710_v20 = vcombine.low %v2702_v11, %v2709_v2  ;;  %v2784_v26 = vrot.slane %v2762_v56, %v10270_v14  ;;  %v2791_v0 = vrot.slane %v2763_v22, %v10270_v14  ;;  %v2257_v28 = vrot.slane %v10350_v47, %v10250_v36 }
 0x163   :  { %9591 = vlog2.f32 %v10275_v12  ;;  %v2792_v4 = vcombine.low %v2770_v16, %v2777_v27  ;;  %v2261_v31 = vrot.slane %v10350_v47, %v10253_v60  ;;  %v10379_v59 = vpop.eup %9579  ;;  %v2265_v51 = vrot.slane %v10350_v47, %v10256_v30 }
 0x164   :  { %3447 = vperm.xlu1 %9531, %v2710_v20   ;;  %9593 = vrcp.f32 %v10293_v58  ;;  %v2793_v11 = vcombine.low %v2784_v26, %v2791_v0  ;;  %v2269_v33 = vrot.slane %v10350_v47, %v10259_v45  ;;  %v2273_v40 = vrot.slane %v10350_v47, %v10262_v52 }
 0x165   :  { %v208_v53 = vpop.xlane.xlu1 %207  ;;  %v2800_v12 = vrot.slane %v2792_v4, %v10270_v14  ;;  %v2277_v17 = vrot.slane %v10350_v47, %v10265_v18  ;;  %v9582_v56 = vpop.eup %9581  ;;  %v2809_v27 = vcombine.low %v2249_v57, %v2253_v54 }
 0x166   :  { %v300_v38 = vmul.f32 %v10267_v62, %v208_v53  ;;  %v2807_v22 = vrot.slane %v2793_v11, %v10270_v14  ;;  %v10394_v20 = vpop.xlane.xlu0 %182  ;;  %v2810_v53 = vcombine.low %v2257_v28, %v2261_v31  ;;  %v2811_v26 = vcombine.low %v2265_v51, %v2269_v33 }
 0x167   :  { %v10396_v0 = vpop.eup %9583  ;;  %v2812_v4 = vcombine.low %v2273_v40, %v2277_v17  ;;  %v2819_v11 = vrot.slane %v2809_v27, %v10270_v14  ;;  %v10423_v40 = vstv %s13092_s0  ;;  %v278_v13 = vmul.f32 0.6931472, %v9582_v56 }
 0x168   :  { %v10386_v2 = vsub.f32 %v270_v1, %v300_v38  ;;  %v274_v1 = vmul.f32 0.6931472, %v9576_v48  ;;  %v10400_v41 = vpop.eup %9585  ;;  %v2808_v42 = vcombine.low %v2800_v12, %v2807_v22  ;;  %v2826_v3 = vrot.slane %v2810_v53, %v10270_v14 }
 0x169   :  { %v214_v16 = vpop.xlane.xlu1 %213  ;;  %v10405_v57 = vpop.eup %9587  ;;  %v2833_v48 = vrot.slane %v2811_v26, %v10270_v14  ;;  %v2840_v28 = vrot.slane %v2812_v4, %v10270_v14  ;;  %v2285_v33 = vrot.slane %v10396_v0, %v10247_v39  ;;  %v2289_v12 = vrot.slane %v10396_v0, %v10250_v36 }
 0x16a   :  { %9595 = vtanh.f32 %v10386_v2  ;;  %v302_v38 = vmul.f32 %v10350_v47, %v214_v16  ;;  %v10412_v31 = vpop.eup %9589  ;;  %3453 = vperm.xlu1 %9531, %v2808_v42   ;;  %v2841_v51 = vcombine.low %v2819_v11, %v2826_v3  ;;  %v2293_v3 = vrot.slane %v10396_v0, %v10253_v60  ;;  %v205_v27 = vpop.xlane.xlu0 %204 }
 0x16b   :  { %9597 = vlog2.f32 %v10293_v58  ;;  %v2281_v58 = vrot.slane %v10396_v0, %v10244_v63  ;;  %v2842_v17 = vcombine.low %v2833_v48, %v2840_v28  ;;  %v2297_v22 = vrot.slane %v10396_v0, %v10256_v30 }
 0x16c   :  { %9599 = vrcp.f32 %v10295_v23  ;;  %v10408_v54 = vsub.f32 %v274_v1, %v302_v38  ;;  %v2849_v42 = vrot.slane %v2841_v51, %v10270_v14  ;;  %v2301_v16 = vrot.slane %v10396_v0, %v10259_v45 }
 0x16d   :  { %v10434_v53 = vpop.eup %9591  ;;  %v2856_v26 = vrot.slane %v2842_v17, %v10270_v14  ;;  %v2305_v1 = vrot.slane %v10396_v0, %v10262_v52  ;;  %v220_v38 = vpop.xlane.xlu1 %219  ;;  %v2858_v11 = vcombine.low %v2281_v58, %v2285_v33  ;;  %v2859_v48 = vcombine.low %v2289_v12, %v2293_v3 }
 0x16e   :  { %9601 = vtanh.f32 %v10408_v54  ;;  %v10442_v4 = vpop.eup %9593  ;;  %v2860_v28 = vcombine.low %v2297_v22, %v2301_v16  ;;  %v268_v51 = vmul.f32 0.6931472, %v9578_v29  ;;  %v299_v5 = vmul.f32 %v10298_v10, %v205_v27 }
 0x16f   :  { %9603 = vlog2.f32 %v10295_v23  ;;  %v2309_v23 = vrot.slane %v10396_v0, %v10265_v18  ;;  %v2857_v19 = vcombine.low %v2849_v42, %v2856_v26  ;;  %v2868_v17 = vrot.slane %v2858_v11, %v10270_v14 }
 0x170   :  { %9605 = vrcp.f32 %v10311_v24  ;;  %v2875_v32 = vrot.slane %v2859_v48, %v10270_v14  ;;  %v2882_v15 = vrot.slane %v2860_v28, %v10270_v14  ;;  %v304_v44 = vmul.f32 %v10379_v59, %v220_v38 }
 0x171   :  { %v2861_v35 = vcombine.low %v2305_v1, %v2309_v23  ;;  %9607 = vrcp.f32 %v10313_v9  ;;  %3456 = vperm.xlu1 %9531, %v2857_v19   ;;  %v10451_v29 = vsub.f32 %v268_v51, %v299_v5  ;;  %vm2087_vm2 = vcmp.le.f32.partialorder %v10386_v2, %v10423_v40 }
 0x172   :  { %v2890_v12 = vcombine.low %v2868_v17, %v2875_v32  ;;  %v10457_v3 = vsub.f32 %v278_v13, %v304_v44  ;;  %v2313_v19 = vrot.slane %v10379_v59, %v10244_v63  ;;  %v2317_v5 = vrot.slane %v10379_v59, %v10247_v39  ;;  %vm10900_vm1 = vmxor %vm2087_vm2, %vm9679_vm15 }
 0x173   :  { %v2889_v58 = vrot.slane %v2861_v35, %v10270_v14  ;;  %9609 = vtanh.f32 %v10451_v29  ;;  %v2321_v44 = vrot.slane %v10379_v59, %v10250_v36  ;;  %vm2089_vm0 = vcmp.le.f32.partialorder %v10408_v54, %v10423_v40 }
 0x174   :  { %v9596_v61 = vpop.eup %9595  ;;  %v2898_v32 = vrot.slane %v2890_v12, %v10270_v14  ;;  %9611 = vtanh.f32 %v10457_v3  ;;  %v2329_v26 = vrot.slane %v10379_v59, %v10256_v30  ;;  %v2333_v1 = vrot.slane %v10379_v59, %v10259_v45 }
 0x175   :  { %v10453_v33 = vpop.eup %9597  ;;  %v5044_v56 = vsub.f32 1.0, %v9596_v61  ;;  %v2891_v22 = vcombine.low %v2882_v15, %v2889_v58  ;;  %v2325_v15 = vrot.slane %v10379_v59, %v10253_v60  ;;  %vm2086_vm3 = vcmp.le.f32.partialorder %v10451_v29, %v10423_v40 }
 0x176   :  { %v10459_v42 = vpop.eup %9599  ;;  %v2337_v11 = vrot.slane %v10379_v59, %v10262_v52  ;;  %v2341_v48 = vrot.slane %v10379_v59, %v10265_v18  ;;  %v2907_v28 = vcombine.low %v2313_v19, %v2317_v5  ;;  %v2909_v58 = vcombine.low %v2329_v26, %v2333_v1 }
 0x177   :  { %v10469_v35 = vsel %vm2087_vm2, %v5044_v56, %v9596_v61  ;;  %v2905_v16 = vrot.slane %v2891_v22, %v10270_v14  ;;  %v2908_v17 = vcombine.low %v2321_v44, %v2325_v15  ;;  %v2345_v56 = vrot.slane %v10459_v42, %v10244_v63 }
 0x178   :  { %13191 = vst [vmem:[#allocation17_spill] sm:$0xff] %v10469_v35  ;;  %v9602_v13 = vpop.eup %9601  ;;  %v2910_v12 = vcombine.low %v2337_v11, %v2341_v48  ;;  %v2917_v22 = vrot.slane %v2907_v28, %v10270_v14  ;;  %v2353_v19 = vrot.slane %v10459_v42, %v10250_v36  ;;  %v2357_v44 = vrot.slane %v10459_v42, %v10253_v60 }
 0x179   :  { %v10478_v27 = vpop.eup %9603  ;;  %v5046_v61 = vsub.f32 1.0, %v9602_v13  ;;  %v2906_v38 = vcombine.low %v2898_v32, %v2905_v16  ;;  %v2349_v32 = vrot.slane %v10459_v42, %v10247_v39  ;;  %v2924_v5 = vrot.slane %v2908_v17, %v10270_v14  ;;  %v211_v16 = vpop.xlane.xlu0 %210 }
 0x17a   :  { %v10486_v23 = vpop.eup %9605  ;;  %v2361_v15 = vrot.slane %v10459_v42, %v10256_v30  ;;  %v2938_v26 = vrot.slane %v2910_v12, %v10270_v14  ;;  %v2365_v1 = vrot.slane %v10459_v42, %v10259_v45  ;;  %v2373_v11 = vrot.slane %v10459_v42, %v10265_v18 }
 0x17b   :  { %v10497_v51 = vsel %vm2089_vm0, %v5046_v61, %v9602_v13  ;;  %3459 = vperm.xlu0 %9532, %v2906_v38   ;;  %v2931_v13 = vrot.slane %v2909_v58, %v10270_v14  ;;  %v10512_v61 = vpop.eup %9607  ;;  %v2369_v38 = vrot.slane %v10459_v42, %v10262_v52  ;;  %v2939_v48 = vcombine.low %v2917_v22, %v2924_v5 }
 0x17c   :  { %13192 = vst [vmem:[#allocation16_spill] sm:$0xff] %v10497_v51  ;;  %v2956_v28 = vcombine.low %v2345_v56, %v2349_v32  ;;  %v2957_v17 = vcombine.low %v2353_v19, %v2357_v44  ;;  %v272_v58 = vmul.f32 0.6931472, %v10400_v41  ;;  %v2958_v50 = vcombine.low %v2361_v15, %v2365_v1  ;;  %v226_v19 = vpop.xlane.xlu1 %225 }
 0x17d   :  { %v9610_v46 = vpop.eup %9609  ;;  %v2940_v49 = vcombine.low %v2931_v13, %v2938_v26  ;;  %v2959_v43 = vcombine.low %v2369_v38, %v2373_v11  ;;  %v301_v12 = vmul.f32 %v10324_v34, %v211_v16  ;;  %v2947_v21 = vrot.slane %v2939_v48, %v10270_v14  ;;  %v217_v11 = vpop.xlane.xlu0 %216 }
 0x17e   :  { %v5043_v55 = vsub.f32 1.0, %v9610_v46  ;;  %v2966_v25 = vrot.slane %v2956_v28, %v10270_v14  ;;  %v2973_v51 = vrot.slane %v2957_v17, %v10270_v14  ;;  %v9612_v35 = vpop.eup %9611  ;;  %v2980_v56 = vrot.slane %v2958_v50, %v10270_v14 }
 0x17f   :  { %v2954_v22 = vrot.slane %v2940_v49, %v10270_v14  ;;  %v2987_v41 = vrot.slane %v2959_v43, %v10270_v14  ;;  %v10529_v32 = vsub.f32 %v272_v58, %v301_v12  ;;  %9613 = vlog2.f32 %v10311_v24 }
 0x180   :  { %v10535_v5 = vsel %vm2086_vm3, %v5043_v55, %v9610_v46  ;;  %v5048_v13 = vsub.f32 1.0, %v9612_v35  ;;  %v2988_v44 = vcombine.low %v2966_v25, %v2973_v51  ;;  %vm2091_vm4 = vcmp.le.f32.partialorder %v10457_v3, %v10423_v40  ;;  %v232_v17 = vpop.xlane.xlu1 %231 }
 0x181   :  { %13193 = vst [vmem:[#allocation15_spill] sm:$0xff] %v10535_v5  ;;  %v2955_v49 = vcombine.low %v2947_v21, %v2954_v22  ;;  %v2989_v15 = vcombine.low %v2980_v56, %v2987_v41  ;;  %9615 = vtanh.f32 %v10529_v32  ;;  %v282_v24 = vmul.f32 0.6931472, %v10412_v31 }
 0x182   :  { %v10543_v43 = vsel %vm2091_vm4, %v5048_v13, %v9612_v35  ;;  %v2996_v50 = vrot.slane %v2988_v44, %v10270_v14  ;;  %v306_v55 = vmul.f32 %v10405_v57, %v226_v19  ;;  %9617 = vlog2.f32 %v10313_v9 }
 0x183   :  { %13194 = vst [vmem:[#allocation18_spill] sm:$0xff] %v10543_v43  ;;  %3462 = vperm.xlu1 %9531, %v2955_v49   ;;  %v3003_v25 = vrot.slane %v2989_v15, %v10270_v14  ;;  %v2377_v21 = vrot.slane %v10405_v57, %v10244_v63  ;;  %v2381_v46 = vrot.slane %v10405_v57, %v10247_v39  ;;  %v276_v41 = vmul.f32 0.6931472, %v10434_v53 }
 0x184   :  { %v10554_v51 = vsub.f32 %v282_v24, %v306_v55  ;;  %v2385_v35 = vrot.slane %v10405_v57, %v10250_v36  ;;  %v2389_v31 = vrot.slane %v10405_v57, %v10253_v60  ;;  %v2393_v9 = vrot.slane %v10405_v57, %v10256_v30 }
 0x185   :  { %v3004_v16 = vcombine.low %v2996_v50, %v3003_v25  ;;  %v2397_v26 = vrot.slane %v10405_v57, %v10259_v45  ;;  %v2401_v1 = vrot.slane %v10405_v57, %v10262_v52  ;;  %v2405_v38 = vrot.slane %v10405_v57, %v10265_v18 }
 0x186   :  { %9619 = vtanh.f32 %v10554_v51  ;;  %v3005_v48 = vcombine.low %v2377_v21, %v2381_v46  ;;  %v3006_v28 = vcombine.low %v2385_v35, %v2389_v31  ;;  %v303_v19 = vmul.f32 %v10396_v0, %v217_v11 }
 0x187   :  { %9621 = vrcp.f32 %v10353_v7  ;;  %3465 = vperm.xlu0 %9532, %v3004_v16   ;;  %v3007_v58 = vcombine.low %v2393_v9, %v2397_v26  ;;  %v3008_v12 = vcombine.low %v2401_v1, %v2405_v38  ;;  %v286_v49 = vmul.f32 0.6931472, %v10453_v33 }
 0x188   :  { %v3015_v22 = vrot.slane %v3005_v48, %v10270_v14  ;;  %v3022_v56 = vrot.slane %v3006_v28, %v10270_v14  ;;  %v308_v15 = vmul.f32 %v10442_v4, %v232_v17  ;;  %9623 = vrcp.f32 %v10328_v8  ;;  %v223_v48 = vpop.xlane.xlu0 %222 }
 0x189   :  { %v3029_v13 = vrot.slane %v3007_v58, %v10270_v14  ;;  %v3036_v44 = vrot.slane %v3008_v12, %v10270_v14  ;;  %v9614_v50 = vpop.eup %9613  ;;  %v10579_v55 = vsub.f32 %v276_v41, %v303_v19  ;;  %v2409_v25 = vrot.slane %v10512_v61, %v10244_v63 }
 0x18a   :  { %v3037_v24 = vcombine.low %v3015_v22, %v3022_v56  ;;  %v10583_v46 = vsub.f32 %v286_v49, %v308_v15  ;;  %v2413_v35 = vrot.slane %v10512_v61, %v10247_v39  ;;  %v2417_v33 = vrot.slane %v10512_v61, %v10250_v36 }
 0x18b   :  { %v9616_v53 = vpop.eup %9615  ;;  %v3038_v21 = vcombine.low %v3029_v13, %v3036_v44  ;;  %9625 = vtanh.f32 %v10579_v55  ;;  %v2421_v16 = vrot.slane %v10512_v61, %v10253_v60  ;;  %vm2088_vm5 = vcmp.le.f32.partialorder %v10529_v32, %v10423_v40 }
 0x18c   :  { %v5045_v31 = vsub.f32 1.0, %v9616_v53  ;;  %v3045_v9 = vrot.slane %v3037_v24, %v10270_v14  ;;  %v10593_v26 = vpop.eup %9617  ;;  %9627 = vtanh.f32 %v10583_v46  ;;  %v2425_v11 = vrot.slane %v10512_v61, %v10256_v30 }
 0x18d   :  { %v3052_v1 = vrot.slane %v3038_v21, %v10270_v14  ;;  %9629 = vlog2.f32 %v10328_v8  ;;  %vm2093_vm6 = vcmp.le.f32.partialorder %v10554_v51, %v10423_v40  ;;  %v2429_v17 = vrot.slane %v10512_v61, %v10259_v45  ;;  %v238_v8 = vpop.xlane.xlu1 %237 }
 0x18e   :  { %v10603_v38 = vsel %vm2088_vm5, %v5045_v31, %v9616_v53  ;;  %v2433_v58 = vrot.slane %v10512_v61, %v10262_v52  ;;  %v2437_v22 = vrot.slane %v10512_v61, %v10265_v18  ;;  %v3054_v56 = vcombine.low %v2409_v25, %v2413_v35 }
 0x18f   :  { %13195 = vst [vmem:[#allocation32_spill] sm:$0xff] %v10603_v38  ;;  %v3053_v28 = vcombine.low %v3045_v9, %v3052_v1  ;;  %v3055_v41 = vcombine.low %v2417_v33, %v2421_v16  ;;  %v280_v19 = vmul.f32 0.6931472, %v10478_v27  ;;  %v3056_v49 = vcombine.low %v2425_v11, %v2429_v17 }
 0x190   :  { %v9620_v12 = vpop.eup %9619  ;;  %v305_v15 = vmul.f32 %v10459_v42, %v223_v48  ;;  %v290_v24 = vmul.f32 0.6931472, %v9614_v50  ;;  %v3057_v53 = vcombine.low %v2433_v58, %v2437_v22  ;;  %v3064_v21 = vrot.slane %v3054_v56, %v10270_v14 }
 0x191   :  { %v10616_v13 = vpop.eup %9621  ;;  %v5050_v44 = vsub.f32 1.0, %v9620_v12  ;;  %3468 = vperm.xlu0 %9532, %v3053_v28   ;;  %v3071_v31 = vrot.slane %v3055_v41, %v10270_v14  ;;  %v310_v9 = vmul.f32 %v10486_v23, %v238_v8  ;;  %9631 = vrcp.f32 %v10330_v6 }
 0x192   :  { %13196 = vst [vmem:[#allocation33_spill] sm:$0xff] %v10616_v13  ;;  %v3078_v25 = vrot.slane %v3056_v49, %v10270_v14  ;;  %v10629_v35 = vsub.f32 %v280_v19, %v305_v15  ;;  %v10631_v33 = vpop.eup %9623  ;;  %9633 = vlog2.f32 %v10330_v6  ;;  %v3085_v50 = vrot.slane %v3057_v53, %v10270_v14 }
 0x193   :  { %v10626_v27 = vsel %vm2093_vm6, %v5050_v44, %v9620_v12  ;;  %v3086_v16 = vcombine.low %v3064_v21, %v3071_v31  ;;  %v10635_v1 = vsub.f32 %v290_v24, %v310_v9  ;;  %v2633_v11 = vrot.slane %v10616_v13, %v10244_v63 }
 0x194   :  { %13197 = vst [vmem:[#allocation34_spill] sm:$0xff] %v10626_v27  ;;  %9635 = vtanh.f32 %v10629_v35  ;;  %v2637_v48 = vrot.slane %v10616_v13, %v10247_v39  ;;  %v3087_v17 = vcombine.low %v3078_v25, %v3085_v50  ;;  %v2641_v6 = vrot.slane %v10616_v13, %v10250_v36 }
 0x195   :  { %v9626_v28 = vpop.eup %9625  ;;  %v3094_v58 = vrot.slane %v3086_v16, %v10270_v14  ;;  %v2645_v8 = vrot.slane %v10616_v13, %v10253_v60  ;;  %vm2090_vm7 = vcmp.le.f32.partialorder %v10579_v55, %v10423_v40  ;;  %9637 = vtanh.f32 %v10635_v1 }
 0x196   :  { %v9628_v12 = vpop.eup %9627  ;;  %v5047_v22 = vsub.f32 1.0, %v9626_v28  ;;  %vm2095_vm8 = vcmp.le.f32.partialorder %v10583_v46, %v10423_v40  ;;  %v3101_v19 = vrot.slane %v3087_v17, %v10270_v14  ;;  %v2649_v44 = vrot.slane %v10616_v13, %v10256_v30 }
 0x197   :  { %v9630_v56 = vpop.eup %9629  ;;  %v5052_v41 = vsub.f32 1.0, %v9628_v12  ;;  %vm2092_vm9 = vcmp.le.f32.partialorder %v10629_v35, %v10423_v40  ;;  %v2653_v15 = vrot.slane %v10616_v13, %v10259_v45  ;;  %v2657_v24 = vrot.slane %v10616_v13, %v10262_v52 }
 0x198   :  { %v10658_v49 = vsel %vm2090_vm7, %v5047_v22, %v9626_v28  ;;  %v2661_v53 = vrot.slane %v10616_v13, %v10265_v18  ;;  %v3102_v31 = vcombine.low %v3094_v58, %v3101_v19  ;;  %v3397_v9 = vcombine.low %v2633_v11, %v2637_v48 }
 0x199   :  { %13198 = vst [vmem:[#allocation35_spill] sm:$0xff] %v10658_v49  ;;  %v10671_v21 = vsel %vm2095_vm8, %v5052_v41, %v9628_v12  ;;  %v3398_v25 = vcombine.low %v2641_v6, %v2645_v8  ;;  %vm2097_vm10 = vcmp.le.f32.partialorder %v10635_v1, %v10423_v40  ;;  %v3399_v50 = vcombine.low %v2649_v44, %v2653_v15 }
 0x19a   :  { %13199 = vst [vmem:[#allocation36_spill] sm:$0xff] %v10671_v21  ;;  %v3400_v16 = vcombine.low %v2657_v24, %v2661_v53  ;;  %v2441_v28 = vrot.slane %v10442_v4, %v10244_v63  ;;  %v2445_v17 = vrot.slane %v10442_v4, %v10247_v39  ;;  %3471 = vperm.xlu0 %9532, %v3102_v31   ;;  %v284_v7 = vmul.f32 0.6931472, %v10593_v26 }
 0x19b   :  { %v3407_v22 = vrot.slane %v3397_v9, %v10270_v14  ;;  %v3414_v12 = vrot.slane %v3398_v25, %v10270_v14  ;;  %v2449_v11 = vrot.slane %v10442_v4, %v10250_v36  ;;  %v2453_v48 = vrot.slane %v10442_v4, %v10253_v60  ;;  %v10685_v58 = vpop.eup %9631  ;;  %v229_v9 = vpop.xlane.xlu0 %228 }
 0x19c   :  { %v3421_v6 = vrot.slane %v3399_v50, %v10270_v14  ;;  %v3428_v8 = vrot.slane %v3400_v16, %v10270_v14  ;;  %v2457_v41 = vrot.slane %v10442_v4, %v10256_v30  ;;  %v2461_v19 = vrot.slane %v10442_v4, %v10259_v45  ;;  %v10693_v44 = vpop.eup %9633 }
 0x19d   :  { %v3429_v15 = vcombine.low %v3407_v22, %v3414_v12  ;;  %v2465_v24 = vrot.slane %v10442_v4, %v10262_v52  ;;  %v2469_v53 = vrot.slane %v10442_v4, %v10265_v18  ;;  %v3103_v31 = vcombine.low %v2441_v28, %v2445_v17  ;;  %v244_v12 = vpop.xlane.xlu1 %243 }
 0x19e   :  { %v9636_v25 = vpop.eup %9635  ;;  %v3430_v50 = vcombine.low %v3421_v6, %v3428_v8  ;;  %v3104_v16 = vcombine.low %v2449_v11, %v2453_v48  ;;  %v3105_v13 = vcombine.low %v2457_v41, %v2461_v19  ;;  %v307_v17 = vmul.f32 %v10512_v61, %v229_v9 }
 0x19f   :  { %v5049_v21 = vsub.f32 1.0, %v9636_v25  ;;  %v3437_v49 = vrot.slane %v3429_v15, %v10270_v14  ;;  %v3106_v27 = vcombine.low %v2465_v24, %v2469_v53  ;;  %v3113_v22 = vrot.slane %v3103_v31, %v10270_v14  ;;  %v9638_v38 = vpop.eup %9637 }
 0x1a0   :  { %v3444_v5 = vrot.slane %v3430_v50, %v10270_v14  ;;  %v3120_v43 = vrot.slane %v3104_v16, %v10270_v14  ;;  %v3127_v28 = vrot.slane %v3105_v13, %v10270_v14  ;;  %v5054_v11 = vsub.f32 1.0, %v9638_v38 }
 0x1a1   :  { %v10709_v26 = vsel %vm2092_vm9, %v5049_v21, %v9636_v25  ;;  %v3134_v48 = vrot.slane %v3106_v27, %v10270_v14  ;;  %v294_v6 = vmul.f32 0.6931472, %v9630_v56  ;;  %v10712_v19 = vsub.f32 %v284_v7, %v307_v17 }
 0x1a2   :  { %13200 = vst [vmem:[#allocation37_spill] sm:$0xff] %v10709_v26  ;;  %v3445_v8 = vcombine.low %v3437_v49, %v3444_v5  ;;  %v3135_v41 = vcombine.low %v3113_v22, %v3120_v43  ;;  %v312_v15 = vmul.f32 %v10631_v33, %v244_v12  ;;  %9639 = vrcp.f32 %v10363_v37 }
 0x1a3   :  { %v10719_v13 = vsel %vm2097_vm10, %v5054_v11, %v9638_v38  ;;  %v3136_v24 = vcombine.low %v3127_v28, %v3134_v48  ;;  %v2118_v21 = vsub.f32 1.0, %v10298_v10  ;;  %9641 = vtanh.f32 %v10712_v19 }
 0x1a4   :  { %13201 = vst [vmem:[#allocation38_spill] sm:$0xff] %v10719_v13  ;;  %3492 = vperm.xlu1 %9531, %v3445_v8   ;;  %v3143_v27 = vrot.slane %v3135_v41, %v10270_v14  ;;  %v10724_v5 = vsub.f32 %v294_v6, %v312_v15  ;;  %9643 = vlog2.f32 %v10363_v37  ;;  %v2473_v31 = vrot.slane %v10685_v58, %v10244_v63 }
 0x1a5   :  { %v3150_v7 = vrot.slane %v3136_v24, %v10270_v14  ;;  %v3607_v43 = vrot.slane %v2118_v21, %v10244_v63  ;;  %v3611_v56 = vrot.slane %v2118_v21, %v10247_v39  ;;  %v3615_v38 = vrot.slane %v2118_v21, %v10250_v36  ;;  %v235_v24 = vpop.xlane.xlu0 %234 }
 0x1a6   :  { %13202 = vst [vmem:[#allocation39_spill] sm:$0xff] %v10724_v5  ;;  %9645 = vtanh.f32 %v10724_v5  ;;  %v3619_v49 = vrot.slane %v2118_v21, %v10253_v60  ;;  %v3623_v53 = vrot.slane %v2118_v21, %v10256_v30  ;;  %vm2094_vm11 = vcmp.le.f32.partialorder %v10712_v19, %v10423_v40 }
 0x1a7   :  { %v3151_v10 = vcombine.low %v3143_v27, %v3150_v7  ;;  %v3627_v37 = vrot.slane %v2118_v21, %v10259_v45  ;;  %v3631_v9 = vrot.slane %v2118_v21, %v10262_v52  ;;  %v3635_v25 = vrot.slane %v2118_v21, %v10265_v18 }
 0x1a8   :  { %v4116_v50 = vcombine.low %v3607_v43, %v3611_v56  ;;  %v4117_v16 = vcombine.low %v3615_v38, %v3619_v49  ;;  %v2477_v22 = vrot.slane %v10685_v58, %v10247_v39  ;;  %v2481_v12 = vrot.slane %v10685_v58, %v10250_v36 }
 0x1a9   :  { %3474 = vperm.xlu0 %9532, %v3151_v10   ;;  %v4118_v28 = vcombine.low %v3623_v53, %v3627_v37  ;;  %v4119_v17 = vcombine.low %v3631_v9, %v3635_v25  ;;  %v2485_v11 = vrot.slane %v10685_v58, %v10253_v60  ;;  %v2489_v48 = vrot.slane %v10685_v58, %v10256_v30 }
 0x1aa   :  { %v4126_v6 = vrot.slane %v4116_v50, %v10270_v14  ;;  %v4133_v8 = vrot.slane %v4117_v16, %v10270_v14  ;;  %v2493_v41 = vrot.slane %v10685_v58, %v10259_v45  ;;  %v2497_v15 = vrot.slane %v10685_v58, %v10262_v52 }
 0x1ab   :  { %v4140_v21 = vrot.slane %v4118_v28, %v10270_v14  ;;  %v4147_v27 = vrot.slane %v4119_v17, %v10270_v14  ;;  %v2501_v7 = vrot.slane %v10685_v58, %v10265_v18  ;;  %v3152_v43 = vcombine.low %v2473_v31, %v2477_v22 }
 0x1ac   :  { %v10759_v56 = vpop.eup %9639  ;;  %v4148_v38 = vcombine.low %v4126_v6, %v4133_v8  ;;  %v3153_v10 = vcombine.low %v2481_v12, %v2485_v11  ;;  %v3154_v49 = vcombine.low %v2489_v48, %v2493_v41  ;;  %v288_v53 = vmul.f32 0.6931472, %v10693_v44 }
 0x1ad   :  { %v9642_v37 = vpop.eup %9641  ;;  %v4149_v9 = vcombine.low %v4140_v21, %v4147_v27  ;;  %v3155_v25 = vcombine.low %v2497_v15, %v2501_v7  ;;  %v3162_v50 = vrot.slane %v3152_v43, %v10270_v14  ;;  %v309_v16 = vmul.f32 %v10685_v58, %v235_v24 }
 0x1ae   :  { %v9644_v28 = vpop.eup %9643  ;;  %v5051_v17 = vsub.f32 1.0, %v9642_v37  ;;  %v4156_v13 = vrot.slane %v4148_v38, %v10270_v14  ;;  %v3169_v31 = vrot.slane %v3153_v10, %v10270_v14  ;;  %v3176_v22 = vrot.slane %v3154_v49, %v10270_v14 }
 0x1af   :  { %v4163_v12 = vrot.slane %v4149_v9, %v10270_v14  ;;  %v3183_v44 = vrot.slane %v3155_v25, %v10270_v14  ;;  %v10769_v11 = vsub.f32 %v288_v53, %v309_v16  ;;  %v2122_v48 = vsub.f32 1.0, %v10396_v0 }
 0x1b0   :  { %v9646_v6 = vpop.eup %9645  ;;  %v10775_v8 = vsel %vm2094_vm11, %v5051_v17, %v9642_v37  ;;  %v3184_v15 = vcombine.low %v3162_v50, %v3169_v31  ;;  %vm13149_vm12 = vcmp.le.f32.partialorder %v10724_v5, %v10423_v40  ;;  %v2509_v17 = vrot.slane %v10486_v23, %v10247_v39 }
 0x1b1   :  { %13203 = vst [vmem:[#allocation40_spill] sm:$0xff] %v10775_v8  ;;  %v5056_v41 = vsub.f32 1.0, %v9646_v6  ;;  %v4164_v24 = vcombine.low %v4156_v13, %v4163_v12  ;;  %v3185_v21 = vcombine.low %v3176_v22, %v3183_v44  ;;  %9647 = vtanh.f32 %v10769_v11 }
 0x1b2   :  { %v3192_v0 = vrot.slane %v3184_v15, %v10270_v14  ;;  %v3735_v7 = vrot.slane %v2122_v48, %v10244_v63  ;;  %v3739_v38 = vrot.slane %v2122_v48, %v10247_v39  ;;  %v3743_v10 = vrot.slane %v2122_v48, %v10250_v36 }
 0x1b3   :  { %v10783_v27 = vsel %vm13149_vm12, %v5056_v41, %v9646_v6  ;;  %4901 = vperm.xlu1 %9531, %v4164_v24   ;;  %v3199_v43 = vrot.slane %v3185_v21, %v10270_v14  ;;  %v2505_v13 = vrot.slane %v10486_v23, %v10244_v63  ;;  %v3747_v49 = vrot.slane %v2122_v48, %v10253_v60  ;;  %v241_v24 = vpop.xlane.xlu0 %240  ;;  %vm10919_vm12 = vmxor %vm2089_vm0, %vm9679_vm15 }
 0x1b4   :  { %13204 = vst [vmem:[#allocation41_spill] sm:$0xff] %v10783_v27  ;;  %v3751_v53 = vrot.slane %v2122_v48, %v10256_v30  ;;  %v3755_v37 = vrot.slane %v2122_v48, %v10259_v45  ;;  %v3759_v9 = vrot.slane %v2122_v48, %v10262_v52  ;;  %v3763_v50 = vrot.slane %v2122_v48, %v10265_v18 }
 0x1b5   :  { %v3200_v25 = vcombine.low %v3192_v0, %v3199_v43  ;;  %v4312_v16 = vcombine.low %v3735_v7, %v3739_v38  ;;  %v4313_v31 = vcombine.low %v3743_v10, %v3747_v49  ;;  %v2513_v6 = vrot.slane %v10486_v23, %v10250_v36 }
 0x1b6   :  { %v4314_v22 = vcombine.low %v3751_v53, %v3755_v37  ;;  %v2517_v12 = vrot.slane %v10486_v23, %v10253_v60  ;;  %v4315_v44 = vcombine.low %v3759_v9, %v3763_v50  ;;  %v2521_v15 = vrot.slane %v10486_v23, %v10256_v30 }
 0x1b7   :  { %3477 = vperm.xlu0 %9532, %v3200_v25   ;;  %v4322_v41 = vrot.slane %v4312_v16, %v10270_v14  ;;  %v2525_v48 = vrot.slane %v10486_v23, %v10259_v45  ;;  %v4329_v21 = vrot.slane %v4313_v31, %v10270_v14  ;;  %v2529_v7 = vrot.slane %v10486_v23, %v10262_v52 }
 0x1b8   :  { %v4336_v0 = vrot.slane %v4314_v22, %v10270_v14  ;;  %v2533_v43 = vrot.slane %v10486_v23, %v10265_v18  ;;  %v4343_v38 = vrot.slane %v4315_v44, %v10270_v14  ;;  %v3201_v10 = vcombine.low %v2505_v13, %v2509_v17 }
 0x1b9   :  { %v3202_v49 = vcombine.low %v2513_v6, %v2517_v12  ;;  %v3203_v53 = vcombine.low %v2521_v15, %v2525_v48  ;;  %v4344_v37 = vcombine.low %v4322_v41, %v4329_v21  ;;  %v292_v25 = vmul.f32 0.6931472, %v9644_v28 }
 0x1ba   :  { %v3204_v9 = vcombine.low %v2529_v7, %v2533_v43  ;;  %v311_v50 = vmul.f32 %v10759_v56, %v241_v24  ;;  %v4345_v31 = vcombine.low %v4336_v0, %v4343_v38  ;;  %v3211_v22 = vrot.slane %v3201_v10, %v10270_v14 }
 0x1bb   :  { %v9648_v16 = vpop.eup %9647  ;;  %v3218_v27 = vrot.slane %v3202_v49, %v10270_v14  ;;  %v3225_v8 = vrot.slane %v3203_v53, %v10270_v14  ;;  %v4352_v5 = vrot.slane %v4344_v37, %v10270_v14  ;;  %vm2096_vm13 = vcmp.le.f32.partialorder %v10769_v11, %v10423_v40 }
 0x1bc   :  { %v5053_v26 = vsub.f32 1.0, %v9648_v16  ;;  %v3232_v13 = vrot.slane %v3204_v9, %v10270_v14  ;;  %v10821_v17 = vsub.f32 %v292_v25, %v311_v50  ;;  %v4359_v28 = vrot.slane %v4345_v31, %v10270_v14 }
 0x1bd   :  { %v3233_v6 = vcombine.low %v3211_v22, %v3218_v27  ;;  %v2124_v12 = vsub.f32 1.0, %v10459_v42  ;;  %v2537_v42 = vrot.slane %v10759_v56, %v10244_v63  ;;  %v2541_v49 = vrot.slane %v10759_v56, %v10247_v39 }
 0x1be   :  { %v10830_v44 = vsel %vm2096_vm13, %v5053_v26, %v9648_v16  ;;  %v3234_v41 = vcombine.low %v3225_v8, %v3232_v13  ;;  %9649 = vtanh.f32 %v10821_v17  ;;  %v4360_v15 = vcombine.low %v4352_v5, %v4359_v28 }
 0x1bf   :  { %13205 = vst [vmem:[#allocation42_spill] sm:$0xff] %v10830_v44  ;;  %v3241_v48 = vrot.slane %v3233_v6, %v10270_v14  ;;  %v3799_v24 = vrot.slane %v2124_v12, %v10244_v63  ;;  %v3803_v0 = vrot.slane %v2124_v12, %v10247_v39  ;;  %v3807_v27 = vrot.slane %v2124_v12, %v10250_v36 }
 0x1c0   :  { %v3248_v21 = vrot.slane %v3234_v41, %v10270_v14  ;;  %4913 = vperm.xlu1 %9531, %v4360_v15   ;;  %v3811_v26 = vrot.slane %v2124_v12, %v10253_v60  ;;  %v3815_v8 = vrot.slane %v2124_v12, %v10256_v30  ;;  %v3819_v5 = vrot.slane %v2124_v12, %v10259_v45 }
 0x1c1   :  { %v3823_v7 = vrot.slane %v2124_v12, %v10262_v52  ;;  %v3827_v38 = vrot.slane %v2124_v12, %v10265_v18  ;;  %v4410_v10 = vcombine.low %v3799_v24, %v3803_v0  ;;  %v2545_v9 = vrot.slane %v10759_v56, %v10250_v36 }
 0x1c2   :  { %v3249_v43 = vcombine.low %v3241_v48, %v3248_v21  ;;  %v4411_v53 = vcombine.low %v3807_v27, %v3811_v26  ;;  %v4412_v37 = vcombine.low %v3815_v8, %v3819_v5  ;;  %v2549_v25 = vrot.slane %v10759_v56, %v10253_v60 }
 0x1c3   :  { %v4413_v50 = vcombine.low %v3823_v7, %v3827_v38  ;;  %v4420_v16 = vrot.slane %v4410_v10, %v10270_v14  ;;  %v2553_v31 = vrot.slane %v10759_v56, %v10256_v30  ;;  %v2557_v22 = vrot.slane %v10759_v56, %v10259_v45 }
 0x1c4   :  { %3480 = vperm.xlu0 %9532, %v3249_v43   ;;  %v4427_v13 = vrot.slane %v4411_v53, %v10270_v14  ;;  %v4434_v28 = vrot.slane %v4412_v37, %v10270_v14  ;;  %v2561_v6 = vrot.slane %v10759_v56, %v10262_v52  ;;  %v2565_v12 = vrot.slane %v10759_v56, %v10265_v18 }
 0x1c5   :  { %v4441_v41 = vrot.slane %v4413_v50, %v10270_v14  ;;  %v3250_v15 = vcombine.low %v2537_v42, %v2541_v49  ;;  %v3251_v48 = vcombine.low %v2545_v9, %v2549_v25  ;;  %v3252_v24 = vcombine.low %v2553_v31, %v2557_v22 }
 0x1c6   :  { %v4442_v21 = vcombine.low %v4420_v16, %v4427_v13  ;;  %v3253_v0 = vcombine.low %v2561_v6, %v2565_v12  ;;  %vm13150_vm14 = vcmp.le.f32.partialorder %v10821_v17, %v10423_v40  ;;  %v2125_v53 = vsub.f32 1.0, %v10405_v57 }
 0x1c7   :  { %v4443_v26 = vcombine.low %v4434_v28, %v4441_v41  ;;  %v3260_v8 = vrot.slane %v3250_v15, %v10270_v14  ;;  %v3267_v5 = vrot.slane %v3251_v48, %v10270_v14  ;;  %v3274_v7 = vrot.slane %v3252_v24, %v10270_v14 }
 0x1c8   :  { %v9650_v27 = vpop.eup %9649  ;;  %v4450_v38 = vrot.slane %v4442_v21, %v10270_v14  ;;  %v3281_v10 = vrot.slane %v3253_v0, %v10270_v14  ;;  %9651 = vrcp.f32 %v10394_v20  ;;  %v3831_v16 = vrot.slane %v2125_v53, %v10244_v63 }
 0x1c9   :  { %v5055_v43 = vsub.f32 1.0, %v9650_v27  ;;  %v4457_v42 = vrot.slane %v4443_v26, %v10270_v14  ;;  %v3282_v49 = vcombine.low %v3260_v8, %v3267_v5  ;;  %v3835_v22 = vrot.slane %v2125_v53, %v10247_v39 }
 0x1ca   :  { %v3283_v9 = vcombine.low %v3274_v7, %v3281_v10  ;;  %v3839_v13 = vrot.slane %v2125_v53, %v10250_v36  ;;  %v2569_v57 = vrot.slane %v10631_v33, %v10244_v63  ;;  %v3843_v28 = vrot.slane %v2125_v53, %v10253_v60 }
 0x1cb   :  { %v10875_v37 = vsel %vm13150_vm14, %v5055_v43, %v9650_v27  ;;  %v4458_v25 = vcombine.low %v4450_v38, %v4457_v42  ;;  %v3290_v50 = vrot.slane %v3282_v49, %v10270_v14  ;;  %v3847_v6 = vrot.slane %v2125_v53, %v10256_v30  ;;  %vm7992_vm14 = vmxor %vm2091_vm4, %vm9679_vm15 }
 0x1cc   :  { %13206 = vst [vmem:[#allocation43_spill] sm:$0xff] %v10875_v37  ;;  %v3297_v31 = vrot.slane %v3283_v9, %v10270_v14  ;;  %v3851_v12 = vrot.slane %v2125_v53, %v10259_v45  ;;  %v3855_v41 = vrot.slane %v2125_v53, %v10262_v52  ;;  %v3859_v48 = vrot.slane %v2125_v53, %v10265_v18 }
 0x1cd   :  { %4919 = vperm.xlu1 %9531, %v4458_v25   ;;  %v4459_v24 = vcombine.low %v3831_v16, %v3835_v22  ;;  %v2573_v21 = vrot.slane %v10631_v33, %v10247_v39  ;;  %v4460_v0 = vcombine.low %v3839_v13, %v3843_v28  ;;  %v2577_v26 = vrot.slane %v10631_v33, %v10250_v36 }
 0x1ce   :  { %v3298_v15 = vcombine.low %v3290_v50, %v3297_v31  ;;  %v4461_v27 = vcombine.low %v3847_v6, %v3851_v12  ;;  %v2581_v8 = vrot.slane %v10631_v33, %v10253_v60  ;;  %v4462_v7 = vcombine.low %v3855_v41, %v3859_v48 }
 0x1cf   :  { %v4469_v43 = vrot.slane %v4459_v24, %v10270_v14  ;;  %v2585_v38 = vrot.slane %v10631_v33, %v10256_v30  ;;  %v2589_v10 = vrot.slane %v10631_v33, %v10259_v45  ;;  %v4476_v42 = vrot.slane %v4460_v0, %v10270_v14 }
 0x1d0   :  { %3483 = vperm.xlu0 %9532, %v3298_v15   ;;  %v4483_v49 = vrot.slane %v4461_v27, %v10270_v14  ;;  %v2593_v53 = vrot.slane %v10631_v33, %v10262_v52  ;;  %v2597_v9 = vrot.slane %v10631_v33, %v10265_v18  ;;  %v4490_v50 = vrot.slane %v4462_v7, %v10270_v14 }
 0x1d1   :  { %v3299_v16 = vcombine.low %v2569_v57, %v2573_v21  ;;  %v3300_v31 = vcombine.low %v2577_v26, %v2581_v8  ;;  %v3301_v22 = vcombine.low %v2585_v38, %v2589_v10  ;;  %v13211_v13 = vmov 0  }
 0x1d2   :  { %v10928_v28 = vsel %vm2087_vm2, 1, %v13211_v13  ;;  %v10933_v6 = vsel %vm10900_vm1, 1, %v13211_v13  ;;  %v4491_v12 = vcombine.low %v4469_v43, %v4476_v42  ;;  %v3302_v41 = vcombine.low %v2593_v53, %v2597_v9  ;;  %v10942_v24 = vpop.eup %9651  ;;  %vm7993_vm2 = vmxor %vm2092_vm9, %vm9679_vm15 }
 0x1d3   :  { %v4492_v57 = vcombine.low %v4483_v49, %v4490_v50  ;;  %v3309_v15 = vrot.slane %v3299_v16, %v10270_v14  ;;  %v3316_v48 = vrot.slane %v3300_v31, %v10270_v14  ;;  %v3323_v2 = vrot.slane %v3301_v22, %v10270_v14 }
 0x1d4   :  { %v10948_v21 = vsel %vm2089_vm0, 1, %v13211_v13  ;;  %v10953_v0 = vsel %vm10919_vm12, 1, %v13211_v13  ;;  %v4499_v27 = vrot.slane %v4491_v12, %v10270_v14  ;;  %v3330_v26 = vrot.slane %v3302_v41, %v10270_v14  ;;  %vm7994_vm0 = vmxor %vm2093_vm6, %vm9679_vm15 }
 0x1d5   :  { %v10961_v8 = vsel %vm2086_vm3, 1, %v13211_v13  ;;  %v4506_v5 = vrot.slane %v4492_v57, %v10270_v14  ;;  %v3331_v54 = vcombine.low %v3309_v15, %v3316_v48  ;;  %v2126_v7 = vsub.f32 1.0, %v10512_v61 }
 0x1d6   :  { %v10969_v43 = vsel %vm2091_vm4, 1, %v13211_v13  ;;  %v10972_v38 = vsel %vm7992_vm14, 1, %v13211_v13  ;;  %v10978_v10 = vsel %vm2088_vm5, 1, %v13211_v13  ;;  %v3332_v42 = vcombine.low %v3323_v2, %v3330_v26  ;;  %vm7995_vm4 = vmxor %vm2094_vm11, %vm9679_vm15 }
 0x1d7   :  { %v10984_v61 = vsel %vm2090_vm7, 1, %v13211_v13  ;;  %v4507_v49 = vcombine.low %v4499_v27, %v4506_v5  ;;  %v3339_v3 = vrot.slane %v3331_v54, %v10270_v14  ;;  %v3863_v53 = vrot.slane %v2126_v7, %v10244_v63 }
 0x1d8   :  { %v3346_v9 = vrot.slane %v3332_v42, %v10270_v14  ;;  %v3867_v25 = vrot.slane %v2126_v7, %v10247_v39  ;;  %v3871_v50 = vrot.slane %v2126_v7, %v10250_v36  ;;  %v2601_v16 = vrot.slane %v10942_v24, %v10244_v63 }
 0x1d9   :  { %4922 = vperm.xlu1 %9531, %v4507_v49   ;;  %v3875_v31 = vrot.slane %v2126_v7, %v10253_v60  ;;  %v3879_v22 = vrot.slane %v2126_v7, %v10256_v30  ;;  %v3883_v12 = vrot.slane %v2126_v7, %v10259_v45  ;;  %v3887_v41 = vrot.slane %v2126_v7, %v10262_v52 }
 0x1da   :  { %v3347_v57 = vcombine.low %v3339_v3, %v3346_v9  ;;  %v3891_v15 = vrot.slane %v2126_v7, %v10265_v18  ;;  %v4508_v48 = vcombine.low %v3863_v53, %v3867_v25  ;;  %v2605_v2 = vrot.slane %v10942_v24, %v10247_v39 }
 0x1db   :  { %v4509_v27 = vcombine.low %v3871_v50, %v3875_v31  ;;  %v4510_v26 = vcombine.low %v3879_v22, %v3883_v12  ;;  %v2609_v5 = vrot.slane %v10942_v24, %v10250_v36  ;;  %v2613_v54 = vrot.slane %v10942_v24, %v10253_v60 }
 0x1dc   :  { %3486 = vperm.xlu0 %9532, %v3347_v57   ;;  %v4511_v42 = vcombine.low %v3887_v41, %v3891_v15  ;;  %v4518_v49 = vrot.slane %v4508_v48, %v10270_v14  ;;  %v2617_v3 = vrot.slane %v10942_v24, %v10256_v30  ;;  %v2621_v7 = vrot.slane %v10942_v24, %v10259_v45 }
 0x1dd   :  { %v4525_v53 = vrot.slane %v4509_v27, %v10270_v14  ;;  %v4532_v9 = vrot.slane %v4510_v26, %v10270_v14  ;;  %v2625_v25 = vrot.slane %v10942_v24, %v10262_v52  ;;  %v2629_v50 = vrot.slane %v10942_v24, %v10265_v18 }
 0x1de   :  { %v4539_v31 = vrot.slane %v4511_v42, %v10270_v14  ;;  %v3348_v22 = vcombine.low %v2601_v16, %v2605_v2  ;;  %v3349_v12 = vcombine.low %v2609_v5, %v2613_v54  ;;  %v3350_v41 = vcombine.low %v2617_v3, %v2621_v7 }
 0x1df   :  { %v11020_v57 = vsel %vm2092_vm9, 1, %v13211_v13  ;;  %v4540_v15 = vcombine.low %v4518_v49, %v4525_v53  ;;  %v3351_v48 = vcombine.low %v2625_v25, %v2629_v50  ;;  %v2127_v27 = vsub.f32 1.0, %v10442_v4  ;;  %vm7998_vm9 = vmxor %vm2097_vm10, %vm9679_vm15 }
 0x1e0   :  { %v4541_v26 = vcombine.low %v4532_v9, %v4539_v31  ;;  %v3358_v16 = vrot.slane %v3348_v22, %v10270_v14  ;;  %v3365_v2 = vrot.slane %v3349_v12, %v10270_v14  ;;  %v3372_v5 = vrot.slane %v3350_v41, %v10270_v14 }
 0x1e1   :  { %v4548_v54 = vrot.slane %v4540_v15, %v10270_v14  ;;  %v3379_v42 = vrot.slane %v3351_v48, %v10270_v14  ;;  %v3895_v49 = vrot.slane %v2127_v27, %v10244_v63  ;;  %v2119_v4 = vsub.f32 1.0, %v10267_v62 }
 0x1e2   :  { %v4555_v3 = vrot.slane %v4541_v26, %v10270_v14  ;;  %v3380_v7 = vcombine.low %v3358_v16, %v3365_v2  ;;  %v3899_v35 = vrot.slane %v2127_v27, %v10247_v39  ;;  %v3903_v53 = vrot.slane %v2127_v27, %v10250_v36 }
 0x1e3   :  { %v11038_v9 = vsel %vm7993_vm2, 1, %v13211_v13  ;;  %v3381_v25 = vcombine.low %v3372_v5, %v3379_v42  ;;  %v3907_v50 = vrot.slane %v2127_v27, %v10253_v60  ;;  %v3911_v31 = vrot.slane %v2127_v27, %v10256_v30  ;;  %vm7987_vm2 = vmxor %vm2086_vm3, %vm9679_vm15 }
 0x1e4   :  { %v4556_v22 = vcombine.low %v4548_v54, %v4555_v3  ;;  %v3388_v12 = vrot.slane %v3380_v7, %v10270_v14  ;;  %v3915_v62 = vrot.slane %v2127_v27, %v10259_v45  ;;  %v3919_v41 = vrot.slane %v2127_v27, %v10262_v52  ;;  %vm7989_vm3 = vmxor %vm2088_vm5, %vm9679_vm15 }
 0x1e5   :  { %v3395_v15 = vrot.slane %v3381_v25, %v10270_v14  ;;  %v3923_v48 = vrot.slane %v2127_v27, %v10265_v18  ;;  %v4557_v26 = vcombine.low %v3895_v49, %v3899_v35  ;;  %v4558_v16 = vcombine.low %v3903_v53, %v3907_v50  ;;  %vm7991_vm5 = vmxor %vm2090_vm7, %vm9679_vm15 }
 0x1e6   :  { %4925 = vperm.xlu1 %9531, %v4556_v22   ;;  %v4559_v2 = vcombine.low %v3911_v31, %v3915_v62  ;;  %v3639_v5 = vrot.slane %v2119_v4, %v10244_v63  ;;  %v3643_v42 = vrot.slane %v2119_v4, %v10247_v39  ;;  %v3647_v54 = vrot.slane %v2119_v4, %v10250_v36 }
 0x1e7   :  { %v3396_v3 = vcombine.low %v3388_v12, %v3395_v15  ;;  %v4560_v7 = vcombine.low %v3919_v41, %v3923_v48  ;;  %v4567_v37 = vrot.slane %v4557_v26, %v10270_v14  ;;  %v4574_v44 = vrot.slane %v4558_v16, %v10270_v14 }
 0x1e8   :  { %v4581_v25 = vrot.slane %v4559_v2, %v10270_v14  ;;  %v3651_v27 = vrot.slane %v2119_v4, %v10253_v60  ;;  %v3655_v49 = vrot.slane %v2119_v4, %v10256_v30  ;;  %v3659_v35 = vrot.slane %v2119_v4, %v10259_v45 }
 0x1e9   :  { %3489 = vperm.xlu0 %9532, %v3396_v3   ;;  %v4588_v53 = vrot.slane %v4560_v7, %v10270_v14  ;;  %v4589_v50 = vcombine.low %v4567_v37, %v4574_v44  ;;  %v3663_v31 = vrot.slane %v2119_v4, %v10262_v52  ;;  %v3667_v22 = vrot.slane %v2119_v4, %v10265_v18 }
 0x1ea   :  { %v4165_v12 = vcombine.low %v3639_v5, %v3643_v42  ;;  %v4166_v62 = vcombine.low %v3647_v54, %v3651_v27  ;;  %v4167_v41 = vcombine.low %v3655_v49, %v3659_v35  ;;  %v2128_v15 = vsub.f32 1.0, %v10685_v58 }
 0x1eb   :  { %v4590_v48 = vcombine.low %v4581_v25, %v4588_v53  ;;  %v4597_v26 = vrot.slane %v4589_v50, %v10270_v14  ;;  %v4168_v16 = vcombine.low %v3663_v31, %v3667_v22  ;;  %v2120_v2 = vsub.f32 1.0, %v10324_v34 }
 0x1ec   :  { %v4175_v3 = vrot.slane %v4165_v12, %v10270_v14  ;;  %v4182_v7 = vrot.slane %v4166_v62, %v10270_v14  ;;  %v4189_v44 = vrot.slane %v4167_v41, %v10270_v14  ;;  %v3927_v37 = vrot.slane %v2128_v15, %v10244_v63 }
 0x1ed   :  { %v4604_v4 = vrot.slane %v4590_v48, %v10270_v14  ;;  %v4196_v5 = vrot.slane %v4168_v16, %v10270_v14  ;;  %v3931_v58 = vrot.slane %v2128_v15, %v10247_v39  ;;  %v3935_v42 = vrot.slane %v2128_v15, %v10250_v36 }
 0x1ee   :  { %v4197_v54 = vcombine.low %v4175_v3, %v4182_v7  ;;  %v3939_v25 = vrot.slane %v2128_v15, %v10253_v60  ;;  %v3943_v34 = vrot.slane %v2128_v15, %v10256_v30  ;;  %v3947_v27 = vrot.slane %v2128_v15, %v10259_v45 }
 0x1ef   :  { %v4605_v49 = vcombine.low %v4597_v26, %v4604_v4  ;;  %v4198_v35 = vcombine.low %v4189_v44, %v4196_v5  ;;  %v3951_v53 = vrot.slane %v2128_v15, %v10262_v52  ;;  %v3955_v50 = vrot.slane %v2128_v15, %v10265_v18 }
 0x1f0   :  { %v4205_v31 = vrot.slane %v4197_v54, %v10270_v14  ;;  %v4606_v22 = vcombine.low %v3927_v37, %v3931_v58  ;;  %v4607_v12 = vcombine.low %v3935_v42, %v3939_v25  ;;  %v4608_v62 = vcombine.low %v3943_v34, %v3947_v27 }
 0x1f1   :  { %4928 = vperm.xlu1 %9531, %v4605_v49   ;;  %v4212_v41 = vrot.slane %v4198_v35, %v10270_v14  ;;  %v4609_v48 = vcombine.low %v3951_v53, %v3955_v50  ;;  %v3671_v16 = vrot.slane %v2120_v2, %v10244_v63  ;;  %v3675_v3 = vrot.slane %v2120_v2, %v10247_v39 }
 0x1f2   :  { %v4616_v26 = vrot.slane %v4606_v22, %v10270_v14  ;;  %v4623_v7 = vrot.slane %v4607_v12, %v10270_v14  ;;  %v4630_v44 = vrot.slane %v4608_v62, %v10270_v14  ;;  %v3679_v15 = vrot.slane %v2120_v2, %v10250_v36 }
 0x1f3   :  { %v4213_v4 = vcombine.low %v4205_v31, %v4212_v41  ;;  %v4637_v37 = vrot.slane %v4609_v48, %v10270_v14  ;;  %v3683_v5 = vrot.slane %v2120_v2, %v10253_v60  ;;  %v3687_v58 = vrot.slane %v2120_v2, %v10256_v30 }
 0x1f4   :  { %v4638_v42 = vcombine.low %v4616_v26, %v4623_v7  ;;  %v3691_v54 = vrot.slane %v2120_v2, %v10259_v45  ;;  %v3695_v25 = vrot.slane %v2120_v2, %v10262_v52  ;;  %v3699_v34 = vrot.slane %v2120_v2, %v10265_v18 }
 0x1f5   :  { %4904 = vperm.xlu0 %9532, %v4213_v4   ;;  %v4639_v27 = vcombine.low %v4630_v44, %v4637_v37  ;;  %v4214_v49 = vcombine.low %v3671_v16, %v3675_v3  ;;  %v4215_v35 = vcombine.low %v3679_v15, %v3683_v5  ;;  %v2129_v53 = vsub.f32 1.0, %v10486_v23 }
 0x1f6   :  { %v4646_v50 = vrot.slane %v4638_v42, %v10270_v14  ;;  %v4216_v31 = vcombine.low %v3687_v58, %v3691_v54  ;;  %v4217_v22 = vcombine.low %v3695_v25, %v3699_v34  ;;  %v2121_v12 = vsub.f32 1.0, %v10350_v47 }
 0x1f7   :  { %v4653_v62 = vrot.slane %v4639_v27, %v10270_v14  ;;  %v4224_v41 = vrot.slane %v4214_v49, %v10270_v14  ;;  %v4231_v48 = vrot.slane %v4215_v35, %v10270_v14  ;;  %v3959_v2 = vrot.slane %v2129_v53, %v10244_v63 }
 0x1f8   :  { %v4238_v26 = vrot.slane %v4216_v31, %v10270_v14  ;;  %v4245_v16 = vrot.slane %v4217_v22, %v10270_v14  ;;  %v3963_v23 = vrot.slane %v2129_v53, %v10247_v39  ;;  %v3967_v3 = vrot.slane %v2129_v53, %v10250_v36 }
 0x1f9   :  { %v4654_v7 = vcombine.low %v4646_v50, %v4653_v62  ;;  %v4246_v44 = vcombine.low %v4224_v41, %v4231_v48  ;;  %v3971_v47 = vrot.slane %v2129_v53, %v10253_v60  ;;  %v3975_v15 = vrot.slane %v2129_v53, %v10256_v30 }
 0x1fa   :  { %v4247_v4 = vcombine.low %v4238_v26, %v4245_v16  ;;  %v3979_v37 = vrot.slane %v2129_v53, %v10259_v45  ;;  %v3983_v5 = vrot.slane %v2129_v53, %v10262_v52  ;;  %v3987_v58 = vrot.slane %v2129_v53, %v10265_v18 }
 0x1fb   :  { %4931 = vperm.xlu1 %9531, %v4654_v7   ;;  %v4254_v42 = vrot.slane %v4246_v44, %v10270_v14  ;;  %v4655_v54 = vcombine.low %v3959_v2, %v3963_v23  ;;  %v4656_v25 = vcombine.low %v3967_v3, %v3971_v47  ;;  %v3703_v34 = vrot.slane %v2121_v12, %v10244_v63 }
 0x1fc   :  { %v4261_v27 = vrot.slane %v4247_v4, %v10270_v14  ;;  %v4657_v49 = vcombine.low %v3975_v15, %v3979_v37  ;;  %v4658_v35 = vcombine.low %v3983_v5, %v3987_v58  ;;  %v3707_v50 = vrot.slane %v2121_v12, %v10247_v39 }
 0x1fd   :  { %v4665_v31 = vrot.slane %v4655_v54, %v10270_v14  ;;  %v4672_v22 = vrot.slane %v4656_v25, %v10270_v14  ;;  %v3711_v62 = vrot.slane %v2121_v12, %v10250_v36  ;;  %v3715_v53 = vrot.slane %v2121_v12, %v10253_v60 }
 0x1fe   :  { %v4262_v41 = vcombine.low %v4254_v42, %v4261_v27  ;;  %v4679_v48 = vrot.slane %v4657_v49, %v10270_v14  ;;  %v4686_v2 = vrot.slane %v4658_v35, %v10270_v14  ;;  %v3719_v26 = vrot.slane %v2121_v12, %v10256_v30 }
 0x1ff   :  { %v4687_v16 = vcombine.low %v4665_v31, %v4672_v22  ;;  %v3723_v23 = vrot.slane %v2121_v12, %v10259_v45  ;;  %v3727_v3 = vrot.slane %v2121_v12, %v10262_v52  ;;  %v3731_v7 = vrot.slane %v2121_v12, %v10265_v18 }
 0x200   :  { %4907 = vperm.xlu0 %9532, %v4262_v41   ;;  %v4688_v44 = vcombine.low %v4679_v48, %v4686_v2  ;;  %v4263_v47 = vcombine.low %v3703_v34, %v3707_v50  ;;  %v4264_v15 = vcombine.low %v3711_v62, %v3715_v53  ;;  %v2130_v4 = vsub.f32 1.0, %v10759_v56 }
 0x201   :  { %v4695_v37 = vrot.slane %v4687_v16, %v10270_v14  ;;  %v4265_v5 = vcombine.low %v3719_v26, %v3723_v23  ;;  %v4266_v58 = vcombine.low %v3727_v3, %v3731_v7  ;;  %v2123_v42 = vsub.f32 1.0, %v10379_v59 }
 0x202   :  { %v4702_v54 = vrot.slane %v4688_v44, %v10270_v14  ;;  %v4273_v25 = vrot.slane %v4263_v47, %v10270_v14  ;;  %v4280_v27 = vrot.slane %v4264_v15, %v10270_v14  ;;  %v3991_v12 = vrot.slane %v2130_v4, %v10244_v63 }
 0x203   :  { %v4287_v49 = vrot.slane %v4265_v5, %v10270_v14  ;;  %v4294_v34 = vrot.slane %v4266_v58, %v10270_v14  ;;  %v3995_v56 = vrot.slane %v2130_v4, %v10247_v39  ;;  %v3999_v35 = vrot.slane %v2130_v4, %v10250_v36 }
 0x204   :  { %v4703_v50 = vcombine.low %v4695_v37, %v4702_v54  ;;  %v4295_v31 = vcombine.low %v4273_v25, %v4280_v27  ;;  %v4003_v59 = vrot.slane %v2130_v4, %v10253_v60  ;;  %v4007_v22 = vrot.slane %v2130_v4, %v10256_v30 }
 0x205   :  { %v4296_v62 = vcombine.low %v4287_v49, %v4294_v34  ;;  %v4011_v53 = vrot.slane %v2130_v4, %v10259_v45  ;;  %v4015_v41 = vrot.slane %v2130_v4, %v10262_v52  ;;  %v4019_v48 = vrot.slane %v2130_v4, %v10265_v18 }
 0x206   :  { %4934 = vperm.xlu1 %9531, %v4703_v50   ;;  %v4303_v2 = vrot.slane %v4295_v31, %v10270_v14  ;;  %v4704_v26 = vcombine.low %v3991_v12, %v3995_v56  ;;  %v4705_v16 = vcombine.low %v3999_v35, %v4003_v59  ;;  %v3767_v23 = vrot.slane %v2123_v42, %v10244_v63 }
 0x207   :  { %v4310_v3 = vrot.slane %v4296_v62, %v10270_v14  ;;  %v4706_v7 = vcombine.low %v4007_v22, %v4011_v53  ;;  %v4707_v44 = vcombine.low %v4015_v41, %v4019_v48  ;;  %v3771_v47 = vrot.slane %v2123_v42, %v10247_v39 }
 0x208   :  { %v4714_v15 = vrot.slane %v4704_v26, %v10270_v14  ;;  %v4721_v37 = vrot.slane %v4705_v16, %v10270_v14  ;;  %v3775_v5 = vrot.slane %v2123_v42, %v10250_v36  ;;  %v3779_v4 = vrot.slane %v2123_v42, %v10253_v60 }
 0x209   :  { %v4311_v58 = vcombine.low %v4303_v2, %v4310_v3  ;;  %v4728_v54 = vrot.slane %v4706_v7, %v10270_v14  ;;  %v4735_v25 = vrot.slane %v4707_v44, %v10270_v14  ;;  %v3783_v27 = vrot.slane %v2123_v42, %v10256_v30 }
 0x20a   :  { %v4736_v12 = vcombine.low %v4714_v15, %v4721_v37  ;;  %v3787_v49 = vrot.slane %v2123_v42, %v10259_v45  ;;  %v3791_v34 = vrot.slane %v2123_v42, %v10262_v52  ;;  %v3795_v56 = vrot.slane %v2123_v42, %v10265_v18 }
 0x20b   :  { %4910 = vperm.xlu0 %9532, %v4311_v58   ;;  %v4737_v35 = vcombine.low %v4728_v54, %v4735_v25  ;;  %v4361_v50 = vcombine.low %v3767_v23, %v3771_v47  ;;  %v4362_v31 = vcombine.low %v3775_v5, %v3779_v4  ;;  %v2131_v59 = vsub.f32 1.0, %v10631_v33 }
 0x20c   :  { %v4744_v22 = vrot.slane %v4736_v12, %v10270_v14  ;;  %v4363_v62 = vcombine.low %v3783_v27, %v3787_v49  ;;  %v4364_v53 = vcombine.low %v3791_v34, %v3795_v56  ;;  %v6582_v41 = vrot.slane %v10928_v28, %v10244_v63 }
 0x20d   :  { %v4751_v48 = vrot.slane %v4737_v35, %v10270_v14  ;;  %v4371_v2 = vrot.slane %v4361_v50, %v10270_v14  ;;  %v4378_v26 = vrot.slane %v4362_v31, %v10270_v14  ;;  %v4023_v42 = vrot.slane %v2131_v59, %v10244_v63 }
 0x20e   :  { %v4385_v16 = vrot.slane %v4363_v62, %v10270_v14  ;;  %v4392_v23 = vrot.slane %v4364_v53, %v10270_v14  ;;  %v4027_v33 = vrot.slane %v2131_v59, %v10247_v39  ;;  %v4031_v3 = vrot.slane %v2131_v59, %v10250_v36 }
 0x20f   :  { %v4752_v7 = vcombine.low %v4744_v22, %v4751_v48  ;;  %v4393_v44 = vcombine.low %v4371_v2, %v4378_v26  ;;  %v4035_v47 = vrot.slane %v2131_v59, %v10253_v60  ;;  %v4039_v15 = vrot.slane %v2131_v59, %v10256_v30 }
 0x210   :  { %v4394_v37 = vcombine.low %v4385_v16, %v4392_v23  ;;  %v4043_v5 = vrot.slane %v2131_v59, %v10259_v45  ;;  %v4047_v4 = vrot.slane %v2131_v59, %v10262_v52  ;;  %v4051_v58 = vrot.slane %v2131_v59, %v10265_v18 }
 0x211   :  { %4937 = vperm.xlu1 %9531, %v4752_v7   ;;  %v4401_v54 = vrot.slane %v4393_v44, %v10270_v14  ;;  %v4753_v25 = vcombine.low %v4023_v42, %v4027_v33  ;;  %v4754_v27 = vcombine.low %v4031_v3, %v4035_v47  ;;  %v6586_v12 = vrot.slane %v10928_v28, %v10247_v39 }
 0x212   :  { %v4408_v49 = vrot.slane %v4394_v37, %v10270_v14  ;;  %v4755_v34 = vcombine.low %v4039_v15, %v4043_v5  ;;  %v4756_v56 = vcombine.low %v4047_v4, %v4051_v58  ;;  %v6590_v35 = vrot.slane %v10928_v28, %v10250_v36 }
 0x213   :  { %v4763_v50 = vrot.slane %v4753_v25, %v10270_v14  ;;  %v4770_v31 = vrot.slane %v4754_v27, %v10270_v14  ;;  %v6594_v59 = vrot.slane %v10928_v28, %v10253_v60  ;;  %v6598_v22 = vrot.slane %v10928_v28, %v10256_v30 }
 0x214   :  { %v4409_v62 = vcombine.low %v4401_v54, %v4408_v49  ;;  %v4777_v53 = vrot.slane %v4755_v34, %v10270_v14  ;;  %v4784_v48 = vrot.slane %v4756_v56, %v10270_v14  ;;  %v6602_v2 = vrot.slane %v10928_v28, %v10259_v45 }
 0x215   :  { %v4785_v26 = vcombine.low %v4763_v50, %v4770_v31  ;;  %v6606_v42 = vrot.slane %v10928_v28, %v10262_v52  ;;  %v6610_v16 = vrot.slane %v10928_v28, %v10265_v18  ;;  %v7108_v23 = vcombine.low %v6582_v41, %v6586_v12 }
 0x216   :  { %4916 = vperm.xlu0 %9532, %v4409_v62   ;;  %v4786_v33 = vcombine.low %v4777_v53, %v4784_v48  ;;  %v7109_v3 = vcombine.low %v6590_v35, %v6594_v59  ;;  %v7110_v7 = vcombine.low %v6598_v22, %v6602_v2  ;;  %v2132_v44 = vsub.f32 1.0, %v10942_v24 }
 0x217   :  { %v4793_v47 = vrot.slane %v4785_v26, %v10270_v14  ;;  %v7111_v15 = vcombine.low %v6606_v42, %v6610_v16  ;;  %v7118_v37 = vrot.slane %v7108_v23, %v10270_v14  ;;  %v6614_v5 = vrot.slane %v10978_v10, %v10244_v63 }
 0x218   :  { %v4800_v4 = vrot.slane %v4786_v33, %v10270_v14  ;;  %v7125_v58 = vrot.slane %v7109_v3, %v10270_v14  ;;  %v7132_v28 = vrot.slane %v7110_v7, %v10270_v14  ;;  %v4055_v41 = vrot.slane %v2132_v44, %v10244_v63 }
 0x219   :  { %v7139_v54 = vrot.slane %v7111_v15, %v10270_v14  ;;  %v4059_v25 = vrot.slane %v2132_v44, %v10247_v39  ;;  %v4063_v27 = vrot.slane %v2132_v44, %v10250_v36  ;;  %v4067_v12 = vrot.slane %v2132_v44, %v10253_v60 }
 0x21a   :  { %v4801_v49 = vcombine.low %v4793_v47, %v4800_v4  ;;  %v7140_v34 = vcombine.low %v7118_v37, %v7125_v58  ;;  %v4071_v56 = vrot.slane %v2132_v44, %v10256_v30  ;;  %v4075_v35 = vrot.slane %v2132_v44, %v10259_v45 }
 0x21b   :  { %v7141_v50 = vcombine.low %v7132_v28, %v7139_v54  ;;  %v4079_v31 = vrot.slane %v2132_v44, %v10262_v52  ;;  %v4083_v59 = vrot.slane %v2132_v44, %v10265_v18  ;;  %v4802_v22 = vcombine.low %v4055_v41, %v4059_v25 }
 0x21c   :  { %4940 = vperm.xlu1 %9531, %v4801_v49   ;;  %v7148_v62 = vrot.slane %v7140_v34, %v10270_v14  ;;  %v4803_v53 = vcombine.low %v4063_v27, %v4067_v12  ;;  %v4804_v48 = vcombine.low %v4071_v56, %v4075_v35  ;;  %v6618_v2 = vrot.slane %v10978_v10, %v10247_v39 }
 0x21d   :  { %v7155_v26 = vrot.slane %v7141_v50, %v10270_v14  ;;  %v4805_v42 = vcombine.low %v4079_v31, %v4083_v59  ;;  %v4812_v16 = vrot.slane %v4802_v22, %v10270_v14  ;;  %v6622_v23 = vrot.slane %v10978_v10, %v10250_v36 }
 0x21e   :  { %v4819_v33 = vrot.slane %v4803_v53, %v10270_v14  ;;  %v4826_v3 = vrot.slane %v4804_v48, %v10270_v14  ;;  %v6626_v7 = vrot.slane %v10978_v10, %v10253_v60  ;;  %v6630_v44 = vrot.slane %v10978_v10, %v10256_v30 }
 0x21f   :  { %v7156_v47 = vcombine.low %v7148_v62, %v7155_v26  ;;  %v4833_v15 = vrot.slane %v4805_v42, %v10270_v14  ;;  %v6634_v37 = vrot.slane %v10978_v10, %v10259_v45  ;;  %v6638_v4 = vrot.slane %v10978_v10, %v10262_v52 }
 0x220   :  { %v4834_v58 = vcombine.low %v4812_v16, %v4819_v33  ;;  %v6642_v28 = vrot.slane %v10978_v10, %v10265_v18  ;;  %v7157_v41 = vcombine.low %v6614_v5, %v6618_v2  ;;  %v7158_v54 = vcombine.low %v6622_v23, %v6626_v7 }
 0x221   :  { %7847 = vperm.xlu0 %9532, %v7156_v47   ;;  %v4835_v25 = vcombine.low %v4826_v3, %v4833_v15  ;;  %v7159_v27 = vcombine.low %v6630_v44, %v6634_v37  ;;  %v6550_v12 = vrot.slane %v10961_v8, %v10244_v63  ;;  %v6554_v49 = vrot.slane %v10961_v8, %v10247_v39 }
 0x222   :  { %v4842_v34 = vrot.slane %v4834_v58, %v10270_v14  ;;  %v7160_v56 = vcombine.low %v6638_v4, %v6642_v28  ;;  %v7167_v35 = vrot.slane %v7157_v41, %v10270_v14  ;;  %v7174_v50 = vrot.slane %v7158_v54, %v10270_v14 }
 0x223   :  { %v4849_v10 = vrot.slane %v4835_v25, %v10270_v14  ;;  %v7181_v5 = vrot.slane %v7159_v27, %v10270_v14  ;;  %v6558_v31 = vrot.slane %v10961_v8, %v10250_v36  ;;  %v6562_v59 = vrot.slane %v10961_v8, %v10253_v60 }
 0x224   :  { %v7188_v22 = vrot.slane %v7160_v56, %v10270_v14  ;;  %v7189_v62 = vcombine.low %v7167_v35, %v7174_v50  ;;  %v6566_v53 = vrot.slane %v10961_v8, %v10256_v30  ;;  %v6570_v48 = vrot.slane %v10961_v8, %v10259_v45 }
 0x225   :  { %v4850_v2 = vcombine.low %v4842_v34, %v4849_v10  ;;  %v6574_v26 = vrot.slane %v10961_v8, %v10262_v52  ;;  %v6578_v42 = vrot.slane %v10961_v8, %v10265_v18  ;;  %v7059_v16 = vcombine.low %v6550_v12, %v6554_v49 }
 0x226   :  { %v7190_v23 = vcombine.low %v7181_v5, %v7188_v22  ;;  %v7197_v33 = vrot.slane %v7189_v62, %v10270_v14  ;;  %v7060_v3 = vcombine.low %v6558_v31, %v6562_v59  ;;  %v7061_v7 = vcombine.low %v6566_v53, %v6570_v48 }
 0x227   :  { %4943 = vperm.xlu1 %9531, %v4850_v2   ;;  %v7062_v44 = vcombine.low %v6574_v26, %v6578_v42  ;;  %v7069_v47 = vrot.slane %v7059_v16, %v10270_v14  ;;  %v6678_v15 = vrot.slane %v10984_v61, %v10244_v63  ;;  %v6682_v37 = vrot.slane %v10984_v61, %v10247_v39 }
 0x228   :  { %v7204_v4 = vrot.slane %v7190_v23, %v10270_v14  ;;  %v7076_v8 = vrot.slane %v7060_v3, %v10270_v14  ;;  %v7083_v58 = vrot.slane %v7061_v7, %v10270_v14  ;;  %v6686_v28 = vrot.slane %v10984_v61, %v10250_v36 }
 0x229   :  { %v7090_v41 = vrot.slane %v7062_v44, %v10270_v14  ;;  %v6690_v54 = vrot.slane %v10984_v61, %v10253_v60  ;;  %v6694_v25 = vrot.slane %v10984_v61, %v10256_v30  ;;  %v6698_v27 = vrot.slane %v10984_v61, %v10259_v45 }
 0x22a   :  { %v7205_v12 = vcombine.low %v7197_v33, %v7204_v4  ;;  %v7091_v49 = vcombine.low %v7069_v47, %v7076_v8  ;;  %v6702_v34 = vrot.slane %v10984_v61, %v10262_v52  ;;  %v6706_v56 = vrot.slane %v10984_v61, %v10265_v18 }
 0x22b   :  { %v7092_v35 = vcombine.low %v7083_v58, %v7090_v41  ;;  %v7255_v50 = vcombine.low %v6678_v15, %v6682_v37  ;;  %v7256_v10 = vcombine.low %v6686_v28, %v6690_v54  ;;  %v7257_v5 = vcombine.low %v6694_v25, %v6698_v27 }
 0x22c   :  { %7850 = vperm.xlu0 %9532, %v7205_v12   ;;  %v7099_v31 = vrot.slane %v7091_v49, %v10270_v14  ;;  %v7258_v59 = vcombine.low %v6702_v34, %v6706_v56  ;;  %v6646_v22 = vrot.slane %v10948_v21, %v10244_v63  ;;  %v6650_v62 = vrot.slane %v10948_v21, %v10247_v39 }
 0x22d   :  { %v7106_v53 = vrot.slane %v7092_v35, %v10270_v14  ;;  %v7265_v48 = vrot.slane %v7255_v50, %v10270_v14  ;;  %v7272_v61 = vrot.slane %v7256_v10, %v10270_v14  ;;  %v7279_v2 = vrot.slane %v7257_v5, %v10270_v14 }
 0x22e   :  { %v7286_v26 = vrot.slane %v7258_v59, %v10270_v14  ;;  %v6654_v42 = vrot.slane %v10948_v21, %v10250_v36  ;;  %v6658_v16 = vrot.slane %v10948_v21, %v10253_v60  ;;  %v6662_v23 = vrot.slane %v10948_v21, %v10256_v30 }
 0x22f   :  { %v7107_v33 = vcombine.low %v7099_v31, %v7106_v53  ;;  %v7287_v3 = vcombine.low %v7265_v48, %v7272_v61  ;;  %v6666_v7 = vrot.slane %v10948_v21, %v10259_v45  ;;  %v6670_v44 = vrot.slane %v10948_v21, %v10262_v52 }
 0x230   :  { %v7288_v47 = vcombine.low %v7279_v2, %v7286_v26  ;;  %v6674_v15 = vrot.slane %v10948_v21, %v10265_v18  ;;  %v7206_v37 = vcombine.low %v6646_v22, %v6650_v62  ;;  %v7207_v4 = vcombine.low %v6654_v42, %v6658_v16 }
 0x231   :  { %7844 = vperm.xlu1 %9531, %v7107_v33   ;;  %v7295_v8 = vrot.slane %v7287_v3, %v10270_v14  ;;  %v7208_v58 = vcombine.low %v6662_v23, %v6666_v7  ;;  %v8054_v28 = vrot.slane %v10933_v6, %v10244_v63  ;;  %v8058_v41 = vrot.slane %v10933_v6, %v10247_v39 }
 0x232   :  { %v7302_v54 = vrot.slane %v7288_v47, %v10270_v14  ;;  %v7209_v25 = vcombine.low %v6670_v44, %v6674_v15  ;;  %v7216_v27 = vrot.slane %v7206_v37, %v10270_v14  ;;  %v7223_v12 = vrot.slane %v7207_v4, %v10270_v14 }
 0x233   :  { %v7230_v21 = vrot.slane %v7208_v58, %v10270_v14  ;;  %v8062_v49 = vrot.slane %v10933_v6, %v10250_v36  ;;  %v8066_v34 = vrot.slane %v10933_v6, %v10253_v60  ;;  %v8070_v56 = vrot.slane %v10933_v6, %v10256_v30 }
 0x234   :  { %v7303_v35 = vcombine.low %v7295_v8, %v7302_v54  ;;  %v7237_v50 = vrot.slane %v7209_v25, %v10270_v14  ;;  %v7238_v10 = vcombine.low %v7216_v27, %v7223_v12  ;;  %v8074_v5 = vrot.slane %v10933_v6, %v10259_v45 }
 0x235   :  { %v8078_v31 = vrot.slane %v10933_v6, %v10262_v52  ;;  %v8082_v59 = vrot.slane %v10933_v6, %v10265_v18  ;;  %v8580_v22 = vcombine.low %v8054_v28, %v8058_v41  ;;  %v8581_v62 = vcombine.low %v8062_v49, %v8066_v34 }
 0x236   :  { %7856 = vperm.xlu0 %9532, %v7303_v35   ;;  %v7239_v53 = vcombine.low %v7230_v21, %v7237_v50  ;;  %v7246_v48 = vrot.slane %v7238_v10, %v10270_v14  ;;  %v8582_v61 = vcombine.low %v8070_v56, %v8074_v5  ;;  %v6710_v2 = vrot.slane %v10969_v43, %v10244_v63 }
 0x237   :  { %v8583_v26 = vcombine.low %v8078_v31, %v8082_v59  ;;  %v8590_v42 = vrot.slane %v8580_v22, %v10270_v14  ;;  %v8597_v16 = vrot.slane %v8581_v62, %v10270_v14  ;;  %v6714_v23 = vrot.slane %v10969_v43, %v10247_v39 }
 0x238   :  { %v7253_v6 = vrot.slane %v7239_v53, %v10270_v14  ;;  %v8604_v33 = vrot.slane %v8582_v61, %v10270_v14  ;;  %v6718_v3 = vrot.slane %v10969_v43, %v10250_v36  ;;  %v6722_v7 = vrot.slane %v10969_v43, %v10253_v60 }
 0x239   :  { %v8611_v44 = vrot.slane %v8583_v26, %v10270_v14  ;;  %v8612_v47 = vcombine.low %v8590_v42, %v8597_v16  ;;  %v6726_v15 = vrot.slane %v10969_v43, %v10256_v30  ;;  %v6730_v37 = vrot.slane %v10969_v43, %v10259_v45 }
 0x23a   :  { %v7254_v4 = vcombine.low %v7246_v48, %v7253_v6  ;;  %v6734_v8 = vrot.slane %v10969_v43, %v10262_v52  ;;  %v6738_v58 = vrot.slane %v10969_v43, %v10265_v18  ;;  %v7304_v28 = vcombine.low %v6710_v2, %v6714_v23 }
 0x23b   :  { %v8613_v41 = vcombine.low %v8604_v33, %v8611_v44  ;;  %v8620_v54 = vrot.slane %v8612_v47, %v10270_v14  ;;  %v7305_v25 = vcombine.low %v6718_v3, %v6722_v7  ;;  %v7306_v27 = vcombine.low %v6726_v15, %v6730_v37 }
 0x23c   :  { %7853 = vperm.xlu1 %9531, %v7254_v4   ;;  %v7307_v12 = vcombine.low %v6734_v8, %v6738_v58  ;;  %v7314_v21 = vrot.slane %v7304_v28, %v10270_v14  ;;  %v8118_v49 = vrot.slane %v10953_v0, %v10244_v63  ;;  %v8122_v34 = vrot.slane %v10953_v0, %v10247_v39 }
 0x23d   :  { %v8627_v56 = vrot.slane %v8613_v41, %v10270_v14  ;;  %v7321_v43 = vrot.slane %v7305_v25, %v10270_v14  ;;  %v7328_v35 = vrot.slane %v7306_v27, %v10270_v14  ;;  %v8126_v50 = vrot.slane %v10953_v0, %v10250_v36 }
 0x23e   :  { %v7335_v10 = vrot.slane %v7307_v12, %v10270_v14  ;;  %v8130_v5 = vrot.slane %v10953_v0, %v10253_v60  ;;  %v8134_v31 = vrot.slane %v10953_v0, %v10256_v30  ;;  %v8138_v59 = vrot.slane %v10953_v0, %v10259_v45 }
 0x23f   :  { %v8628_v22 = vcombine.low %v8620_v54, %v8627_v56  ;;  %v7336_v62 = vcombine.low %v7314_v21, %v7321_v43  ;;  %v8142_v53 = vrot.slane %v10953_v0, %v10262_v52  ;;  %v8146_v48 = vrot.slane %v10953_v0, %v10265_v18 }
 0x240   :  { %v7337_v61 = vcombine.low %v7328_v35, %v7335_v10  ;;  %v8678_v2 = vcombine.low %v8118_v49, %v8122_v34  ;;  %v8679_v26 = vcombine.low %v8126_v50, %v8130_v5  ;;  %v8680_v42 = vcombine.low %v8134_v31, %v8138_v59 }
 0x241   :  { %9319 = vperm.xlu0 %9532, %v8628_v22   ;;  %v7344_v16 = vrot.slane %v7336_v62, %v10270_v14  ;;  %v8681_v23 = vcombine.low %v8142_v53, %v8146_v48  ;;  %v8182_v6 = vrot.slane %v10972_v38, %v10244_v63  ;;  %v8186_v33 = vrot.slane %v10972_v38, %v10247_v39 }
 0x242   :  { %v7351_v3 = vrot.slane %v7337_v61, %v10270_v14  ;;  %v8688_v7 = vrot.slane %v8678_v2, %v10270_v14  ;;  %v8695_v0 = vrot.slane %v8679_v26, %v10270_v14  ;;  %v8702_v44 = vrot.slane %v8680_v42, %v10270_v14 }
 0x243   :  { %v8709_v47 = vrot.slane %v8681_v23, %v10270_v14  ;;  %v8190_v15 = vrot.slane %v10972_v38, %v10250_v36  ;;  %v8194_v37 = vrot.slane %v10972_v38, %v10253_v60  ;;  %v8198_v4 = vrot.slane %v10972_v38, %v10256_v30 }
 0x244   :  { %v7352_v8 = vcombine.low %v7344_v16, %v7351_v3  ;;  %v8710_v58 = vcombine.low %v8688_v7, %v8695_v0  ;;  %v8202_v28 = vrot.slane %v10972_v38, %v10259_v45  ;;  %v8206_v41 = vrot.slane %v10972_v38, %v10262_v52 }
 0x245   :  { %v8711_v54 = vcombine.low %v8702_v44, %v8709_v47  ;;  %v8210_v25 = vrot.slane %v10972_v38, %v10265_v18  ;;  %v8776_v27 = vcombine.low %v8182_v6, %v8186_v33  ;;  %v8777_v12 = vcombine.low %v8190_v15, %v8194_v37 }
 0x246   :  { %7859 = vperm.xlu1 %9531, %v7352_v8   ;;  %v8718_v21 = vrot.slane %v8710_v58, %v10270_v14  ;;  %v8778_v49 = vcombine.low %v8198_v4, %v8202_v28  ;;  %v6742_v34 = vrot.slane %v11020_v57, %v10244_v63  ;;  %v6746_v56 = vrot.slane %v11020_v57, %v10247_v39 }
 0x247   :  { %v8725_v43 = vrot.slane %v8711_v54, %v10270_v14  ;;  %v8779_v35 = vcombine.low %v8206_v41, %v8210_v25  ;;  %v8786_v50 = vrot.slane %v8776_v27, %v10270_v14  ;;  %v8793_v10 = vrot.slane %v8777_v12, %v10270_v14 }
 0x248   :  { %v8800_v38 = vrot.slane %v8778_v49, %v10270_v14  ;;  %v6750_v5 = vrot.slane %v11020_v57, %v10250_v36  ;;  %v6754_v31 = vrot.slane %v11020_v57, %v10253_v60  ;;  %v6758_v59 = vrot.slane %v11020_v57, %v10256_v30 }
 0x249   :  { %v8726_v22 = vcombine.low %v8718_v21, %v8725_v43  ;;  %v8807_v62 = vrot.slane %v8779_v35, %v10270_v14  ;;  %v8808_v53 = vcombine.low %v8786_v50, %v8793_v10  ;;  %v6762_v48 = vrot.slane %v11020_v57, %v10259_v45 }
 0x24a   :  { %v6766_v61 = vrot.slane %v11020_v57, %v10262_v52  ;;  %v6770_v2 = vrot.slane %v11020_v57, %v10265_v18  ;;  %v7353_v26 = vcombine.low %v6742_v34, %v6746_v56  ;;  %v7354_v42 = vcombine.low %v6750_v5, %v6754_v31 }
 0x24b   :  { %9325 = vperm.xlu0 %9532, %v8726_v22   ;;  %v8809_v16 = vcombine.low %v8800_v38, %v8807_v62  ;;  %v8816_v23 = vrot.slane %v8808_v53, %v10270_v14  ;;  %v7355_v6 = vcombine.low %v6758_v59, %v6762_v48  ;;  %v6538_v57 = vsel %vm2093_vm6, 1, %v13211_v13  ;;  %vm7996_vm6 = vmxor %vm2095_vm8, %vm9679_vm15 }
 0x24c   :  { %v7356_v33 = vcombine.low %v6766_v61, %v6770_v2  ;;  %v7363_v3 = vrot.slane %v7353_v26, %v10270_v14  ;;  %v7370_v7 = vrot.slane %v7354_v42, %v10270_v14  ;;  %v8214_v47 = vrot.slane %v11038_v9, %v10244_v63 }
 0x24d   :  { %v8823_v0 = vrot.slane %v8809_v16, %v10270_v14  ;;  %v7377_v44 = vrot.slane %v7355_v6, %v10270_v14  ;;  %v11415_v15 = vsel %vm7994_vm0, 1, %v13211_v13  ;;  %v8218_v8 = vrot.slane %v11038_v9, %v10247_v39 }
 0x24e   :  { %v7384_v37 = vrot.slane %v7356_v33, %v10270_v14  ;;  %v7385_v4 = vcombine.low %v7363_v3, %v7370_v7  ;;  %v8222_v51 = vrot.slane %v11038_v9, %v10250_v36  ;;  %v8226_v28 = vrot.slane %v11038_v9, %v10253_v60 }
 0x24f   :  { %v8824_v58 = vcombine.low %v8816_v23, %v8823_v0  ;;  %v8230_v41 = vrot.slane %v11038_v9, %v10256_v30  ;;  %v8234_v27 = vrot.slane %v11038_v9, %v10259_v45  ;;  %v8238_v12 = vrot.slane %v11038_v9, %v10262_v52 }
 0x250   :  { %v7386_v54 = vcombine.low %v7377_v44, %v7384_v37  ;;  %v7393_v25 = vrot.slane %v7385_v4, %v10270_v14  ;;  %v8242_v21 = vrot.slane %v11038_v9, %v10265_v18  ;;  %v8825_v49 = vcombine.low %v8214_v47, %v8218_v8 }
 0x251   :  { %9331 = vperm.xlu0 %9532, %v8824_v58   ;;  %v8826_v34 = vcombine.low %v8222_v51, %v8226_v28  ;;  %v6774_v56 = vrot.slane %v6538_v57, %v10244_v63  ;;  %v8827_v35 = vcombine.low %v8230_v41, %v8234_v27  ;;  %v6778_v50 = vrot.slane %v6538_v57, %v10247_v39 }
 0x252   :  { %v7400_v43 = vrot.slane %v7386_v54, %v10270_v14  ;;  %v6782_v10 = vrot.slane %v6538_v57, %v10250_v36  ;;  %v8828_v38 = vcombine.low %v8238_v12, %v8242_v21  ;;  %v8835_v5 = vrot.slane %v8825_v49, %v10270_v14 }
 0x253   :  { %v8842_v31 = vrot.slane %v8826_v34, %v10270_v14  ;;  %v6786_v59 = vrot.slane %v6538_v57, %v10253_v60  ;;  %v8849_v9 = vrot.slane %v8827_v35, %v10270_v14  ;;  %v6790_v62 = vrot.slane %v6538_v57, %v10256_v30 }
 0x254   :  { %v7401_v22 = vcombine.low %v7393_v25, %v7400_v43  ;;  %v6794_v53 = vrot.slane %v6538_v57, %v10259_v45  ;;  %v8856_v48 = vrot.slane %v8828_v38, %v10270_v14  ;;  %v6798_v2 = vrot.slane %v6538_v57, %v10262_v52 }
 0x255   :  { %v8857_v61 = vcombine.low %v8835_v5, %v8842_v31  ;;  %v6802_v26 = vrot.slane %v6538_v57, %v10265_v18  ;;  %v7402_v42 = vcombine.low %v6774_v56, %v6778_v50  ;;  %v7403_v16 = vcombine.low %v6782_v10, %v6786_v59 }
 0x256   :  { %7862 = vperm.xlu1 %9531, %v7401_v22   ;;  %v7404_v23 = vcombine.low %v6790_v62, %v6794_v53  ;;  %v6539_v6 = vsel %vm2094_vm11, 1, %v13211_v13  ;;  %v8858_v33 = vcombine.low %v8849_v9, %v8856_v48  ;;  %v8246_v57 = vrot.slane %v11415_v15, %v10244_v63 }
 0x257   :  { %v8865_v3 = vrot.slane %v8857_v61, %v10270_v14  ;;  %v7405_v7 = vcombine.low %v6798_v2, %v6802_v26  ;;  %v7412_v0 = vrot.slane %v7402_v42, %v10270_v14  ;;  %v7419_v44 = vrot.slane %v7403_v16, %v10270_v14 }
 0x258   :  { %v7426_v47 = vrot.slane %v7404_v23, %v10270_v14  ;;  %v8872_v37 = vrot.slane %v8858_v33, %v10270_v14  ;;  %v8250_v8 = vrot.slane %v11415_v15, %v10247_v39  ;;  %v8254_v58 = vrot.slane %v11415_v15, %v10250_v36 }
 0x259   :  { %v7433_v4 = vrot.slane %v7405_v7, %v10270_v14  ;;  %v7434_v51 = vcombine.low %v7412_v0, %v7419_v44  ;;  %v8258_v28 = vrot.slane %v11415_v15, %v10253_v60  ;;  %v8262_v41 = vrot.slane %v11415_v15, %v10256_v30 }
 0x25a   :  { %v8266_v54 = vrot.slane %v11415_v15, %v10259_v45  ;;  %v8873_v25 = vcombine.low %v8865_v3, %v8872_v37  ;;  %v8270_v12 = vrot.slane %v11415_v15, %v10262_v52  ;;  %v8274_v21 = vrot.slane %v11415_v15, %v10265_v18 }
 0x25b   :  { %v7435_v27 = vcombine.low %v7426_v47, %v7433_v4  ;;  %v7442_v49 = vrot.slane %v7434_v51, %v10270_v14  ;;  %v8874_v34 = vcombine.low %v8246_v57, %v8250_v8  ;;  %v8875_v56 = vcombine.low %v8254_v58, %v8258_v28 }
 0x25c   :  { %v8876_v43 = vcombine.low %v8262_v41, %v8266_v54  ;;  %9334 = vperm.xlu0 %9532, %v8873_v25   ;;  %v8877_v50 = vcombine.low %v8270_v12, %v8274_v21  ;;  %v6806_v10 = vrot.slane %v6539_v6, %v10244_v63  ;;  %v6810_v38 = vrot.slane %v6539_v6, %v10247_v39 }
 0x25d   :  { %v7449_v35 = vrot.slane %v7435_v27, %v10270_v14  ;;  %v8884_v15 = vrot.slane %v8874_v34, %v10270_v14  ;;  %v8891_v5 = vrot.slane %v8875_v56, %v10270_v14  ;;  %v6814_v59 = vrot.slane %v6539_v6, %v10250_v36 }
 0x25e   :  { %v8898_v31 = vrot.slane %v8876_v43, %v10270_v14  ;;  %v8905_v9 = vrot.slane %v8877_v50, %v10270_v14  ;;  %v6818_v62 = vrot.slane %v6539_v6, %v10253_v60  ;;  %v6822_v53 = vrot.slane %v6539_v6, %v10256_v30 }
 0x25f   :  { %v7450_v22 = vcombine.low %v7442_v49, %v7449_v35  ;;  %v8906_v48 = vcombine.low %v8884_v15, %v8891_v5  ;;  %v6826_v61 = vrot.slane %v6539_v6, %v10259_v45  ;;  %v6830_v19 = vrot.slane %v6539_v6, %v10262_v52 }
 0x260   :  { %v6834_v2 = vrot.slane %v6539_v6, %v10265_v18  ;;  %v8011_v26 = vsel %vm7995_vm4, 1, %v13211_v13  ;;  %v8907_v42 = vcombine.low %v8898_v31, %v8905_v9  ;;  %v7451_v16 = vcombine.low %v6806_v10, %v6810_v38 }
 0x261   :  { %7865 = vperm.xlu1 %9531, %v7450_v22   ;;  %v7452_v23 = vcombine.low %v6814_v59, %v6818_v62  ;;  %v8914_v33 = vrot.slane %v8906_v48, %v10270_v14  ;;  %v7453_v3 = vcombine.low %v6822_v53, %v6826_v61  ;;  %v6540_v6 = vsel %vm2095_vm8, 1, %v13211_v13  ;;  %vm7997_vm8 = vmxor %vm2096_vm13, %vm9679_vm15 }
 0x262   :  { %v7454_v7 = vcombine.low %v6830_v19, %v6834_v2  ;;  %v8921_v0 = vrot.slane %v8907_v42, %v10270_v14  ;;  %v7461_v44 = vrot.slane %v7451_v16, %v10270_v14  ;;  %v8278_v4 = vrot.slane %v8011_v26, %v10244_v63 }
 0x263   :  { %v7468_v47 = vrot.slane %v7452_v23, %v10270_v14  ;;  %v7475_v57 = vrot.slane %v7453_v3, %v10270_v14  ;;  %v8282_v51 = vrot.slane %v8011_v26, %v10247_v39  ;;  %v8286_v28 = vrot.slane %v8011_v26, %v10250_v36 }
 0x264   :  { %v7482_v37 = vrot.slane %v7454_v7, %v10270_v14  ;;  %v8922_v8 = vcombine.low %v8914_v33, %v8921_v0  ;;  %v8290_v54 = vrot.slane %v8011_v26, %v10253_v60  ;;  %v8294_v25 = vrot.slane %v8011_v26, %v10256_v30 }
 0x265   :  { %v7483_v58 = vcombine.low %v7461_v44, %v7468_v47  ;;  %v8298_v27 = vrot.slane %v8011_v26, %v10259_v45  ;;  %v8302_v21 = vrot.slane %v8011_v26, %v10262_v52  ;;  %v8306_v49 = vrot.slane %v8011_v26, %v10265_v18 }
 0x266   :  { %v7484_v41 = vcombine.low %v7475_v57, %v7482_v37  ;;  %9337 = vperm.xlu0 %9532, %v8922_v8   ;;  %v8923_v34 = vcombine.low %v8278_v4, %v8282_v51  ;;  %v8924_v43 = vcombine.low %v8286_v28, %v8290_v54  ;;  %v6838_v50 = vrot.slane %v6540_v6, %v10244_v63 }
 0x267   :  { %v7491_v12 = vrot.slane %v7483_v58, %v10270_v14  ;;  %v8925_v35 = vcombine.low %v8294_v25, %v8298_v27  ;;  %v8926_v10 = vcombine.low %v8302_v21, %v8306_v49  ;;  %v6842_v15 = vrot.slane %v6540_v6, %v10247_v39 }
 0x268   :  { %v7498_v56 = vrot.slane %v7484_v41, %v10270_v14  ;;  %v8933_v38 = vrot.slane %v8923_v34, %v10270_v14  ;;  %v6846_v5 = vrot.slane %v6540_v6, %v10250_v36  ;;  %v8940_v59 = vrot.slane %v8924_v43, %v10270_v14 }
 0x269   :  { %v8947_v22 = vrot.slane %v8925_v35, %v10270_v14  ;;  %v6850_v9 = vrot.slane %v6540_v6, %v10253_v60  ;;  %v8954_v62 = vrot.slane %v8926_v10, %v10270_v14  ;;  %v6854_v53 = vrot.slane %v6540_v6, %v10256_v30 }
 0x26a   :  { %v7499_v31 = vcombine.low %v7491_v12, %v7498_v56  ;;  %v6858_v48 = vrot.slane %v6540_v6, %v10259_v45  ;;  %v6862_v61 = vrot.slane %v6540_v6, %v10262_v52  ;;  %v8955_v19 = vcombine.low %v8933_v38, %v8940_v59 }
 0x26b   :  { %v6866_v46 = vrot.slane %v6540_v6, %v10265_v18  ;;  %v7500_v2 = vcombine.low %v6838_v50, %v6842_v15  ;;  %v7501_v26 = vcombine.low %v6846_v5, %v6850_v9  ;;  %v8012_v42 = vsel %vm7996_vm6, 1, %v13211_v13 }
 0x26c   :  { %7868 = vperm.xlu1 %9531, %v7499_v31   ;;  %v8956_v16 = vcombine.low %v8947_v22, %v8954_v62  ;;  %v7502_v23 = vcombine.low %v6854_v53, %v6858_v48  ;;  %v8963_v33 = vrot.slane %v8955_v19, %v10270_v14  ;;  %v6541_v44 = vsel %vm2096_vm13, 1, %v13211_v13 }
 0x26d   :  { %v7503_v3 = vcombine.low %v6862_v61, %v6866_v46  ;;  %v7510_v7 = vrot.slane %v7500_v2, %v10270_v14  ;;  %v7517_v0 = vrot.slane %v7501_v26, %v10270_v14  ;;  %v8310_v4 = vrot.slane %v8012_v42, %v10244_v63 }
 0x26e   :  { %v8970_v47 = vrot.slane %v8956_v16, %v10270_v14  ;;  %v7524_v6 = vrot.slane %v7502_v23, %v10270_v14  ;;  %v8314_v8 = vrot.slane %v8012_v42, %v10247_v39  ;;  %v8318_v51 = vrot.slane %v8012_v42, %v10250_v36 }
 0x26f   :  { %v7531_v57 = vrot.slane %v7503_v3, %v10270_v14  ;;  %v7532_v37 = vcombine.low %v7510_v7, %v7517_v0  ;;  %v8322_v28 = vrot.slane %v8012_v42, %v10253_v60  ;;  %v8326_v41 = vrot.slane %v8012_v42, %v10256_v30 }
 0x270   :  { %v8971_v58 = vcombine.low %v8963_v33, %v8970_v47  ;;  %v8330_v27 = vrot.slane %v8012_v42, %v10259_v45  ;;  %v8334_v12 = vrot.slane %v8012_v42, %v10262_v52  ;;  %v8338_v21 = vrot.slane %v8012_v42, %v10265_v18 }
 0x271   :  { %v7533_v54 = vcombine.low %v7524_v6, %v7531_v57  ;;  %v7540_v25 = vrot.slane %v7532_v37, %v10270_v14  ;;  %v8972_v49 = vcombine.low %v8310_v4, %v8314_v8  ;;  %v8973_v34 = vcombine.low %v8318_v51, %v8322_v28 }
 0x272   :  { %9340 = vperm.xlu0 %9532, %v8971_v58   ;;  %v6870_v56 = vrot.slane %v6541_v44, %v10244_v63  ;;  %v8974_v35 = vcombine.low %v8326_v41, %v8330_v27  ;;  %v6874_v50 = vrot.slane %v6541_v44, %v10247_v39  ;;  %v6878_v10 = vrot.slane %v6541_v44, %v10250_v36 }
 0x273   :  { %v7547_v43 = vrot.slane %v7533_v54, %v10270_v14  ;;  %v8975_v38 = vcombine.low %v8334_v12, %v8338_v21  ;;  %v8982_v15 = vrot.slane %v8972_v49, %v10270_v14  ;;  %v8989_v5 = vrot.slane %v8973_v34, %v10270_v14 }
 0x274   :  { %v6882_v31 = vrot.slane %v6541_v44, %v10253_v60  ;;  %v8996_v22 = vrot.slane %v8974_v35, %v10270_v14  ;;  %v6886_v9 = vrot.slane %v6541_v44, %v10256_v30  ;;  %v6890_v62 = vrot.slane %v6541_v44, %v10259_v45 }
 0x275   :  { %v7548_v59 = vcombine.low %v7540_v25, %v7547_v43  ;;  %v9003_v53 = vrot.slane %v8975_v38, %v10270_v14  ;;  %v9004_v48 = vcombine.low %v8982_v15, %v8989_v5  ;;  %v6894_v11 = vrot.slane %v6541_v44, %v10262_v52 }
 0x276   :  { %v6898_v61 = vrot.slane %v6541_v44, %v10265_v18  ;;  %v8013_v19 = vsel %vm7997_vm8, 1, %v13211_v13  ;;  %v7549_v46 = vcombine.low %v6870_v56, %v6874_v50  ;;  %v7550_v2 = vcombine.low %v6878_v10, %v6882_v31 }
 0x277   :  { %7871 = vperm.xlu1 %9531, %v7548_v59   ;;  %v7551_v26 = vcombine.low %v6886_v9, %v6890_v62  ;;  %v9005_v42 = vcombine.low %v8996_v22, %v9003_v53  ;;  %v9012_v16 = vrot.slane %v9004_v48, %v10270_v14  ;;  %v6542_v0 = vsel %vm2097_vm10, 1, %v13211_v13 }
 0x278   :  { %v7552_v23 = vcombine.low %v6894_v11, %v6898_v61  ;;  %v7559_v33 = vrot.slane %v7549_v46, %v10270_v14  ;;  %v7566_v3 = vrot.slane %v7550_v2, %v10270_v14  ;;  %v8342_v6 = vrot.slane %v8013_v19, %v10244_v63 }
 0x279   :  { %v7573_v7 = vrot.slane %v7551_v26, %v10270_v14  ;;  %v9019_v44 = vrot.slane %v9005_v42, %v10270_v14  ;;  %v8346_v37 = vrot.slane %v8013_v19, %v10247_v39  ;;  %v8350_v4 = vrot.slane %v8013_v19, %v10250_v36 }
 0x27a   :  { %v7580_v47 = vrot.slane %v7552_v23, %v10270_v14  ;;  %v7581_v57 = vcombine.low %v7559_v33, %v7566_v3  ;;  %v8354_v8 = vrot.slane %v8013_v19, %v10253_v60  ;;  %v8358_v28 = vrot.slane %v8013_v19, %v10256_v30 }
 0x27b   :  { %v9020_v58 = vcombine.low %v9012_v16, %v9019_v44  ;;  %v8362_v41 = vrot.slane %v8013_v19, %v10259_v45  ;;  %v8366_v25 = vrot.slane %v8013_v19, %v10262_v52  ;;  %v8370_v27 = vrot.slane %v8013_v19, %v10265_v18 }
 0x27c   :  { %v7582_v51 = vcombine.low %v7573_v7, %v7580_v47  ;;  %v7589_v54 = vrot.slane %v7581_v57, %v10270_v14  ;;  %v9021_v12 = vcombine.low %v8342_v6, %v8346_v37  ;;  %v9022_v49 = vcombine.low %v8350_v4, %v8354_v8 }
 0x27d   :  { %9343 = vperm.xlu0 %9532, %v9020_v58   ;;  %v9023_v34 = vcombine.low %v8358_v28, %v8362_v41  ;;  %v6902_v56 = vrot.slane %v6542_v0, %v10244_v63  ;;  %v9024_v43 = vcombine.low %v8366_v25, %v8370_v27  ;;  %v6906_v50 = vrot.slane %v6542_v0, %v10247_v39 }
 0x27e   :  { %v7596_v21 = vrot.slane %v7582_v51, %v10270_v14  ;;  %v9031_v35 = vrot.slane %v9021_v12, %v10270_v14  ;;  %v6910_v10 = vrot.slane %v6542_v0, %v10250_v36  ;;  %v9038_v15 = vrot.slane %v9022_v49, %v10270_v14 }
 0x27f   :  { %v9045_v5 = vrot.slane %v9023_v34, %v10270_v14  ;;  %v6914_v31 = vrot.slane %v6542_v0, %v10253_v60  ;;  %v9052_v59 = vrot.slane %v9024_v43, %v10270_v14  ;;  %v6918_v22 = vrot.slane %v6542_v0, %v10256_v30 }
 0x280   :  { %v7597_v38 = vcombine.low %v7589_v54, %v7596_v21  ;;  %v6922_v9 = vrot.slane %v6542_v0, %v10259_v45  ;;  %v6926_v62 = vrot.slane %v6542_v0, %v10262_v52  ;;  %v9053_v53 = vcombine.low %v9031_v35, %v9038_v15 }
 0x281   :  { %v6930_v1 = vrot.slane %v6542_v0, %v10265_v18  ;;  %v7598_v48 = vcombine.low %v6902_v56, %v6906_v50  ;;  %v7599_v11 = vcombine.low %v6910_v10, %v6914_v31  ;;  %v8014_v61 = vsel %vm7998_vm9, 1, %v13211_v13 }
 0x282   :  { %7874 = vperm.xlu1 %9531, %v7597_v38   ;;  %v9054_v19 = vcombine.low %v9045_v5, %v9052_v59  ;;  %v7600_v46 = vcombine.low %v6918_v22, %v6922_v9  ;;  %v9061_v2 = vrot.slane %v9053_v53, %v10270_v14  ;;  %vm13212_vm10 = vcmp.le.f32.partialorder %v10821_v17, %v10423_v40 }
 0x283   :  { %v7601_v26 = vcombine.low %v6926_v62, %v6930_v1  ;;  %v7608_v42 = vrot.slane %v7598_v48, %v10270_v14  ;;  %v7615_v16 = vrot.slane %v7599_v11, %v10270_v14  ;;  %v6543_v23 = vsel %vm13212_vm10, 1, %v13211_v13  ;;  %vm13213_vm11 = vmmov %vm13212_vm10 }
 0x284   :  { %v9068_v33 = vrot.slane %v9054_v19, %v10270_v14  ;;  %v7622_v3 = vrot.slane %v7600_v46, %v10270_v14  ;;  %v8374_v44 = vrot.slane %v8014_v61, %v10244_v63  ;;  %v8378_v47 = vrot.slane %v8014_v61, %v10247_v39  ;;  %vm7999_vm12 = vmxor %vm13213_vm11, %vm9679_vm15 }
 0x285   :  { %v7629_v7 = vrot.slane %v7601_v26, %v10270_v14  ;;  %v7630_v0 = vcombine.low %v7608_v42, %v7615_v16  ;;  %v8382_v57 = vrot.slane %v8014_v61, %v10250_v36  ;;  %v8386_v37 = vrot.slane %v8014_v61, %v10253_v60  ;;  %v13214_v26 = vld [vmem:[#allocation39_spill] sm:$0xff] }
 0x286   :  { %v9069_v6 = vcombine.low %v9061_v2, %v9068_v33  ;;  %v8390_v4 = vrot.slane %v8014_v61, %v10256_v30  ;;  %v8394_v51 = vrot.slane %v8014_v61, %v10259_v45  ;;  %v8398_v28 = vrot.slane %v8014_v61, %v10262_v52 }
 0x287   :  { %v7631_v8 = vcombine.low %v7622_v3, %v7629_v7  ;;  %v7638_v58 = vrot.slane %v7630_v0, %v10270_v14  ;;  %v8402_v41 = vrot.slane %v8014_v61, %v10265_v18  ;;  %v9070_v54 = vcombine.low %v8374_v44, %v8378_v47 }
 0x288   :  { %9346 = vperm.xlu0 %9532, %v9069_v6   ;;  %v9071_v25 = vcombine.low %v8382_v57, %v8386_v37  ;;  %v6934_v27 = vrot.slane %v6543_v23, %v10244_v63  ;;  %v9072_v21 = vcombine.low %v8390_v4, %v8394_v51  ;;  %v6938_v49 = vrot.slane %v6543_v23, %v10247_v39 }
 0x289   :  { %v7645_v12 = vrot.slane %v7631_v8, %v10270_v14  ;;  %v6942_v34 = vrot.slane %v6543_v23, %v10250_v36  ;;  %v9073_v56 = vcombine.low %v8398_v28, %v8402_v41  ;;  %v9080_v43 = vrot.slane %v9070_v54, %v10270_v14 }
 0x28a   :  { %v9087_v35 = vrot.slane %v9071_v25, %v10270_v14  ;;  %v6946_v50 = vrot.slane %v6543_v23, %v10253_v60  ;;  %v9094_v38 = vrot.slane %v9072_v21, %v10270_v14  ;;  %v6950_v15 = vrot.slane %v6543_v23, %v10256_v30 }
 0x28b   :  { %v7646_v10 = vcombine.low %v7638_v58, %v7645_v12  ;;  %v6954_v5 = vrot.slane %v6543_v23, %v10259_v45  ;;  %v9101_v31 = vrot.slane %v9073_v56, %v10270_v14  ;;  %v6958_v17 = vrot.slane %v6543_v23, %v10262_v52 }
 0x28c   :  { %v9102_v59 = vcombine.low %v9080_v43, %v9087_v35  ;;  %v6962_v22 = vrot.slane %v6543_v23, %v10265_v18  ;;  %v8015_v9 = vsel %vm7999_vm12, 1, %v13211_v13  ;;  %v7647_v62 = vcombine.low %v6934_v27, %v6938_v49  ;;  %v11660_v27 = vpop.xlane.xlu0 %246 }
 0x28d   :  { %7877 = vperm.xlu1 %9531, %v7646_v10   ;;  %v7648_v53 = vcombine.low %v6942_v34, %v6946_v50  ;;  %v7649_v1 = vcombine.low %v6950_v15, %v6954_v5  ;;  %v9103_v48 = vcombine.low %v9094_v38, %v9101_v31  ;;  %vm13215_vm13 = vcmp.le.f32.partialorder %v13214_v26, %v10423_v40 }
 0x28e   :  { %v9110_v11 = vrot.slane %v9102_v59, %v10270_v14  ;;  %v7650_v61 = vcombine.low %v6958_v17, %v6962_v22  ;;  %v7657_v19 = vrot.slane %v7647_v62, %v10270_v14  ;;  %v6544_v42 = vsel %vm13215_vm13, 1, %v13211_v13  ;;  %vm13216_vm14 = vmmov %vm13215_vm13 }
 0x28f   :  { %v7664_v46 = vrot.slane %v7648_v53, %v10270_v14  ;;  %v7671_v2 = vrot.slane %v7649_v1, %v10270_v14  ;;  %v9117_v16 = vrot.slane %v9103_v48, %v10270_v14  ;;  %v8406_v33 = vrot.slane %v8015_v9, %v10244_v63  ;;  %vm8000_vm1 = vmxor %vm13216_vm14, %vm9679_vm15 }
 0x290   :  { %v7678_v23 = vrot.slane %v7650_v61, %v10270_v14  ;;  %v8410_v7 = vrot.slane %v8015_v9, %v10247_v39  ;;  %v8414_v0 = vrot.slane %v8015_v9, %v10250_v36  ;;  %v8418_v44 = vrot.slane %v8015_v9, %v10253_v60 }
 0x291   :  { %v7679_v3 = vcombine.low %v7657_v19, %v7664_v46  ;;  %v9118_v47 = vcombine.low %v9110_v11, %v9117_v16  ;;  %v8422_v57 = vrot.slane %v8015_v9, %v10256_v30  ;;  %v8426_v37 = vrot.slane %v8015_v9, %v10259_v45  ;;  %v11686_v19 = vpop.xlane.xlu0 %249 }
 0x292   :  { %v7680_v6 = vcombine.low %v7671_v2, %v7678_v23  ;;  %v8430_v8 = vrot.slane %v8015_v9, %v10262_v52  ;;  %v8434_v58 = vrot.slane %v8015_v9, %v10265_v18  ;;  %v9119_v51 = vcombine.low %v8406_v33, %v8410_v7 }
 0x293   :  { %v7687_v4 = vrot.slane %v7679_v3, %v10270_v14  ;;  %9349 = vperm.xlu0 %9532, %v9118_v47   ;;  %v9120_v41 = vcombine.low %v8414_v0, %v8418_v44  ;;  %v9121_v54 = vcombine.low %v8422_v57, %v8426_v37  ;;  %v6966_v25 = vrot.slane %v6544_v42, %v10244_v63 }
 0x294   :  { %v7694_v28 = vrot.slane %v7680_v6, %v10270_v14  ;;  %v9122_v12 = vcombine.low %v8430_v8, %v8434_v58  ;;  %v9129_v21 = vrot.slane %v9119_v51, %v10270_v14  ;;  %v6970_v49 = vrot.slane %v6544_v42, %v10247_v39 }
 0x295   :  { %v6974_v34 = vrot.slane %v6544_v42, %v10250_v36  ;;  %v9136_v43 = vrot.slane %v9120_v41, %v10270_v14  ;;  %v9143_v35 = vrot.slane %v9121_v54, %v10270_v14  ;;  %v6978_v50 = vrot.slane %v6544_v42, %v10253_v60  ;;  %v11699_v37 = vpop.xlane.xlu0 %374 }
 0x296   :  { %v7695_v56 = vcombine.low %v7687_v4, %v7694_v28  ;;  %v9150_v10 = vrot.slane %v9122_v12, %v10270_v14  ;;  %v6982_v38 = vrot.slane %v6544_v42, %v10256_v30  ;;  %v6986_v15 = vrot.slane %v6544_v42, %v10259_v45 }
 0x297   :  { %v6990_v5 = vrot.slane %v6544_v42, %v10262_v52  ;;  %v9151_v31 = vcombine.low %v9129_v21, %v9136_v43  ;;  %v6994_v59 = vrot.slane %v6544_v42, %v10265_v18  ;;  %v7696_v17 = vcombine.low %v6966_v25, %v6970_v49 }
 0x298   :  { %7880 = vperm.xlu1 %9531, %v7695_v56   ;;  %v7697_v22 = vcombine.low %v6974_v34, %v6978_v50  ;;  %v8016_v9 = vsel %vm8000_vm1, 1, %v13211_v13  ;;  %v9152_v62 = vcombine.low %v9143_v35, %v9150_v10  ;;  %v7698_v53 = vcombine.low %v6982_v38, %v6986_v15  ;;  %v11716_v10 = vpop.xlane.xlu1 %389 }
 0x299   :  { %v9159_v1 = vrot.slane %v9151_v31, %v10270_v14  ;;  %v7699_v48 = vcombine.low %v6990_v5, %v6994_v59  ;;  %v7706_v11 = vrot.slane %v7696_v17, %v10270_v14  ;;  %v8003_v29 = vsel %vm7987_vm2, 1, %v13211_v13  ;;  %v11718_v38 = vpop.xlane.xlu0 %434 }
 0x29a   :  { %v7713_v61 = vrot.slane %v7697_v22, %v10270_v14  ;;  %v9166_v46 = vrot.slane %v9152_v62, %v10270_v14  ;;  %v7720_v2 = vrot.slane %v7698_v53, %v10270_v14  ;;  %v8438_v16 = vrot.slane %v8016_v9, %v10244_v63 }
 0x29b   :  { %v7727_v26 = vrot.slane %v7699_v48, %v10270_v14  ;;  %v8442_v23 = vrot.slane %v8016_v9, %v10247_v39  ;;  %v8446_v3 = vrot.slane %v8016_v9, %v10250_v36  ;;  %v8450_v7 = vrot.slane %v8016_v9, %v10253_v60 }
 0x29c   :  { %v7728_v42 = vcombine.low %v7706_v11, %v7713_v61  ;;  %v9167_v33 = vcombine.low %v9159_v1, %v9166_v46  ;;  %v8454_v0 = vrot.slane %v8016_v9, %v10256_v30  ;;  %v8458_v6 = vrot.slane %v8016_v9, %v10259_v45  ;;  %v13217_v46 = vld [vmem:[#allocation17_spill] sm:$0xff] }
 0x29d   :  { %v7729_v44 = vcombine.low %v7720_v2, %v7727_v26  ;;  %v8462_v57 = vrot.slane %v8016_v9, %v10262_v52  ;;  %v8466_v4 = vrot.slane %v8016_v9, %v10265_v18  ;;  %v9168_v8 = vcombine.low %v8438_v16, %v8442_v23 }
 0x29e   :  { %v7736_v47 = vrot.slane %v7728_v42, %v10270_v14  ;;  %9352 = vperm.xlu0 %9532, %v9167_v33   ;;  %v9169_v58 = vcombine.low %v8446_v3, %v8450_v7  ;;  %v8022_v51 = vrot.slane %v8003_v29, %v10244_v63  ;;  %v9170_v41 = vcombine.low %v8454_v0, %v8458_v6  ;;  %v11742_v0 = vpop.xlane.xlu1 %404 }
 0x29f   :  { %v7743_v28 = vrot.slane %v7729_v44, %v10270_v14  ;;  %v8026_v54 = vrot.slane %v8003_v29, %v10247_v39  ;;  %v8030_v25 = vrot.slane %v8003_v29, %v10250_v36  ;;  %v9171_v12 = vcombine.low %v8462_v57, %v8466_v4  ;;  %v11744_v44 = vpop.xlane.xlu0 %464 }
 0x2a0   :  { %v9178_v21 = vrot.slane %v9168_v8, %v10270_v14  ;;  %v9185_v49 = vrot.slane %v9169_v58, %v10270_v14  ;;  %v8034_v34 = vrot.slane %v8003_v29, %v10253_v60  ;;  %v9192_v43 = vrot.slane %v9170_v41, %v10270_v14 }
 0x2a1   :  { %v7744_v56 = vcombine.low %v7736_v47, %v7743_v28  ;;  %v8038_v35 = vrot.slane %v8003_v29, %v10256_v30  ;;  %v8042_v50 = vrot.slane %v8003_v29, %v10259_v45  ;;  %v9199_v15 = vrot.slane %v9171_v12, %v10270_v14 }
 0x2a2   :  { %v9200_v5 = vcombine.low %v9178_v21, %v9185_v49  ;;  %v8046_v31 = vrot.slane %v8003_v29, %v10262_v52  ;;  %v8050_v59 = vrot.slane %v8003_v29, %v10265_v18  ;;  %v8531_v32 = vcombine.low %v8022_v51, %v8026_v54 }
 0x2a3   :  { %7883 = vperm.xlu1 %9531, %v7744_v56   ;;  %v8532_v17 = vcombine.low %v8030_v25, %v8034_v34  ;;  %v8533_v22 = vcombine.low %v8038_v35, %v8042_v50  ;;  %v8005_v9 = vsel %vm7989_vm3, 1, %v13211_v13  ;;  %v9201_v62 = vcombine.low %v9192_v43, %v9199_v15 }
 0x2a4   :  { %v9208_v53 = vrot.slane %v9200_v5, %v10270_v14  ;;  %v8534_v1 = vcombine.low %v8046_v31, %v8050_v59  ;;  %v8541_v48 = vrot.slane %v8531_v32, %v10270_v14  ;;  %v5126_v2 = vrot.slane %v13217_v46, %v10244_v63 }
 0x2a5   :  { %v8548_v11 = vrot.slane %v8532_v17, %v10270_v14  ;;  %v8555_v61 = vrot.slane %v8533_v22, %v10270_v14  ;;  %v9215_v29 = vrot.slane %v9201_v62, %v10270_v14  ;;  %v5130_v42 = vrot.slane %v13217_v46, %v10247_v39  ;;  %v11764_v17 = vpop.xlane.xlu1 %419  ;;  %v11766_v22 = vpop.xlane.xlu0 %494 }
 0x2a6   :  { %v8562_v26 = vrot.slane %v8534_v1, %v10270_v14  ;;  %v5134_v16 = vrot.slane %v13217_v46, %v10250_v36  ;;  %v5138_v33 = vrot.slane %v13217_v46, %v10253_v60  ;;  %v5142_v3 = vrot.slane %v13217_v46, %v10256_v30 }
 0x2a7   :  { %v8563_v23 = vcombine.low %v8541_v48, %v8548_v11  ;;  %v5146_v7 = vrot.slane %v13217_v46, %v10259_v45  ;;  %v9216_v47 = vcombine.low %v9208_v53, %v9215_v29  ;;  %v5150_v57 = vrot.slane %v13217_v46, %v10262_v52  ;;  %v13218_v29 = vld [vmem:[#allocation16_spill] sm:$0xff] }
 0x2a8   :  { %v8564_v6 = vcombine.low %v8555_v61, %v8562_v26  ;;  %v5154_v4 = vrot.slane %v13217_v46, %v10265_v18  ;;  %v5652_v58 = vcombine.low %v5126_v2, %v5130_v42  ;;  %v5653_v51 = vcombine.low %v5134_v16, %v5138_v33 }
 0x2a9   :  { %v8571_v8 = vrot.slane %v8563_v23, %v10270_v14  ;;  %v5654_v28 = vcombine.low %v5142_v3, %v5146_v7  ;;  %9355 = vperm.xlu0 %9532, %v9216_v47   ;;  %v8086_v25 = vrot.slane %v8005_v9, %v10244_v63  ;;  %v8090_v12 = vrot.slane %v8005_v9, %v10247_v39 }
 0x2aa   :  { %v8578_v41 = vrot.slane %v8564_v6, %v10270_v14  ;;  %v5655_v54 = vcombine.low %v5150_v57, %v5154_v4  ;;  %v5662_v21 = vrot.slane %v5652_v58, %v10270_v14  ;;  %v5669_v49 = vrot.slane %v5653_v51, %v10270_v14  ;;  %v11793_v58 = vpop.xlane.xlu1 %449  ;;  %v11795_v51 = vpop.xlane.xlu0 %524 }
 0x2ab   :  { %v5676_v34 = vrot.slane %v5654_v28, %v10270_v14  ;;  %v8094_v56 = vrot.slane %v8005_v9, %v10250_v36  ;;  %v8098_v50 = vrot.slane %v8005_v9, %v10253_v60  ;;  %v8102_v15 = vrot.slane %v8005_v9, %v10256_v30 }
 0x2ac   :  { %v8579_v43 = vcombine.low %v8571_v8, %v8578_v41  ;;  %v5683_v35 = vrot.slane %v5655_v54, %v10270_v14  ;;  %v5684_v5 = vcombine.low %v5662_v21, %v5669_v49  ;;  %v8106_v31 = vrot.slane %v8005_v9, %v10259_v45 }
 0x2ad   :  { %v8110_v59 = vrot.slane %v8005_v9, %v10262_v52  ;;  %v8114_v32 = vrot.slane %v8005_v9, %v10265_v18  ;;  %v8629_v53 = vcombine.low %v8086_v25, %v8090_v12  ;;  %v8630_v1 = vcombine.low %v8094_v56, %v8098_v50 }
 0x2ae   :  { %9316 = vperm.xlu1 %9531, %v8579_v43   ;;  %v5685_v62 = vcombine.low %v5676_v34, %v5683_v35  ;;  %v5692_v48 = vrot.slane %v5684_v5, %v10270_v14  ;;  %v8631_v11 = vcombine.low %v8102_v15, %v8106_v31  ;;  %v5190_v26 = vrot.slane %v13218_v29, %v10244_v63 }
 0x2af   :  { %v8632_v61 = vcombine.low %v8110_v59, %v8114_v32  ;;  %v8639_v9 = vrot.slane %v8629_v53, %v10270_v14  ;;  %v8646_v2 = vrot.slane %v8630_v1, %v10270_v14  ;;  %v5194_v55 = vrot.slane %v13218_v29, %v10247_v39 }
 0x2b0   :  { %v5699_v46 = vrot.slane %v5685_v62, %v10270_v14  ;;  %v8653_v42 = vrot.slane %v8631_v11, %v10270_v14  ;;  %v5198_v23 = vrot.slane %v13218_v29, %v10250_v36  ;;  %v8007_v33 = vsel %vm7991_vm5, 1, %v13211_v13 }
 0x2b1   :  { %v8660_v16 = vrot.slane %v8632_v61, %v10270_v14  ;;  %v8661_v7 = vcombine.low %v8639_v9, %v8646_v2  ;;  %v5202_v47 = vrot.slane %v13218_v29, %v10253_v60  ;;  %v5206_v57 = vrot.slane %v13218_v29, %v10256_v30  ;;  %v11815_v9 = vpop.xlane.xlu0 %554 }
 0x2b2   :  { %v5700_v3 = vcombine.low %v5692_v48, %v5699_v46  ;;  %v5210_v4 = vrot.slane %v13218_v29, %v10259_v45  ;;  %v5214_v8 = vrot.slane %v13218_v29, %v10262_v52  ;;  %v5218_v41 = vrot.slane %v13218_v29, %v10265_v18  ;;  %v11813_v46 = vpop.xlane.xlu1 %479 }
 0x2b3   :  { %v8662_v6 = vcombine.low %v8653_v42, %v8660_v16  ;;  %v8669_v28 = vrot.slane %v8661_v7, %v10270_v14  ;;  %v5750_v54 = vcombine.low %v5190_v26, %v5194_v55  ;;  %v5751_v25 = vcombine.low %v5198_v23, %v5202_v47 }
 0x2b4   :  { %6391 = vperm.xlu0 %9532, %v5700_v3   ;;  %v5752_v21 = vcombine.low %v5206_v57, %v5210_v4  ;;  %v8150_v49 = vrot.slane %v8007_v33, %v10244_v63  ;;  %v8154_v34 = vrot.slane %v8007_v33, %v10247_v39  ;;  %v5753_v56 = vcombine.low %v5214_v8, %v5218_v41  ;;  %v13219_v3 = vld [vmem:[#allocation18_spill] sm:$0xff] }
 0x2b5   :  { %v8676_v12 = vrot.slane %v8662_v6, %v10270_v14  ;;  %v5760_v43 = vrot.slane %v5750_v54, %v10270_v14  ;;  %v5767_v35 = vrot.slane %v5751_v25, %v10270_v14  ;;  %v8158_v50 = vrot.slane %v8007_v33, %v10250_v36 }
 0x2b6   :  { %v5774_v5 = vrot.slane %v5752_v21, %v10270_v14  ;;  %v8162_v31 = vrot.slane %v8007_v33, %v10253_v60  ;;  %v8166_v59 = vrot.slane %v8007_v33, %v10256_v30  ;;  %v5781_v32 = vrot.slane %v5753_v56, %v10270_v14 }
 0x2b7   :  { %v8677_v15 = vcombine.low %v8669_v28, %v8676_v12  ;;  %v5782_v62 = vcombine.low %v5760_v43, %v5767_v35  ;;  %v8170_v53 = vrot.slane %v8007_v33, %v10259_v45  ;;  %v8174_v1 = vrot.slane %v8007_v33, %v10262_v52 }
 0x2b8   :  { %v8178_v48 = vrot.slane %v8007_v33, %v10265_v18  ;;  %v8727_v11 = vcombine.low %v8150_v49, %v8154_v34  ;;  %v8728_v61 = vcombine.low %v8158_v50, %v8162_v31  ;;  %v5783_v2 = vcombine.low %v5774_v5, %v5781_v32  ;;  %v11841_v49 = vpop.xlane.xlu1 %509  ;;  %v11843_v34 = vpop.xlane.xlu0 %584  ;;  %v13220_v50 = vld [vmem:[#allocation15_spill] sm:$0xff] }
 0x2b9   :  { %9322 = vperm.xlu1 %9531, %v8677_v15   ;;  %v5790_v29 = vrot.slane %v5782_v62, %v10270_v14  ;;  %v8729_v26 = vcombine.low %v8166_v59, %v8170_v53  ;;  %9653 = vlog2.f32 %v10394_v20  ;;  %v5254_v7 = vrot.slane %v13219_v3, %v10244_v63 }
 0x2ba   :  { %v8730_v42 = vcombine.low %v8174_v1, %v8178_v48  ;;  %v8737_v16 = vrot.slane %v8727_v11, %v10270_v14  ;;  %v8744_v55 = vrot.slane %v8728_v61, %v10270_v14  ;;  %v5797_v23 = vrot.slane %v5783_v2, %v10270_v14 }
 0x2bb   :  { %v8751_v33 = vrot.slane %v8729_v26, %v10270_v14  ;;  %v5258_v47 = vrot.slane %v13219_v3, %v10247_v39  ;;  %v5262_v20 = vrot.slane %v13219_v3, %v10250_v36  ;;  %v5266_v8 = vrot.slane %v13219_v3, %v10253_v60 }
 0x2bc   :  { %v8758_v6 = vrot.slane %v8730_v42, %v10270_v14  ;;  %v8759_v57 = vcombine.low %v8737_v16, %v8744_v55  ;;  %v5798_v4 = vcombine.low %v5790_v29, %v5797_v23  ;;  %v5270_v28 = vrot.slane %v13219_v3, %v10256_v30  ;;  %v11862_v26 = vpop.permute.xlu0 %3450 }
 0x2bd   :  { %v5274_v41 = vrot.slane %v13219_v3, %v10259_v45  ;;  %v5278_v12 = vrot.slane %v13219_v3, %v10262_v52  ;;  %v5282_v21 = vrot.slane %v13219_v3, %v10265_v18  ;;  %v5848_v56 = vcombine.low %v5254_v7, %v5258_v47  ;;  %13221 = vst [vmem:[#allocation39_spill] sm:$0xff] %v11862_v26 }
 0x2be   :  { %v8760_v54 = vcombine.low %v8751_v33, %v8758_v6  ;;  %v8767_v25 = vrot.slane %v8759_v57, %v10270_v14  ;;  %6397 = vperm.xlu0 %9532, %v5798_v4   ;;  %v5849_v43 = vcombine.low %v5262_v20, %v5266_v8  ;;  %v5094_v15 = vrot.slane %v13220_v50, %v10244_v63  ;;  %v11868_v6 = vpop.xlane.xlu1 %539 }
 0x2bf   :  { %v5850_v35 = vcombine.low %v5270_v28, %v5274_v41  ;;  %v5851_v31 = vcombine.low %v5278_v12, %v5282_v21  ;;  %v5098_v59 = vrot.slane %v13220_v50, %v10247_v39  ;;  %v5102_v32 = vrot.slane %v13220_v50, %v10250_v36  ;;  %v13222_v12 = vld [vmem:[#allocation37_spill] sm:$0xff] }
 0x2c0   :  { %v8774_v5 = vrot.slane %v8760_v54, %v10270_v14  ;;  %v5858_v62 = vrot.slane %v5848_v56, %v10270_v14  ;;  %v5865_v53 = vrot.slane %v5849_v43, %v10270_v14  ;;  %v5106_v48 = vrot.slane %v13220_v50, %v10253_v60 }
 0x2c1   :  { %v5872_v1 = vrot.slane %v5850_v35, %v10270_v14  ;;  %v5879_v61 = vrot.slane %v5851_v31, %v10270_v14  ;;  %v5110_v2 = vrot.slane %v13220_v50, %v10256_v30  ;;  %v5114_v29 = vrot.slane %v13220_v50, %v10259_v45  ;;  %v11884_v35 = vpop.permute.xlu0 %3459 }
 0x2c2   :  { %v8775_v11 = vcombine.low %v8767_v25, %v8774_v5  ;;  %v5880_v42 = vcombine.low %v5858_v62, %v5865_v53  ;;  %v5118_v16 = vrot.slane %v13220_v50, %v10262_v52  ;;  %v5122_v55 = vrot.slane %v13220_v50, %v10265_v18  ;;  %13223 = vst [vmem:[#allocation17_spill] sm:$0xff] %v11884_v35 }
 0x2c3   :  { %v5603_v23 = vcombine.low %v5094_v15, %v5098_v59  ;;  %v9654_v33 = vpop.eup %9653  ;;  %v5881_v3 = vcombine.low %v5872_v1, %v5879_v61  ;;  %v5604_v7 = vcombine.low %v5102_v32, %v5106_v48  ;;  %v5605_v47 = vcombine.low %v5110_v2, %v5114_v29 }
 0x2c4   :  { %9328 = vperm.xlu1 %9531, %v8775_v11   ;;  %v5888_v57 = vrot.slane %v5880_v42, %v10270_v14  ;;  %v5606_v20 = vcombine.low %v5118_v16, %v5122_v55  ;;  %v313_v8 = vmul.f32 %v10942_v24, %v11660_v27  ;;  %v5286_v21 = vrot.slane %v13222_v12, %v10244_v63  ;;  %v11899_v11 = vpop.xlane.xlu1 %569  ;;  %v13224_v42 = vld [vmem:[#allocation32_spill] sm:$0xff] }
 0x2c5   :  { %v5613_v4 = vrot.slane %v5603_v23, %v10270_v14  ;;  %v5895_v28 = vrot.slane %v5881_v3, %v10270_v14  ;;  %v5620_v41 = vrot.slane %v5604_v7, %v10270_v14  ;;  %v5627_v54 = vrot.slane %v5605_v47, %v10270_v14 }
 0x2c6   :  { %v5634_v25 = vrot.slane %v5606_v20, %v10270_v14  ;;  %v5290_v56 = vrot.slane %v13222_v12, %v10247_v39  ;;  %v5294_v43 = vrot.slane %v13222_v12, %v10250_v36  ;;  %v296_v24 = vmul.f32 0.6931472, %v9654_v33 }
 0x2c7   :  { %v5896_v27 = vcombine.low %v5888_v57, %v5895_v28  ;;  %v5635_v50 = vcombine.low %v5613_v4, %v5620_v41  ;;  %v5298_v15 = vrot.slane %v13222_v12, %v10253_v60  ;;  %v5302_v31 = vrot.slane %v13222_v12, %v10256_v30  ;;  %v11913_v4 = vpop.permute.xlu0 %3465 }
 0x2c8   :  { %v5636_v5 = vcombine.low %v5627_v54, %v5634_v25  ;;  %v5306_v59 = vrot.slane %v13222_v12, %v10259_v45  ;;  %v5310_v32 = vrot.slane %v13222_v12, %v10262_v52  ;;  %v11894_v62 = vsub.f32 %v296_v24, %v313_v8  ;;  %13225 = vst [vmem:[#allocation16_spill] sm:$0xff] %v11913_v4 }
 0x2c9   :  { %6403 = vperm.xlu0 %9532, %v5896_v27   ;;  %v5643_v53 = vrot.slane %v5635_v50, %v10270_v14  ;;  %v5314_v1 = vrot.slane %v13222_v12, %v10265_v18  ;;  %v5897_v48 = vcombine.low %v5286_v21, %v5290_v56  ;;  %v5898_v2 = vcombine.low %v5294_v43, %v5298_v15  ;;  %v11925_v27 = vpop.xlane.xlu1 %599 }
 0x2ca   :  { %v5650_v61 = vrot.slane %v5636_v5, %v10270_v14  ;;  %v5899_v29 = vcombine.low %v5302_v31, %v5306_v59  ;;  %v5158_v16 = vrot.slane %v13224_v42, %v10244_v63  ;;  %v5162_v33 = vrot.slane %v13224_v42, %v10247_v39 }
 0x2cb   :  { %v5900_v55 = vcombine.low %v5310_v32, %v5314_v1  ;;  %v5907_v23 = vrot.slane %v5897_v48, %v10270_v14  ;;  %v5166_v3 = vrot.slane %v13224_v42, %v10250_v36  ;;  %v5914_v47 = vrot.slane %v5898_v2, %v10270_v14  ;;  %v13226_v48 = vld [vmem:[#allocation34_spill] sm:$0xff]  ;;  %v11935_v2 = vpop.permute.xlu0 %3468 }
 0x2cc   :  { %v5651_v7 = vcombine.low %v5643_v53, %v5650_v61  ;;  %v5921_v57 = vrot.slane %v5899_v29, %v10270_v14  ;;  %v5170_v20 = vrot.slane %v13224_v42, %v10253_v60  ;;  %v5174_v28 = vrot.slane %v13224_v42, %v10256_v30  ;;  %13227 = vst [vmem:[#allocation18_spill] sm:$0xff] %v11935_v2 }
 0x2cd   :  { %v5928_v8 = vrot.slane %v5900_v55, %v10270_v14  ;;  %v5178_v41 = vrot.slane %v13224_v42, %v10259_v45  ;;  %v5182_v54 = vrot.slane %v13224_v42, %v10262_v52  ;;  %v5929_v25 = vcombine.low %v5907_v23, %v5914_v47 }
 0x2ce   :  { %6388 = vperm.xlu1 %9531, %v5651_v7   ;;  %v5186_v12 = vrot.slane %v13224_v42, %v10265_v18  ;;  %v5701_v21 = vcombine.low %v5158_v16, %v5162_v33  ;;  %v5702_v56 = vcombine.low %v5166_v3, %v5170_v20  ;;  %9655 = vtanh.f32 %v11894_v62  ;;  %v11939_v16 = vpop.permute.xlu1 %3447 }
 0x2cf   :  { %v5930_v43 = vcombine.low %v5921_v57, %v5928_v8  ;;  %v5703_v24 = vcombine.low %v5174_v28, %v5178_v41  ;;  %v5937_v50 = vrot.slane %v5929_v25, %v10270_v14  ;;  %v5318_v61 = vrot.slane %v13226_v48, %v10244_v63  ;;  %v13228_v25 = vld [vmem:[#allocation35_spill] sm:$0xff] }
 0x2d0   :  { %v5704_v15 = vcombine.low %v5182_v54, %v5186_v12  ;;  %v5711_v5 = vrot.slane %v5701_v21, %v10270_v14  ;;  %v5718_v31 = vrot.slane %v5702_v56, %v10270_v14  ;;  %v5322_v42 = vrot.slane %v13226_v48, %v10247_v39 }
 0x2d1   :  { %v5944_v59 = vrot.slane %v5930_v43, %v10270_v14  ;;  %v5725_v32 = vrot.slane %v5703_v24, %v10270_v14  ;;  %v5326_v33 = vrot.slane %v13226_v48, %v10250_v36  ;;  %v5330_v3 = vrot.slane %v13226_v48, %v10253_v60 }
 0x2d2   :  { %v5732_v53 = vrot.slane %v5704_v15, %v10270_v14  ;;  %v5733_v1 = vcombine.low %v5711_v5, %v5718_v31  ;;  %v5334_v7 = vrot.slane %v13226_v48, %v10256_v30  ;;  %v5338_v47 = vrot.slane %v13226_v48, %v10259_v45 }
 0x2d3   :  { %v5945_v29 = vcombine.low %v5937_v50, %v5944_v59  ;;  %v5342_v20 = vrot.slane %v13226_v48, %v10262_v52  ;;  %v5346_v8 = vrot.slane %v13226_v48, %v10265_v18  ;;  %v5946_v28 = vcombine.low %v5318_v61, %v5322_v42  ;;  %v11960_v50 = vpop.permute.xlu0 %3471 }
 0x2d4   :  { %v5734_v55 = vcombine.low %v5725_v32, %v5732_v53  ;;  %v5741_v23 = vrot.slane %v5733_v1, %v10270_v14  ;;  %v5947_v41 = vcombine.low %v5326_v33, %v5330_v3  ;;  %v5948_v54 = vcombine.low %v5334_v7, %v5338_v47  ;;  %13229 = vst [vmem:[#allocation15_spill] sm:$0xff] %v11960_v50  ;;  %v11968_v53 = vpop.permute.xlu1 %3453 }
 0x2d5   :  { %6406 = vperm.xlu0 %9532, %v5945_v29   ;;  %v5222_v12 = vrot.slane %v13228_v25, %v10244_v63  ;;  %v5949_v56 = vcombine.low %v5342_v20, %v5346_v8  ;;  %v5956_v43 = vrot.slane %v5946_v28, %v10270_v14  ;;  %v5226_v24 = vrot.slane %v13228_v25, %v10247_v39 }
 0x2d6   :  { %v5748_v57 = vrot.slane %v5734_v55, %v10270_v14  ;;  %v5963_v5 = vrot.slane %v5947_v41, %v10270_v14  ;;  %v5970_v31 = vrot.slane %v5948_v54, %v10270_v14  ;;  %v5230_v59 = vrot.slane %v13228_v25, %v10250_v36 }
 0x2d7   :  { %v5234_v32 = vrot.slane %v13228_v25, %v10253_v60  ;;  %v5977_v1 = vrot.slane %v5949_v56, %v10270_v14  ;;  %v5238_v48 = vrot.slane %v13228_v25, %v10256_v30  ;;  %v5242_v61 = vrot.slane %v13228_v25, %v10259_v45  ;;  %v13231_v56 = vld [vmem:[#allocation40_spill] sm:$0xff] }
 0x2d8   :  { %v5749_v21 = vcombine.low %v5741_v23, %v5748_v57  ;;  %v9656_v15 = vpop.eup %9655  ;;  %v5246_v29 = vrot.slane %v13228_v25, %v10262_v52  ;;  %v5978_v42 = vcombine.low %v5956_v43, %v5963_v5  ;;  %v5250_v55 = vrot.slane %v13228_v25, %v10265_v18  ;;  %v11994_v5 = vpop.permute.xlu1 %3456 }
 0x2d9   :  { %v5799_v23 = vcombine.low %v5222_v12, %v5226_v24  ;;  %v5800_v33 = vcombine.low %v5230_v59, %v5234_v32  ;;  %v5057_v3 = vsub.f32 1.0, %v9656_v15  ;;  %v5979_v7 = vcombine.low %v5970_v31, %v5977_v1  ;;  %13232 = vst [vmem:[#allocation32_spill] sm:$0xff] %v11994_v5 }
 0x2da   :  { %6394 = vperm.xlu1 %9531, %v5749_v21   ;;  %v5801_v47 = vcombine.low %v5238_v48, %v5242_v61  ;;  %v5986_v57 = vrot.slane %v5978_v42, %v10270_v14  ;;  %v5802_v20 = vcombine.low %v5246_v29, %v5250_v55  ;;  %v11984_v21 = vpop.permute.xlu0 %3474  ;;  %vm2100_vm7 = vcmp.le.f32.partialorder %v11894_v62, %v10423_v40 }
 0x2db   :  { %v5809_v8 = vrot.slane %v5799_v23, %v10270_v14  ;;  %v5816_v28 = vrot.slane %v5800_v33, %v10270_v14  ;;  %v5993_v41 = vrot.slane %v5979_v7, %v10270_v14  ;;  %13230 = vst [vmem:[#allocation37_spill] sm:$0xff] %v11984_v21  ;;  %v5350_v43 = vrot.slane %v13231_v56, %v10244_v63  ;;  %vm8001_vm0 = vmxor %vm2100_vm7, %vm9679_vm15 }
 0x2dc   :  { %v5823_v54 = vrot.slane %v5801_v47, %v10270_v14  ;;  %v5830_v25 = vrot.slane %v5802_v20, %v10270_v14  ;;  %v5073_v24 = vsel %vm2100_vm7, %v5057_v3, %v9656_v15  ;;  %v5354_v59 = vrot.slane %v13231_v56, %v10247_v39  ;;  %v13233_v3 = vld [vmem:[#allocation19_spill] sm:$0xff] }
 0x2dd   :  { %v5831_v12 = vcombine.low %v5809_v8, %v5816_v28  ;;  %v5994_v31 = vcombine.low %v5986_v57, %v5993_v41  ;;  %v5358_v48 = vrot.slane %v13231_v56, %v10250_v36  ;;  %v5362_v61 = vrot.slane %v13231_v56, %v10253_v60 }
 0x2de   :  { %v5832_v32 = vcombine.low %v5823_v54, %v5830_v25  ;;  %v5366_v29 = vrot.slane %v13231_v56, %v10256_v30  ;;  %v5370_v15 = vrot.slane %v13231_v56, %v10259_v45  ;;  %v5374_v55 = vrot.slane %v13231_v56, %v10262_v52  ;;  %v12014_v8 = vpop.permute.xlu0 %3477 }
 0x2df   :  { %v5839_v1 = vrot.slane %v5831_v12, %v10270_v14  ;;  %6409 = vperm.xlu0 %9532, %v5994_v31   ;;  %v5378_v23 = vrot.slane %v13231_v56, %v10265_v18  ;;  %v5995_v33 = vcombine.low %v5350_v43, %v5354_v59  ;;  %v377_v7 = vcvt.f32.s32 %v13233_v3  ;;  %13234 = vst [vmem:[#allocation34_spill] sm:$0xff] %v12014_v8  ;;  %v12018_v12 = vpop.permute.xlu1 %3462 }
 0x2e0   :  { %v5846_v42 = vrot.slane %v5832_v32, %v10270_v14  ;;  %v5996_v47 = vcombine.low %v5358_v48, %v5362_v61  ;;  %v5997_v57 = vcombine.low %v5366_v29, %v5370_v15  ;;  %v5542_v20 = vrot.slane %v5073_v24, %v10244_v63  ;;  %13235 = vst [vmem:[#allocation35_spill] sm:$0xff] %v12018_v12  ;;  %v13248_v12 = vld [vmem:[#allocation23_spill] sm:$0xff] }
 0x2e1   :  { %v5998_v41 = vcombine.low %v5374_v55, %v5378_v23  ;;  %v6005_v54 = vrot.slane %v5995_v33, %v10270_v14  ;;  %v5546_v25 = vrot.slane %v5073_v24, %v10247_v39  ;;  %v5550_v43 = vrot.slane %v5073_v24, %v10250_v36 }
 0x2e2   :  { %v5847_v28 = vcombine.low %v5839_v1, %v5846_v42  ;;  %v6012_v31 = vrot.slane %v5996_v47, %v10270_v14  ;;  %v6019_v56 = vrot.slane %v5997_v57, %v10270_v14  ;;  %v5554_v59 = vrot.slane %v5073_v24, %v10253_v60 }
 0x2e3   :  { %v6026_v32 = vrot.slane %v5998_v41, %v10270_v14  ;;  %v5558_v1 = vrot.slane %v5073_v24, %v10256_v30  ;;  %v5562_v48 = vrot.slane %v5073_v24, %v10259_v45  ;;  %v5566_v61 = vrot.slane %v5073_v24, %v10262_v52  ;;  %v12036_v41 = vpop.permute.xlu1 %3492 }
 0x2e4   :  { %6400 = vperm.xlu1 %9531, %v5847_v28   ;;  %v6027_v29 = vcombine.low %v6005_v54, %v6012_v31  ;;  %v5570_v15 = vrot.slane %v5073_v24, %v10265_v18  ;;  %v6289_v42 = vcombine.low %v5542_v20, %v5546_v25  ;;  %v6290_v55 = vcombine.low %v5550_v43, %v5554_v59  ;;  %v12038_v54 = vpop.permute.xlu0 %3480  ;;  %v13238_v31 = vld [vmem:[#allocation36_spill] sm:$0xff] }
 0x2e5   :  { %v6028_v23 = vcombine.low %v6019_v56, %v6026_v32  ;;  %v6291_v33 = vcombine.low %v5558_v1, %v5562_v48  ;;  %13236 = vst [vmem:[#allocation40_spill] sm:$0xff] %v12036_v41  ;;  %13237 = vst [vmem:[#allocation19_spill] sm:$0xff] %v12038_v54  ;;  %v12040_v24 = vshll.u32 %v377_v7, 16  ;;  %v5382_v56 = vrot.slane %v13238_v31, %v10244_v63 }
 0x2e6   :  { %v6035_v3 = vrot.slane %v6027_v29, %v10270_v14  ;;  %v6292_v47 = vcombine.low %v5566_v61, %v5570_v15  ;;  %v6299_v57 = vrot.slane %v6289_v42, %v10270_v14  ;;  %v6306_v28 = vrot.slane %v6290_v55, %v10270_v14 }
 0x2e7   :  { %v6042_v20 = vrot.slane %v6028_v23, %v10270_v14  ;;  %v6313_v25 = vrot.slane %v6291_v33, %v10270_v14  ;;  %v5386_v32 = vrot.slane %v13238_v31, %v10247_v39  ;;  %v5390_v1 = vrot.slane %v13238_v31, %v10250_v36  ;;  %v13239_v33 = vld [vmem:[#allocation21_spill] sm:$0xff] }
 0x2e8   :  { %v6320_v43 = vrot.slane %v6292_v47, %v10270_v14  ;;  %v6321_v59 = vcombine.low %v6299_v57, %v6306_v28  ;;  %v8017_v48 = vsel %vm8001_vm0, 1, %v13211_v13  ;;  %v5394_v61 = vrot.slane %v13238_v31, %v10253_v60  ;;  %v12069_v54 = vpop.permute.xlu0 %3483 }
 0x2e9   :  { %v6043_v7 = vcombine.low %v6035_v3, %v6042_v20  ;;  %v5398_v29 = vrot.slane %v13238_v31, %v10256_v30  ;;  %v5402_v55 = vrot.slane %v13238_v31, %v10259_v45  ;;  %v5406_v23 = vrot.slane %v13238_v31, %v10262_v52  ;;  %13240 = vst [vmem:[#allocation36_spill] sm:$0xff] %v12069_v54 }
 0x2ea   :  { %v6322_v15 = vcombine.low %v6313_v25, %v6320_v43  ;;  %v6329_v42 = vrot.slane %v6321_v59, %v10270_v14  ;;  %v392_v47 = vcvt.f32.s32 %v13239_v33  ;;  %v5410_v3 = vrot.slane %v13238_v31, %v10265_v18  ;;  %v12067_v59 = vpop.permute.xlu1 %4901 }
 0x2eb   :  { %6412 = vperm.xlu0 %9532, %v6043_v7   ;;  %v6044_v57 = vcombine.low %v5382_v56, %v5386_v32  ;;  %v6045_v28 = vcombine.low %v5390_v1, %v5394_v61  ;;  %v6046_v41 = vcombine.low %v5398_v29, %v5402_v55  ;;  %v8470_v25 = vrot.slane %v8017_v48, %v10244_v63 }
 0x2ec   :  { %v6336_v20 = vrot.slane %v6322_v15, %v10270_v14  ;;  %v8474_v43 = vrot.slane %v8017_v48, %v10247_v39  ;;  %v6047_v8 = vcombine.low %v5406_v23, %v5410_v3  ;;  %v8478_v31 = vrot.slane %v8017_v48, %v10250_v36 }
 0x2ed   :  { %v6054_v33 = vrot.slane %v6044_v57, %v10270_v14  ;;  %v6061_v7 = vrot.slane %v6045_v28, %v10270_v14  ;;  %v6068_v32 = vrot.slane %v6046_v41, %v10270_v14  ;;  %v8482_v1 = vrot.slane %v8017_v48, %v10253_v60 }
 0x2ee   :  { %v6337_v56 = vcombine.low %v6329_v42, %v6336_v20  ;;  %v8486_v61 = vrot.slane %v8017_v48, %v10256_v30  ;;  %v6075_v29 = vrot.slane %v6047_v8, %v10270_v14  ;;  %v8490_v55 = vrot.slane %v8017_v48, %v10259_v45  ;;  %v13241_v20 = vld [vmem:[#allocation20_spill] sm:$0xff]  ;;  %v12086_v4 = vpop.permute.xlu1 %4913 }
 0x2ef   :  { %v6076_v15 = vcombine.low %v6054_v33, %v6061_v7  ;;  %v8494_v23 = vrot.slane %v8017_v48, %v10262_v52  ;;  %v391_v3 = vcvt.f32.s32 %v11716_v10  ;;  %v8498_v57 = vrot.slane %v8017_v48, %v10265_v18  ;;  %13242 = vst [vmem:[#allocation21_spill] sm:$0xff] %v12086_v4  ;;  %v12088_v10 = vpop.permute.xlu0 %3486 }
 0x2f0   :  { %6430 = vperm.xlu1 %9531, %v6337_v56   ;;  %v9217_v28 = vcombine.low %v8470_v25, %v8474_v43  ;;  %v9218_v42 = vcombine.low %v8478_v31, %v8482_v1  ;;  %v407_v41 = vcvt.f32.s32 %v13241_v20  ;;  %v6077_v54 = vcombine.low %v6068_v32, %v6075_v29  ;;  %13243 = vst [vmem:[#allocation20_spill] sm:$0xff] %v12088_v10  ;;  %v13244_v43 = vld [vmem:[#allocation42_spill] sm:$0xff] }
 0x2f1   :  { %v6084_v21 = vrot.slane %v6076_v15, %v10270_v14  ;;  %v9219_v50 = vcombine.low %v8486_v61, %v8490_v55  ;;  %v393_v2 = vshll.u32 %v392_v47, 16  ;;  %v9220_v8 = vcombine.low %v8494_v23, %v8498_v57  ;;  %v13245_v55 = vld [vmem:[#allocation22_spill] sm:$0xff] }
 0x2f2   :  { %v9227_v33 = vrot.slane %v9217_v28, %v10270_v14  ;;  %v9234_v7 = vrot.slane %v9218_v42, %v10270_v14  ;;  %v6091_v48 = vrot.slane %v6077_v54, %v10270_v14  ;;  %v5414_v31 = vrot.slane %v13244_v43, %v10244_v63 }
 0x2f3   :  { %v9241_v25 = vrot.slane %v9219_v50, %v10270_v14  ;;  %v5418_v56 = vrot.slane %v13244_v43, %v10247_v39  ;;  %v394_v47 = vadd.s32 %v393_v2, %v391_v3  ;;  %v9248_v32 = vrot.slane %v9220_v8, %v10270_v14 }
 0x2f4   :  { %v9249_v1 = vcombine.low %v9227_v33, %v9234_v7  ;;  %v5422_v61 = vrot.slane %v13244_v43, %v10250_v36  ;;  %v6092_v29 = vcombine.low %v6084_v21, %v6091_v48  ;;  %v5426_v15 = vrot.slane %v13244_v43, %v10253_v60 }
 0x2f5   :  { %v5430_v50 = vrot.slane %v13244_v43, %v10256_v30  ;;  %v5434_v54 = vrot.slane %v13244_v43, %v10259_v45  ;;  %v437_v23 = vcvt.f32.s32 %v13245_v55  ;;  %v9250_v57 = vcombine.low %v9241_v25, %v9248_v32  ;;  %v12115_v25 = vpop.permute.xlu1 %4919  ;;  %v12117_v32 = vpop.permute.xlu0 %3489 }
 0x2f6   :  { %v9257_v2 = vrot.slane %v9249_v1, %v10270_v14  ;;  %v5438_v3 = vrot.slane %v13244_v43, %v10262_v52  ;;  %6415 = vperm.xlu0 %9532, %v6092_v29   ;;  %v5442_v21 = vrot.slane %v13244_v43, %v10265_v18  ;;  %v6093_v28 = vcombine.low %v5414_v31, %v5418_v56 }
 0x2f7   :  { %v6094_v42 = vcombine.low %v5422_v61, %v5426_v15  ;;  %v6095_v20 = vcombine.low %v5430_v50, %v5434_v54  ;;  %v9264_v8 = vrot.slane %v9250_v57, %v10270_v14  ;;  %v652_v33 = vrot.slane %v394_v47, %v10244_v63  ;;  %13246 = vst [vmem:[#allocation42_spill] sm:$0xff] %v12115_v25 }
 0x2f8   :  { %v656_v7 = vrot.slane %v394_v47, %v10247_v39  ;;  %v660_v48 = vrot.slane %v394_v47, %v10250_v36  ;;  %13247 = vst [vmem:[#allocation22_spill] sm:$0xff] %v12117_v32  ;;  %v6096_v1 = vcombine.low %v5438_v3, %v5442_v21  ;;  %v6103_v29 = vrot.slane %v6093_v28, %v10270_v14 }
 0x2f9   :  { %v6110_v43 = vrot.slane %v6094_v42, %v10270_v14  ;;  %v6117_v31 = vrot.slane %v6095_v20, %v10270_v14  ;;  %v9265_v56 = vcombine.low %v9257_v2, %v9264_v8  ;;  %v664_v61 = vrot.slane %v394_v47, %v10253_v60 }
 0x2fa   :  { %v668_v15 = vrot.slane %v394_v47, %v10256_v30  ;;  %v672_v50 = vrot.slane %v394_v47, %v10259_v45  ;;  %v6124_v54 = vrot.slane %v6096_v1, %v10270_v14  ;;  %v676_v57 = vrot.slane %v394_v47, %v10262_v52 }
 0x2fb   :  { %v6125_v55 = vcombine.low %v6103_v29, %v6110_v43  ;;  %v680_v3 = vrot.slane %v394_v47, %v10265_v18  ;;  %v406_v21 = vcvt.f32.s32 %v11742_v0  ;;  %9358 = vperm.xlu1 %9531, %v9265_v56   ;;  %v1178_v28 = vcombine.low %v652_v33, %v656_v7  ;;  %v12134_v47 = vpop.permute.xlu1 %4922  ;;  %v12136_v0 = vpop.permute.xlu0 %4904  ;;  %v13250_v7 = vld [vmem:[#allocation24_spill] sm:$0xff] }
 0x2fc   :  { %v1179_v42 = vcombine.low %v660_v48, %v664_v61  ;;  %v1180_v20 = vcombine.low %v668_v15, %v672_v50  ;;  %v408_v2 = vshll.u32 %v407_v41, 16  ;;  %v6126_v8 = vcombine.low %v6117_v31, %v6124_v54  ;;  %13249 = vst [vmem:[#allocation23_spill] sm:$0xff] %v12134_v47  ;;  %v13251_v61 = vld [vmem:[#allocation38_spill] sm:$0xff]  ;;  %v13252_v54 = vld [vmem:[#allocation25_spill] sm:$0xff] }
 0x2fd   :  { %v6133_v32 = vrot.slane %v6125_v55, %v10270_v14  ;;  %v1181_v10 = vcombine.low %v676_v57, %v680_v3  ;;  %v422_v25 = vcvt.f32.s32 %v13248_v12  ;;  %v1188_v1 = vrot.slane %v1178_v28, %v10270_v14 }
 0x2fe   :  { %v1195_v29 = vrot.slane %v1179_v42, %v10270_v14  ;;  %v1202_v43 = vrot.slane %v1180_v20, %v10270_v14  ;;  %v12138_v33 = vshll.u32 %v437_v23, 16  ;;  %v467_v41 = vcvt.f32.s32 %v13250_v7 }
 0x2ff   :  { %v6140_v48 = vrot.slane %v6126_v8, %v10270_v14  ;;  %v1209_v31 = vrot.slane %v1181_v10, %v10270_v14  ;;  %v409_v56 = vadd.s32 %v408_v2, %v406_v21  ;;  %v5446_v15 = vrot.slane %v13251_v61, %v10244_v63 }
 0x300   :  { %v1210_v12 = vcombine.low %v1188_v1, %v1195_v29  ;;  %v5450_v50 = vrot.slane %v13251_v61, %v10247_v39  ;;  %v452_v55 = vcvt.f32.s32 %v13252_v54  ;;  %v5454_v23 = vrot.slane %v13251_v61, %v10250_v36 }
 0x301   :  { %v6141_v57 = vcombine.low %v6133_v32, %v6140_v48  ;;  %v1211_v3 = vcombine.low %v1202_v43, %v1209_v31  ;;  %v5458_v10 = vrot.slane %v13251_v61, %v10253_v60  ;;  %v5462_v21 = vrot.slane %v13251_v61, %v10256_v30  ;;  %v12164_v48 = vpop.permute.xlu1 %4925  ;;  %v12166_v31 = vpop.permute.xlu0 %4907 }
 0x302   :  { %v1218_v28 = vrot.slane %v1210_v12, %v10270_v14  ;;  %v5466_v42 = vrot.slane %v13251_v61, %v10259_v45  ;;  %v421_v20 = vcvt.f32.s32 %v11764_v17  ;;  %v5470_v2 = vrot.slane %v13251_v61, %v10262_v52  ;;  %13253 = vst [vmem:[#allocation24_spill] sm:$0xff] %v12164_v48 }
 0x303   :  { %6418 = vperm.xlu0 %9532, %v6141_v57   ;;  %v1225_v32 = vrot.slane %v1211_v3, %v10270_v14  ;;  %v5474_v8 = vrot.slane %v13251_v61, %v10265_v18  ;;  %v6142_v1 = vcombine.low %v5446_v15, %v5450_v50  ;;  %v6143_v29 = vcombine.low %v5454_v23, %v5458_v10 }
 0x304   :  { %v6144_v43 = vcombine.low %v5462_v21, %v5466_v42  ;;  %v684_v7 = vrot.slane %v409_v56, %v10244_v63  ;;  %v688_v54 = vrot.slane %v409_v56, %v10247_v39  ;;  %v692_v57 = vrot.slane %v409_v56, %v10250_v36 }
 0x305   :  { %v1226_v12 = vcombine.low %v1218_v28, %v1225_v32  ;;  %v6145_v17 = vcombine.low %v5470_v2, %v5474_v8  ;;  %v6152_v3 = vrot.slane %v6142_v1, %v10270_v14  ;;  %v6159_v47 = vrot.slane %v6143_v29, %v10270_v14  ;;  %v12184_v5 = vpop.permute.xlu1 %4928  ;;  %v12186_v26 = vpop.permute.xlu0 %4910 }
 0x306   :  { %v6166_v61 = vrot.slane %v6144_v43, %v10270_v14  ;;  %v696_v15 = vrot.slane %v409_v56, %v10253_v60  ;;  %v700_v23 = vrot.slane %v409_v56, %v10256_v30  ;;  %v704_v28 = vrot.slane %v409_v56, %v10259_v45  ;;  %13254 = vst [vmem:[#allocation38_spill] sm:$0xff] %v12184_v5 }
 0x307   :  { %1917 = vperm.xlu1 %9531, %v1226_v12   ;;  %v6173_v50 = vrot.slane %v6145_v17, %v10270_v14  ;;  %v708_v10 = vrot.slane %v409_v56, %v10262_v52  ;;  %v6174_v21 = vcombine.low %v6152_v3, %v6159_v47  ;;  %v712_v42 = vrot.slane %v409_v56, %v10265_v18 }
 0x308   :  { %v1227_v32 = vcombine.low %v684_v7, %v688_v54  ;;  %v1228_v2 = vcombine.low %v692_v57, %v696_v15  ;;  %v423_v8 = vshll.u32 %v422_v25, 16  ;;  %v12179_v1 = vshll.u32 %v467_v41, 16  ;;  %v13255_v57 = vld [vmem:[#allocation43_spill] sm:$0xff]  ;;  %v13256_v15 = vld [vmem:[#allocation26_spill] sm:$0xff] }
 0x309   :  { %v6175_v29 = vcombine.low %v6166_v61, %v6173_v50  ;;  %v1229_v43 = vcombine.low %v700_v23, %v704_v28  ;;  %v6182_v12 = vrot.slane %v6174_v21, %v10270_v14  ;;  %v1230_v48 = vcombine.low %v708_v10, %v712_v42 }
 0x30a   :  { %v1237_v17 = vrot.slane %v1227_v32, %v10270_v14  ;;  %v1244_v35 = vrot.slane %v1228_v2, %v10270_v14  ;;  %v12188_v47 = vshll.u32 %v452_v55, 16  ;;  %v424_v56 = vadd.s32 %v423_v8, %v421_v20 }
 0x30b   :  { %v6189_v25 = vrot.slane %v6175_v29, %v10270_v14  ;;  %v1251_v41 = vrot.slane %v1229_v43, %v10270_v14  ;;  %v1258_v7 = vrot.slane %v1230_v48, %v10270_v14  ;;  %v5478_v3 = vrot.slane %v13255_v57, %v10244_v63 }
 0x30c   :  { %v1259_v54 = vcombine.low %v1237_v17, %v1244_v35  ;;  %v5482_v61 = vrot.slane %v13255_v57, %v10247_v39  ;;  %v5486_v55 = vrot.slane %v13255_v57, %v10250_v36  ;;  %v5490_v20 = vrot.slane %v13255_v57, %v10253_v60  ;;  %v12214_v17 = vpop.permute.xlu1 %4931 }
 0x30d   :  { %v6190_v23 = vcombine.low %v6182_v12, %v6189_v25  ;;  %v1260_v28 = vcombine.low %v1251_v41, %v1258_v7  ;;  %v5494_v35 = vrot.slane %v13255_v57, %v10256_v30  ;;  %v5498_v48 = vrot.slane %v13255_v57, %v10259_v45  ;;  %13257 = vst [vmem:[#allocation25_spill] sm:$0xff] %v12214_v17  ;;  %v12216_v25 = vpop.permute.xlu0 %4916 }
 0x30e   :  { %v1267_v10 = vrot.slane %v1259_v54, %v10270_v14  ;;  %v436_v21 = vcvt.f32.s32 %v11718_v38  ;;  %v5502_v42 = vrot.slane %v13255_v57, %v10262_v52  ;;  %v5506_v32 = vrot.slane %v13255_v57, %v10265_v18 }
 0x30f   :  { %6421 = vperm.xlu0 %9532, %v6190_v23   ;;  %v6191_v2 = vcombine.low %v5478_v3, %v5482_v61  ;;  %v1274_v8 = vrot.slane %v1260_v28, %v10270_v14  ;;  %v6192_v29 = vcombine.low %v5486_v55, %v5490_v20  ;;  %v6193_v43 = vcombine.low %v5494_v35, %v5498_v48 }
 0x310   :  { %v716_v12 = vrot.slane %v424_v56, %v10244_v63  ;;  %v6194_v41 = vcombine.low %v5502_v42, %v5506_v32  ;;  %v720_v7 = vrot.slane %v424_v56, %v10247_v39  ;;  %v724_v54 = vrot.slane %v424_v56, %v10250_v36  ;;  %v12234_v4 = vpop.permute.xlu1 %4934 }
 0x311   :  { %v6201_v38 = vrot.slane %v6191_v2, %v10270_v14  ;;  %v1275_v23 = vcombine.low %v1267_v10, %v1274_v8  ;;  %v6208_v57 = vrot.slane %v6192_v29, %v10270_v14  ;;  %v6215_v3 = vrot.slane %v6193_v43, %v10270_v14  ;;  %v13258_v2 = vld [vmem:[#allocation11_spill] sm:$0xff] }
 0x312   :  { %v728_v61 = vrot.slane %v424_v56, %v10253_v60  ;;  %v6222_v55 = vrot.slane %v6194_v41, %v10270_v14  ;;  %v732_v20 = vrot.slane %v424_v56, %v10256_v30  ;;  %v736_v28 = vrot.slane %v424_v56, %v10259_v45 }
 0x313   :  { %v740_v35 = vrot.slane %v424_v56, %v10262_v52  ;;  %1920 = vperm.xlu1 %9531, %v1275_v23   ;;  %v6223_v48 = vcombine.low %v6201_v38, %v6208_v57  ;;  %v744_v42 = vrot.slane %v424_v56, %v10265_v18  ;;  %v1276_v32 = vcombine.low %v716_v12, %v720_v7  ;;  %v12236_v38 = vpop.permute.xlu0 %7847  ;;  %v13260_v56 = vld [vmem:[#allocation27_spill] sm:$0xff] }
 0x314   :  { %v1277_v10 = vcombine.low %v724_v54, %v728_v61  ;;  %9657 = vlog2.f32 %v13258_v2  ;;  %v376_v8 = vcvt.f32.s32 %v11699_v37  ;;  %v6224_v29 = vcombine.low %v6215_v3, %v6222_v55  ;;  %13259 = vst [vmem:[#allocation43_spill] sm:$0xff] %v12236_v38  ;;  %v13261_v3 = vld [vmem:[#allocation41_spill] sm:$0xff] }
 0x315   :  { %v1278_v43 = vcombine.low %v732_v20, %v736_v28  ;;  %v6231_v41 = vrot.slane %v6223_v48, %v10270_v14  ;;  %v1279_v50 = vcombine.low %v740_v35, %v744_v42  ;;  %v1286_v17 = vrot.slane %v1276_v32, %v10270_v14 }
 0x316   :  { %v1293_v5 = vrot.slane %v1277_v10, %v10270_v14  ;;  %v439_v7 = vadd.s32 %v12138_v33, %v436_v21  ;;  %v6238_v54 = vrot.slane %v6224_v29, %v10270_v14  ;;  %v5510_v61 = vrot.slane %v13261_v3, %v10244_v63 }
 0x317   :  { %v1300_v37 = vrot.slane %v1278_v43, %v10270_v14  ;;  %v1307_v23 = vrot.slane %v1279_v50, %v10270_v14  ;;  %v5514_v55 = vrot.slane %v13261_v3, %v10247_v39  ;;  %v12248_v20 = vadd.s32 %v12040_v24, %v376_v8  ;;  %v12266_v43 = vpop.permute.xlu1 %4937 }
 0x318   :  { %v1308_v57 = vcombine.low %v1286_v17, %v1293_v5  ;;  %v6239_v28 = vcombine.low %v6231_v41, %v6238_v54  ;;  %v5518_v33 = vrot.slane %v13261_v3, %v10250_v36  ;;  %v5522_v21 = vrot.slane %v13261_v3, %v10253_v60  ;;  %13262 = vst [vmem:[#allocation26_spill] sm:$0xff] %v12266_v43  ;;  %v12268_v41 = vpop.permute.xlu0 %7850 }
 0x319   :  { %v1309_v35 = vcombine.low %v1300_v37, %v1307_v23  ;;  %v5526_v5 = vrot.slane %v13261_v3, %v10256_v30  ;;  %v5530_v17 = vrot.slane %v13261_v3, %v10259_v45  ;;  %v451_v48 = vcvt.f32.s32 %v11793_v58  ;;  %13263 = vst [vmem:[#allocation11_spill] sm:$0xff] %v12268_v41 }
 0x31a   :  { %v1316_v50 = vrot.slane %v1308_v57, %v10270_v14  ;;  %6424 = vperm.xlu0 %9532, %v6239_v28   ;;  %v5534_v24 = vrot.slane %v13261_v3, %v10262_v52  ;;  %v5538_v42 = vrot.slane %v13261_v3, %v10265_v18  ;;  %v6240_v32 = vcombine.low %v5510_v61, %v5514_v55 }
 0x31b   :  { %v1323_v10 = vrot.slane %v1309_v35, %v10270_v14  ;;  %v6241_v2 = vcombine.low %v5518_v33, %v5522_v21  ;;  %v6242_v8 = vcombine.low %v5526_v5, %v5530_v17  ;;  %v748_v29 = vrot.slane %v439_v7, %v10244_v63 }
 0x31c   :  { %v6243_v54 = vcombine.low %v5534_v24, %v5538_v42  ;;  %v6250_v58 = vrot.slane %v6240_v32, %v10270_v14  ;;  %v752_v37 = vrot.slane %v439_v7, %v10247_v39  ;;  %v756_v23 = vrot.slane %v439_v7, %v10250_v36 }
 0x31d   :  { %v1324_v57 = vcombine.low %v1316_v50, %v1323_v10  ;;  %v6257_v3 = vrot.slane %v6241_v2, %v10270_v14  ;;  %v6264_v61 = vrot.slane %v6242_v8, %v10270_v14  ;;  %v760_v55 = vrot.slane %v439_v7, %v10253_v60  ;;  %v13265_v2 = vld [vmem:[#allocation33_spill] sm:$0xff] }
 0x31e   :  { %v9658_v28 = vpop.eup %9657  ;;  %v6271_v33 = vrot.slane %v6243_v54, %v10270_v14  ;;  %v764_v21 = vrot.slane %v439_v7, %v10256_v30  ;;  %v768_v35 = vrot.slane %v439_v7, %v10259_v45  ;;  %v772_v5 = vrot.slane %v439_v7, %v10262_v52 }
 0x31f   :  { %1923 = vperm.xlu1 %9531, %v1324_v57   ;;  %v6272_v17 = vcombine.low %v6250_v58, %v6257_v3  ;;  %v776_v24 = vrot.slane %v439_v7, %v10265_v18  ;;  %v1325_v50 = vcombine.low %v748_v29, %v752_v37  ;;  %v1326_v42 = vcombine.low %v756_v23, %v760_v55  ;;  %v12290_v57 = vpop.permute.xlu1 %4940  ;;  %v12292_v7 = vpop.permute.xlu0 %7856 }
 0x320   :  { %v13264_v32 = vcvt.f32.s32 %v13256_v15  ;;  %v314_v8 = vmul.f32 %v13265_v2, %v11686_v19  ;;  %v6273_v54 = vcombine.low %v6264_v61, %v6271_v33  ;;  %v1327_v12 = vcombine.low %v764_v21, %v768_v35  ;;  %13266 = vst [vmem:[#allocation27_spill] sm:$0xff] %v12290_v57  ;;  %13267 = vst [vmem:[#allocation41_spill] sm:$0xff] %v12292_v7 }
 0x321   :  { %v6280_v41 = vrot.slane %v6272_v17, %v10270_v14  ;;  %v1328_v43 = vcombine.low %v772_v5, %v776_v24  ;;  %v1335_v38 = vrot.slane %v1325_v50, %v10270_v14  ;;  %v1342_v58 = vrot.slane %v1326_v42, %v10270_v14 }
 0x322   :  { %v12283_v10 = vshll.u32 %v13264_v32, 16  ;;  %v298_v29 = vmul.f32 0.6931472, %v9658_v28  ;;  %v454_v15 = vadd.s32 %v12188_v47, %v451_v48  ;;  %v6287_v37 = vrot.slane %v6273_v54, %v10270_v14 }
 0x323   :  { %v1349_v19 = vrot.slane %v1327_v12, %v10270_v14  ;;  %v1356_v23 = vrot.slane %v1328_v43, %v10270_v14  ;;  %v1357_v3 = vcombine.low %v1335_v38, %v1342_v58  ;;  %v620_v61 = vrot.slane %v12248_v20, %v10244_v63  ;;  %v12322_v54 = vpop.permute.xlu0 %9319 }
 0x324   :  { %v624_v55 = vrot.slane %v12248_v20, %v10247_v39  ;;  %v12302_v33 = vsub.f32 %v298_v29, %v314_v8  ;;  %v6288_v21 = vcombine.low %v6280_v41, %v6287_v37  ;;  %v628_v28 = vrot.slane %v12248_v20, %v10250_v36  ;;  %v12320_v8 = vpop.permute.xlu1 %4943 }
 0x325   :  { %v632_v47 = vrot.slane %v12248_v20, %v10253_v60  ;;  %v1358_v48 = vcombine.low %v1349_v19, %v1356_v23  ;;  %v1365_v12 = vrot.slane %v1357_v3, %v10270_v14  ;;  %v636_v38 = vrot.slane %v12248_v20, %v10256_v30  ;;  %13268 = vst [vmem:[#allocation33_spill] sm:$0xff] %v12320_v8 }
 0x326   :  { %v640_v43 = vrot.slane %v12248_v20, %v10259_v45  ;;  %v466_v35 = vcvt.f32.s32 %v11744_v44  ;;  %6427 = vperm.xlu0 %9532, %v6288_v21   ;;  %v644_v41 = vrot.slane %v12248_v20, %v10262_v52  ;;  %v648_v5 = vrot.slane %v12248_v20, %v10265_v18 }
 0x327   :  { %v1129_v17 = vcombine.low %v620_v61, %v624_v55  ;;  %v1372_v24 = vrot.slane %v1358_v48, %v10270_v14  ;;  %v1130_v50 = vcombine.low %v628_v28, %v632_v47  ;;  %v780_v32 = vrot.slane %v454_v15, %v10244_v63 }
 0x328   :  { %v1131_v42 = vcombine.low %v636_v38, %v640_v43  ;;  %v1132_v58 = vcombine.low %v644_v41, %v648_v5  ;;  %v784_v29 = vrot.slane %v454_v15, %v10247_v39  ;;  %v788_v37 = vrot.slane %v454_v15, %v10250_v36 }
 0x329   :  { %v1139_v44 = vrot.slane %v1129_v17, %v10270_v14  ;;  %v1373_v19 = vcombine.low %v1365_v12, %v1372_v24  ;;  %v1146_v20 = vrot.slane %v1130_v50, %v10270_v14  ;;  %v792_v3 = vrot.slane %v454_v15, %v10253_v60 }
 0x32a   :  { %v1153_v23 = vrot.slane %v1131_v42, %v10270_v14  ;;  %v1160_v61 = vrot.slane %v1132_v58, %v10270_v14  ;;  %v796_v55 = vrot.slane %v454_v15, %v10256_v30  ;;  %v800_v21 = vrot.slane %v454_v15, %v10259_v45 }
 0x32b   :  { %v804_v28 = vrot.slane %v454_v15, %v10262_v52  ;;  %1926 = vperm.xlu1 %9531, %v1373_v19   ;;  %v1161_v47 = vcombine.low %v1139_v44, %v1146_v20  ;;  %v808_v48 = vrot.slane %v454_v15, %v10265_v18  ;;  %v1374_v38 = vcombine.low %v780_v32, %v784_v29  ;;  %v12343_v44 = vpop.permute.xlu1 %7844  ;;  %v12345_v15 = vpop.permute.xlu0 %9325  ;;  %v13270_v32 = vld [vmem:[#allocation28_spill] sm:$0xff] }
 0x32c   :  { %v1375_v12 = vcombine.low %v788_v37, %v792_v3  ;;  %v13269_v43 = vcvt.f32.s32 %v13260_v56  ;;  %v469_v5 = vadd.s32 %v12179_v1, %v466_v35  ;;  %v1162_v17 = vcombine.low %v1153_v23, %v1160_v61  ;;  %v13271_v56 = vld [vmem:[#allocation29_spill] sm:$0xff] }
 0x32d   :  { %v1376_v24 = vcombine.low %v796_v55, %v800_v21  ;;  %v1169_v50 = vrot.slane %v1161_v47, %v10270_v14  ;;  %v1377_v42 = vcombine.low %v804_v28, %v808_v48  ;;  %v1384_v58 = vrot.slane %v1374_v38, %v10270_v14 }
 0x32e   :  { %v12337_v41 = vshll.u32 %v13269_v43, 16  ;;  %v1391_v19 = vrot.slane %v1375_v12, %v10270_v14  ;;  %v527_v29 = vcvt.f32.s32 %v13270_v32  ;;  %v512_v37 = vcvt.f32.s32 %v13271_v56 }
 0x32f   :  { %v1176_v20 = vrot.slane %v1162_v17, %v10270_v14  ;;  %v1398_v1 = vrot.slane %v1376_v24, %v10270_v14  ;;  %9659 = vtanh.f32 %v12302_v33  ;;  %v1405_v35 = vrot.slane %v1377_v42, %v10270_v14  ;;  %v12370_v32 = vpop.permute.xlu0 %9331 }
 0x330   :  { %v1406_v23 = vcombine.low %v1384_v58, %v1391_v19  ;;  %v2133_v3 = vsub.f32 1.0, %v13265_v2  ;;  %v481_v61 = vcvt.f32.s32 %v11813_v46  ;;  %v812_v21 = vrot.slane %v469_v5, %v10244_v63  ;;  %v12368_v19 = vpop.permute.xlu1 %7853 }
 0x331   :  { %v1177_v55 = vcombine.low %v1169_v50, %v1176_v20  ;;  %v816_v28 = vrot.slane %v469_v5, %v10247_v39  ;;  %v1407_v47 = vcombine.low %v1398_v1, %v1405_v35  ;;  %v820_v46 = vrot.slane %v469_v5, %v10250_v36  ;;  %13272 = vst [vmem:[#allocation28_spill] sm:$0xff] %v12368_v19 }
 0x332   :  { %v1414_v48 = vrot.slane %v1406_v23, %v10270_v14  ;;  %v4087_v38 = vrot.slane %v2133_v3, %v10244_v63  ;;  %v4091_v12 = vrot.slane %v2133_v3, %v10247_v39  ;;  %v4095_v43 = vrot.slane %v2133_v3, %v10250_v36 }
 0x333   :  { %1914 = vperm.xlu0 %9532, %v1177_v55   ;;  %v4099_v17 = vrot.slane %v2133_v3, %v10253_v60  ;;  %v4103_v2 = vrot.slane %v2133_v3, %v10256_v30  ;;  %v1421_v24 = vrot.slane %v1407_v47, %v10270_v14  ;;  %v4107_v50 = vrot.slane %v2133_v3, %v10259_v45 }
 0x334   :  { %v4111_v42 = vrot.slane %v2133_v3, %v10262_v52  ;;  %v4115_v58 = vrot.slane %v2133_v3, %v10265_v18  ;;  %v4851_v56 = vcombine.low %v4087_v38, %v4091_v12  ;;  %v824_v1 = vrot.slane %v469_v5, %v10253_v60 }
 0x335   :  { %v4852_v20 = vcombine.low %v4095_v43, %v4099_v17  ;;  %v828_v35 = vrot.slane %v469_v5, %v10256_v30  ;;  %v1422_v23 = vcombine.low %v1414_v48, %v1421_v24  ;;  %v4853_v55 = vcombine.low %v4103_v2, %v4107_v50 }
 0x336   :  { %v4854_v8 = vcombine.low %v4111_v42, %v4115_v58  ;;  %v832_v47 = vrot.slane %v469_v5, %v10259_v45  ;;  %v4861_v7 = vrot.slane %v4851_v56, %v10270_v14  ;;  %v836_v3 = vrot.slane %v469_v5, %v10262_v52 }
 0x337   :  { %v4868_v57 = vrot.slane %v4852_v20, %v10270_v14  ;;  %v840_v19 = vrot.slane %v469_v5, %v10265_v18  ;;  %1929 = vperm.xlu1 %9531, %v1422_v23   ;;  %v4875_v38 = vrot.slane %v4853_v55, %v10270_v14  ;;  %v1423_v43 = vcombine.low %v812_v21, %v816_v28  ;;  %v12389_v23 = vpop.permute.xlu1 %7859 }
 0x338   :  { %v4882_v12 = vrot.slane %v4854_v8, %v10270_v14  ;;  %v1424_v17 = vcombine.low %v820_v46, %v824_v1  ;;  %v12381_v48 = vshll.u32 %v527_v29, 16  ;;  %v1425_v24 = vcombine.low %v828_v35, %v832_v47  ;;  %13273 = vst [vmem:[#allocation29_spill] sm:$0xff] %v12389_v23  ;;  %v12391_v8 = vpop.permute.xlu0 %9334  ;;  %v13274_v47 = vld [vmem:[#allocation31_spill] sm:$0xff] }
 0x339   :  { %v4883_v2 = vcombine.low %v4861_v7, %v4868_v57  ;;  %v1426_v50 = vcombine.low %v836_v3, %v840_v19  ;;  %v9660_v42 = vpop.eup %9659  ;;  %v6545_v58 = vsel %vm2100_vm7, 1, %v13211_v13  ;;  %v1433_v5 = vrot.slane %v1423_v43, %v10270_v14 }
 0x33a   :  { %v4884_v56 = vcombine.low %v4875_v38, %v4882_v12  ;;  %v1440_v20 = vrot.slane %v1424_v17, %v10270_v14  ;;  %vm2101_vm4 = vcmp.le.f32.partialorder %v12302_v33, %v10423_v40  ;;  %v1447_v7 = vrot.slane %v1425_v24, %v10270_v14 }
 0x33b   :  { %v4891_v57 = vrot.slane %v4883_v2, %v10270_v14  ;;  %v1454_v29 = vrot.slane %v1426_v50, %v10270_v14  ;;  %v12398_v62 = vshll.u32 %v512_v37, 16  ;;  %v484_v21 = vadd.s32 %v12337_v41, %v481_v61  ;;  %vm8002_vm6 = vmxor %vm2101_vm4, %vm9679_vm15 }
 0x33c   :  { %v4898_v28 = vrot.slane %v4884_v56, %v10270_v14  ;;  %v1455_v46 = vcombine.low %v1433_v5, %v1440_v20  ;;  %v6998_v1 = vrot.slane %v6545_v58, %v10244_v63  ;;  %v7002_v35 = vrot.slane %v6545_v58, %v10247_v39  ;;  %v12417_v5 = vpop.permute.xlu1 %7862  ;;  %v12419_v20 = vpop.permute.xlu0 %9337 }
 0x33d   :  { %v1456_v19 = vcombine.low %v1447_v7, %v1454_v29  ;;  %v7006_v55 = vrot.slane %v6545_v58, %v10250_v36  ;;  %v7010_v61 = vrot.slane %v6545_v58, %v10253_v60  ;;  %v7014_v12 = vrot.slane %v6545_v58, %v10256_v30  ;;  %13275 = vst [vmem:[#allocation31_spill] sm:$0xff] %v12417_v5 }
 0x33e   :  { %v4899_v37 = vcombine.low %v4891_v57, %v4898_v28  ;;  %v1463_v41 = vrot.slane %v1455_v46, %v10270_v14  ;;  %v7018_v43 = vrot.slane %v6545_v58, %v10259_v45  ;;  %v7022_v17 = vrot.slane %v6545_v58, %v10262_v52 }
 0x33f   :  { %v1470_v38 = vrot.slane %v1456_v19, %v10270_v14  ;;  %v5058_v2 = vsub.f32 1.0, %v9660_v42  ;;  %v7026_v24 = vrot.slane %v6545_v58, %v10265_v18  ;;  %v7745_v50 = vcombine.low %v6998_v1, %v7002_v35 }
 0x340   :  { %4946 = vperm.xlu0 %9532, %v4899_v37   ;;  %v7746_v56 = vcombine.low %v7006_v55, %v7010_v61  ;;  %v12422_v57 = vsel %vm8002_vm6, 1, %v13211_v13  ;;  %v7747_v29 = vcombine.low %v7014_v12, %v7018_v43  ;;  %v844_v28 = vrot.slane %v484_v21, %v10244_v63  ;;  %v12442_v5 = vpop.permute.xlu1 %7865 }
 0x341   :  { %v1471_v7 = vcombine.low %v1463_v41, %v1470_v38  ;;  %v496_v46 = vcvt.f32.s32 %v11766_v22  ;;  %v7748_v19 = vcombine.low %v7022_v17, %v7026_v24  ;;  %v7755_v37 = vrot.slane %v7745_v50, %v10270_v14 }
 0x342   :  { %v7762_v58 = vrot.slane %v7746_v56, %v10270_v14  ;;  %v7769_v1 = vrot.slane %v7747_v29, %v10270_v14  ;;  %v848_v35 = vrot.slane %v484_v21, %v10247_v39  ;;  %v852_v55 = vrot.slane %v484_v21, %v10250_v36 }
 0x343   :  { %1932 = vperm.xlu1 %9531, %v1471_v7   ;;  %v856_v61 = vrot.slane %v484_v21, %v10253_v60  ;;  %v5074_v41 = vsel %vm2101_vm4, %v5058_v2, %v9660_v42  ;;  %v7776_v22 = vrot.slane %v7748_v19, %v10270_v14  ;;  %v860_v12 = vrot.slane %v484_v21, %v10256_v30  ;;  %v12444_v42 = vpop.permute.xlu0 %9340 }
 0x344   :  { %v7777_v38 = vcombine.low %v7755_v37, %v7762_v58  ;;  %v864_v43 = vrot.slane %v484_v21, %v10259_v45  ;;  %v868_v17 = vrot.slane %v484_v21, %v10262_v52  ;;  %v872_v24 = vrot.slane %v484_v21, %v10265_v18 }
 0x345   :  { %v1472_v50 = vcombine.low %v844_v28, %v848_v35  ;;  %v499_v56 = vadd.s32 %v12283_v10, %v496_v46  ;;  %v7778_v7 = vcombine.low %v7769_v1, %v7776_v22  ;;  %v1473_v3 = vcombine.low %v852_v55, %v856_v61 }
 0x346   :  { %v7785_v29 = vrot.slane %v7777_v38, %v10270_v14  ;;  %v526_v2 = vcvt.f32.s32 %v11795_v51  ;;  %v1474_v19 = vcombine.low %v860_v12, %v864_v43  ;;  %v1475_v37 = vcombine.low %v868_v17, %v872_v24 }
 0x347   :  { %v1482_v58 = vrot.slane %v1472_v50, %v10270_v14  ;;  %v7792_v23 = vrot.slane %v7778_v7, %v10270_v14  ;;  %v1489_v21 = vrot.slane %v1473_v3, %v10270_v14  ;;  %v5574_v10 = vrot.slane %v5074_v41, %v10244_v63 }
 0x348   :  { %v5578_v28 = vrot.slane %v5074_v41, %v10247_v39  ;;  %v511_v46 = vcvt.f32.s32 %v11841_v49  ;;  %v1496_v1 = vrot.slane %v1474_v19, %v10270_v14  ;;  %v1503_v35 = vrot.slane %v1475_v37, %v10270_v14 }
 0x349   :  { %v5582_v51 = vrot.slane %v5074_v41, %v10250_v36  ;;  %v7793_v55 = vcombine.low %v7785_v29, %v7792_v23  ;;  %v1504_v61 = vcombine.low %v1482_v58, %v1489_v21  ;;  %v5586_v22 = vrot.slane %v5074_v41, %v10253_v60  ;;  %v12463_v23 = vpop.permute.xlu1 %7868  ;;  %v12465_v29 = vpop.permute.xlu0 %9343 }
 0x34a   :  { %v5590_v38 = vrot.slane %v5074_v41, %v10256_v30  ;;  %v1505_v12 = vcombine.low %v1496_v1, %v1503_v35  ;;  %v5594_v3 = vrot.slane %v5074_v41, %v10259_v45  ;;  %v5598_v43 = vrot.slane %v5074_v41, %v10262_v52  ;;  %13276 = vst [vmem:[#allocation44_spill] sm:$0xff] %v12463_v23 }
 0x34b   :  { %v5602_v17 = vrot.slane %v5074_v41, %v10265_v18  ;;  %7886 = vperm.xlu0 %9532, %v7793_v55   ;;  %v1512_v49 = vrot.slane %v1504_v61, %v10270_v14  ;;  %v6338_v24 = vcombine.low %v5574_v10, %v5578_v28  ;;  %v6339_v50 = vcombine.low %v5582_v51, %v5586_v22 }
 0x34c   :  { %v876_v7 = vrot.slane %v499_v56, %v10244_v63  ;;  %v1519_v19 = vrot.slane %v1505_v12, %v10270_v14  ;;  %v6340_v37 = vcombine.low %v5590_v38, %v5594_v3  ;;  %v880_v21 = vrot.slane %v499_v56, %v10247_v39 }
 0x34d   :  { %v6341_v58 = vcombine.low %v5598_v43, %v5602_v17  ;;  %v6348_v1 = vrot.slane %v6338_v24, %v10270_v14  ;;  %v6355_v41 = vrot.slane %v6339_v50, %v10270_v14  ;;  %v884_v35 = vrot.slane %v499_v56, %v10250_v36 }
 0x34e   :  { %v888_v10 = vrot.slane %v499_v56, %v10253_v60  ;;  %v1520_v28 = vcombine.low %v1512_v49, %v1519_v19  ;;  %v6362_v51 = vrot.slane %v6340_v37, %v10270_v14  ;;  %v892_v61 = vrot.slane %v499_v56, %v10256_v30 }
 0x34f   :  { %v6369_v55 = vrot.slane %v6341_v58, %v10270_v14  ;;  %v6370_v22 = vcombine.low %v6348_v1, %v6355_v41  ;;  %v896_v38 = vrot.slane %v499_v56, %v10259_v45  ;;  %v900_v12 = vrot.slane %v499_v56, %v10262_v52  ;;  %v12484_v1 = vpop.permute.xlu1 %7871  ;;  %v12486_v41 = vpop.permute.xlu0 %9346 }
 0x350   :  { %v904_v3 = vrot.slane %v499_v56, %v10265_v18  ;;  %v12480_v43 = vadd.s32 %v12381_v48, %v526_v2  ;;  %1935 = vperm.xlu1 %9531, %v1520_v28   ;;  %v1521_v24 = vcombine.low %v876_v7, %v880_v21  ;;  %v1522_v49 = vcombine.low %v884_v35, %v888_v10 }
 0x351   :  { %v6371_v17 = vcombine.low %v6362_v51, %v6369_v55  ;;  %v514_v50 = vadd.s32 %v12398_v62, %v511_v46  ;;  %v6378_v19 = vrot.slane %v6370_v22, %v10270_v14  ;;  %v1523_v37 = vcombine.low %v892_v61, %v896_v38 }
 0x352   :  { %v1524_v58 = vcombine.low %v900_v12, %v904_v3  ;;  %v1531_v56 = vrot.slane %v1521_v24, %v10270_v14  ;;  %v1538_v48 = vrot.slane %v1522_v49, %v10270_v14  ;;  %v8502_v2 = vrot.slane %v12422_v57, %v10244_v63 }
 0x353   :  { %v6385_v23 = vrot.slane %v6371_v17, %v10270_v14  ;;  %v541_v7 = vcvt.f32.s32 %v11868_v6  ;;  %v1545_v62 = vrot.slane %v1523_v37, %v10270_v14  ;;  %v8506_v21 = vrot.slane %v12422_v57, %v10247_v39  ;;  %v12514_v37 = vpop.permute.xlu1 %7874 }
 0x354   :  { %v1552_v46 = vrot.slane %v1524_v58, %v10270_v14  ;;  %v1553_v10 = vcombine.low %v1531_v56, %v1538_v48  ;;  %v8510_v28 = vrot.slane %v12422_v57, %v10250_v36  ;;  %v8514_v51 = vrot.slane %v12422_v57, %v10253_v60  ;;  %13277 = vst [vmem:[#allocation45_spill] sm:$0xff] %v12514_v37  ;;  %v12516_v58 = vpop.permute.xlu0 %9349 }
 0x355   :  { %v6386_v35 = vcombine.low %v6378_v19, %v6385_v23  ;;  %v8518_v61 = vrot.slane %v12422_v57, %v10256_v30  ;;  %v8522_v6 = vrot.slane %v12422_v57, %v10259_v45  ;;  %v8526_v22 = vrot.slane %v12422_v57, %v10262_v52 }
 0x356   :  { %v1554_v55 = vcombine.low %v1545_v62, %v1552_v46  ;;  %v1561_v23 = vrot.slane %v1553_v10, %v10270_v14  ;;  %v8530_v38 = vrot.slane %v12422_v57, %v10265_v18  ;;  %v9266_v12 = vcombine.low %v8502_v2, %v8506_v21 }
 0x357   :  { %6433 = vperm.xlu0 %9532, %v6386_v35   ;;  %v9267_v3 = vcombine.low %v8510_v28, %v8514_v51  ;;  %v9268_v24 = vcombine.low %v8518_v61, %v8522_v6  ;;  %v908_v49 = vrot.slane %v514_v50, %v10244_v63  ;;  %v912_v19 = vrot.slane %v514_v50, %v10247_v39  ;;  %v13278_v61 = vld [vmem:[#allocation30_spill] sm:$0xff] }
 0x358   :  { %v1568_v17 = vrot.slane %v1554_v55, %v10270_v14  ;;  %v9269_v56 = vcombine.low %v8526_v22, %v8530_v38  ;;  %v9276_v48 = vrot.slane %v9266_v12, %v10270_v14  ;;  %v916_v57 = vrot.slane %v514_v50, %v10250_v36 }
 0x359   :  { %v9283_v62 = vrot.slane %v9267_v3, %v10270_v14  ;;  %v9290_v46 = vrot.slane %v9268_v24, %v10270_v14  ;;  %v920_v21 = vrot.slane %v514_v50, %v10253_v60  ;;  %v924_v35 = vrot.slane %v514_v50, %v10256_v30 }
 0x35a   :  { %v1569_v2 = vcombine.low %v1561_v23, %v1568_v17  ;;  %v9297_v10 = vrot.slane %v9269_v56, %v10270_v14  ;;  %v928_v51 = vrot.slane %v514_v50, %v10259_v45  ;;  %v932_v55 = vrot.slane %v514_v50, %v10262_v52 }
 0x35b   :  { %v9298_v28 = vcombine.low %v9276_v48, %v9283_v62  ;;  %v557_v6 = vcvt.f32.s32 %v13278_v61  ;;  %v936_v22 = vrot.slane %v514_v50, %v10265_v18  ;;  %v1570_v38 = vcombine.low %v908_v49, %v912_v19  ;;  %v12538_v50 = vpop.permute.xlu0 %9352 }
 0x35c   :  { %1938 = vperm.xlu1 %9531, %v1569_v2   ;;  %v1571_v23 = vcombine.low %v916_v57, %v920_v21  ;;  %v13279_v12 = vcvt.f32.s32 %v13274_v47  ;;  %v9299_v17 = vcombine.low %v9290_v46, %v9297_v10  ;;  %v1572_v37 = vcombine.low %v924_v35, %v928_v51  ;;  %v12536_v2 = vpop.permute.xlu1 %7877 }
 0x35d   :  { %v9306_v24 = vrot.slane %v9298_v28, %v10270_v14  ;;  %v1573_v56 = vcombine.low %v932_v55, %v936_v22  ;;  %v1580_v48 = vrot.slane %v1570_v38, %v10270_v14  ;;  %v940_v61 = vrot.slane %v12480_v43, %v10244_v63  ;;  %13280 = vst [vmem:[#allocation30_spill] sm:$0xff] %v12536_v2 }
 0x35e   :  { %v543_v3 = vshll.u32 %v13279_v12, 16  ;;  %v1587_v62 = vrot.slane %v1571_v23, %v10270_v14  ;;  %v9313_v47 = vrot.slane %v9299_v17, %v10270_v14  ;;  %v1594_v19 = vrot.slane %v1572_v37, %v10270_v14 }
 0x35f   :  { %v944_v57 = vrot.slane %v12480_v43, %v10247_v39  ;;  %v1601_v46 = vrot.slane %v1573_v56, %v10270_v14  ;;  %v948_v35 = vrot.slane %v12480_v43, %v10250_v36  ;;  %v952_v10 = vrot.slane %v12480_v43, %v10253_v60 }
 0x360   :  { %v544_v49 = vadd.s32 %v543_v3, %v541_v7  ;;  %v1602_v21 = vcombine.low %v1580_v48, %v1587_v62  ;;  %v9314_v28 = vcombine.low %v9306_v24, %v9313_v47  ;;  %v956_v7 = vrot.slane %v12480_v43, %v10256_v30  ;;  %v12561_v62 = vpop.permute.xlu1 %7880  ;;  %v12563_v47 = vpop.permute.xlu0 %9355 }
 0x361   :  { %v960_v51 = vrot.slane %v12480_v43, %v10259_v45  ;;  %v964_v37 = vrot.slane %v12480_v43, %v10262_v52  ;;  %v1603_v55 = vcombine.low %v1594_v19, %v1601_v46  ;;  %v968_v38 = vrot.slane %v12480_v43, %v10265_v18  ;;  %13281 = vst [vmem:[#allocation46_spill] sm:$0xff] %v12561_v62 }
 0x362   :  { %v1610_v22 = vrot.slane %v1602_v21, %v10270_v14  ;;  %v1619_v23 = vcombine.low %v940_v61, %v944_v57  ;;  %9361 = vperm.xlu0 %9532, %v9314_v28   ;;  %v1620_v12 = vcombine.low %v948_v35, %v952_v10  ;;  %v556_v17 = vcvt.f32.s32 %v11815_v9  ;;  %v13282_v10 = vld [vmem:[#allocation14_spill] sm:$0xff] }
 0x363   :  { %v1621_v3 = vcombine.low %v956_v7, %v960_v51  ;;  %v1617_v24 = vrot.slane %v1603_v55, %v10270_v14  ;;  %v1622_v56 = vcombine.low %v964_v37, %v968_v38  ;;  %v972_v43 = vrot.slane %v544_v49, %v10244_v63  ;;  %v13283_v55 = vld [vmem:[#allocation10_spill] sm:$0xff] }
 0x364   :  { %v1629_v48 = vrot.slane %v1619_v23, %v10270_v14  ;;  %v1636_v19 = vrot.slane %v1620_v12, %v10270_v14  ;;  %v976_v61 = vrot.slane %v544_v49, %v10247_v39  ;;  %v558_v57 = vshll.u32 %v557_v6, 16  ;;  %v12581_v2 = vpop.permute.xlu1 %7883 }
 0x365   :  { %v1643_v46 = vrot.slane %v1621_v3, %v10270_v14  ;;  %v1618_v21 = vcombine.low %v1610_v22, %v1617_v24  ;;  %v1650_v9 = vrot.slane %v1622_v56, %v10270_v14  ;;  %v980_v35 = vrot.slane %v544_v49, %v10250_v36  ;;  %13284 = vst [vmem:[#allocation14_spill] sm:$0xff] %v12581_v2 }
 0x366   :  { %v587_v28 = vcvt.f32.s32 %v13282_v10  ;;  %v1651_v7 = vcombine.low %v1629_v48, %v1636_v19  ;;  %v984_v51 = vrot.slane %v544_v49, %v10253_v60  ;;  %v988_v37 = vrot.slane %v544_v49, %v10256_v30 }
 0x367   :  { %v572_v38 = vcvt.f32.s32 %v13283_v55  ;;  %1941 = vperm.xlu1 %9531, %v1618_v21   ;;  %v1652_v23 = vcombine.low %v1643_v46, %v1650_v9  ;;  %v992_v12 = vrot.slane %v544_v49, %v10259_v45  ;;  %v996_v6 = vrot.slane %v544_v49, %v10262_v52  ;;  %v12583_v21 = vpop.permute.xlu0 %6391 }
 0x368   :  { %v559_v22 = vadd.s32 %v558_v57, %v556_v17  ;;  %v1659_v3 = vrot.slane %v1651_v7, %v10270_v14  ;;  %v1000_v24 = vrot.slane %v544_v49, %v10265_v18  ;;  %v1668_v56 = vcombine.low %v972_v43, %v976_v61 }
 0x369   :  { %v571_v48 = vcvt.f32.s32 %v11899_v11  ;;  %v1666_v19 = vrot.slane %v1652_v23, %v10270_v14  ;;  %v1669_v10 = vcombine.low %v980_v35, %v984_v51  ;;  %v1670_v62 = vcombine.low %v988_v37, %v992_v12 }
 0x36a   :  { %v1671_v46 = vcombine.low %v996_v6, %v1000_v24  ;;  %v1678_v9 = vrot.slane %v1668_v56, %v10270_v14  ;;  %v573_v55 = vshll.u32 %v572_v38, 16  ;;  %v588_v43 = vshll.u32 %v587_v28, 16  ;;  %v12599_v56 = vpop.permute.xlu1 %9316 }
 0x36b   :  { %v1667_v17 = vcombine.low %v1659_v3, %v1666_v19  ;;  %v1685_v57 = vrot.slane %v1669_v10, %v10270_v14  ;;  %v1692_v49 = vrot.slane %v1670_v62, %v10270_v14  ;;  %v586_v11 = vcvt.f32.s32 %v11843_v34  ;;  %v13285_v19 = vld [vmem:[#allocation13_spill] sm:$0xff] }
 0x36c   :  { %v1699_v61 = vrot.slane %v1671_v46, %v10270_v14  ;;  %v1004_v35 = vrot.slane %v559_v22, %v10244_v63  ;;  %v574_v7 = vadd.s32 %v573_v55, %v571_v48  ;;  %v1008_v37 = vrot.slane %v559_v22, %v10247_v39  ;;  %v12601_v48 = vpop.permute.xlu0 %6397 }
 0x36d   :  { %1944 = vperm.xlu1 %9531, %v1667_v17   ;;  %v1700_v51 = vcombine.low %v1678_v9, %v1685_v57  ;;  %v1012_v23 = vrot.slane %v559_v22, %v10250_v36  ;;  %v1016_v12 = vrot.slane %v559_v22, %v10253_v60  ;;  %v1020_v6 = vrot.slane %v559_v22, %v10256_v30 }
 0x36e   :  { %v1701_v38 = vcombine.low %v1692_v49, %v1699_v61  ;;  %v1024_v62 = vrot.slane %v559_v22, %v10259_v45  ;;  %v1028_v28 = vrot.slane %v559_v22, %v10262_v52  ;;  %v1032_v3 = vrot.slane %v559_v22, %v10265_v18 }
 0x36f   :  { %v1708_v34 = vrot.slane %v1700_v51, %v10270_v14  ;;  %v1717_v24 = vcombine.low %v1004_v35, %v1008_v37  ;;  %v602_v10 = vcvt.f32.s32 %v13285_v19  ;;  %v1718_v9 = vcombine.low %v1012_v23, %v1016_v12 }
 0x370   :  { %v1715_v46 = vrot.slane %v1701_v38, %v10270_v14  ;;  %v1719_v55 = vcombine.low %v1020_v6, %v1024_v62  ;;  %v589_v17 = vadd.s32 %v588_v43, %v586_v11  ;;  %v1720_v57 = vcombine.low %v1028_v28, %v1032_v3  ;;  %v12618_v3 = vpop.permute.xlu1 %9322 }
 0x371   :  { %v1727_v49 = vrot.slane %v1717_v24, %v10270_v14  ;;  %v1036_v61 = vrot.slane %v574_v7, %v10244_v63  ;;  %v601_v51 = vcvt.f32.s32 %v11925_v27  ;;  %v1734_v35 = vrot.slane %v1718_v9, %v10270_v14  ;;  %v12620_v24 = vpop.permute.xlu0 %6403 }
 0x372   :  { %v1716_v22 = vcombine.low %v1708_v34, %v1715_v46  ;;  %v1741_v37 = vrot.slane %v1719_v55, %v10270_v14  ;;  %v1748_v2 = vrot.slane %v1720_v57, %v10270_v14  ;;  %v1040_v19 = vrot.slane %v574_v7, %v10247_v39 }
 0x373   :  { %v1044_v23 = vrot.slane %v574_v7, %v10250_v36  ;;  %v1048_v43 = vrot.slane %v574_v7, %v10253_v60  ;;  %v1749_v11 = vcombine.low %v1727_v49, %v1734_v35  ;;  %v1052_v38 = vrot.slane %v574_v7, %v10256_v30 }
 0x374   :  { %1947 = vperm.xlu1 %9531, %v1716_v22   ;;  %v1056_v12 = vrot.slane %v574_v7, %v10259_v45  ;;  %v1060_v27 = vrot.slane %v574_v7, %v10262_v52  ;;  %v1750_v6 = vcombine.low %v1741_v37, %v1748_v2  ;;  %v1064_v62 = vrot.slane %v574_v7, %v10265_v18 }
 0x375   :  { %v1766_v34 = vcombine.low %v1036_v61, %v1040_v19  ;;  %v1767_v28 = vcombine.low %v1044_v23, %v1048_v43  ;;  %v603_v46 = vshll.u32 %v602_v10, 16  ;;  %v1757_v9 = vrot.slane %v1749_v11, %v10270_v14 }
 0x376   :  { %v1768_v55 = vcombine.low %v1052_v38, %v1056_v12  ;;  %v1764_v57 = vrot.slane %v1750_v6, %v10270_v14  ;;  %v1769_v49 = vcombine.low %v1060_v27, %v1064_v62  ;;  %v1068_v61 = vrot.slane %v589_v17, %v10244_v63 }
 0x377   :  { %v1776_v22 = vrot.slane %v1766_v34, %v10270_v14  ;;  %v1783_v35 = vrot.slane %v1767_v28, %v10270_v14  ;;  %v604_v2 = vadd.s32 %v603_v46, %v601_v51  ;;  %v1072_v37 = vrot.slane %v589_v17, %v10247_v39  ;;  %v12637_v28 = vpop.permute.xlu1 %9328  ;;  %v12639_v46 = vpop.permute.xlu0 %6406 }
 0x378   :  { %v1790_v7 = vrot.slane %v1768_v55, %v10270_v14  ;;  %v1765_v19 = vcombine.low %v1757_v9, %v1764_v57  ;;  %v1797_v10 = vrot.slane %v1769_v49, %v10270_v14  ;;  %v1076_v43 = vrot.slane %v589_v17, %v10250_v36 }
 0x379   :  { %v1798_v23 = vcombine.low %v1776_v22, %v1783_v35  ;;  %v1080_v11 = vrot.slane %v589_v17, %v10253_v60  ;;  %v1084_v38 = vrot.slane %v589_v17, %v10256_v30  ;;  %v1088_v12 = vrot.slane %v589_v17, %v10259_v45 }
 0x37a   :  { %v1092_v51 = vrot.slane %v589_v17, %v10262_v52  ;;  %1950 = vperm.xlu1 %9531, %v1765_v19   ;;  %v1799_v27 = vcombine.low %v1790_v7, %v1797_v10  ;;  %v1096_v62 = vrot.slane %v589_v17, %v10265_v18  ;;  %v1815_v34 = vcombine.low %v1068_v61, %v1072_v37  ;;  %v13286_v7 = vld [vmem:[#allocation9_spill] sm:$0xff] }
 0x37b   :  { %v1806_v6 = vrot.slane %v1798_v23, %v10270_v14  ;;  %v1816_v9 = vcombine.low %v1076_v43, %v1080_v11  ;;  %v1817_v55 = vcombine.low %v1084_v38, %v1088_v12  ;;  %v6546_v57 = vsel %vm2101_vm4, 1, %v13211_v13 }
 0x37c   :  { %v1813_v49 = vrot.slane %v1799_v27, %v10270_v14  ;;  %v1818_v22 = vcombine.low %v1092_v51, %v1096_v62  ;;  %v1825_v35 = vrot.slane %v1815_v34, %v10270_v14  ;;  %v1965_v19 = vadd.s32 4294967288, %v13286_v7  ;;  %v12659_v62 = vpop.permute.xlu1 %6388  ;;  %v12661_v34 = vpop.permute.xlu0 %6409 }
 0x37d   :  { %v1832_v17 = vrot.slane %v1816_v9, %v10270_v14  ;;  %v1839_v61 = vrot.slane %v1817_v55, %v10270_v14  ;;  %v1100_v37 = vrot.slane %v604_v2, %v10244_v63  ;;  %v1104_v43 = vrot.slane %v604_v2, %v10247_v39 }
 0x37e   :  { %v1814_v10 = vcombine.low %v1806_v6, %v1813_v49  ;;  %v1846_v23 = vrot.slane %v1818_v22, %v10270_v14  ;;  %v1108_v40 = vrot.slane %v604_v2, %v10250_v36  ;;  %v1112_v33 = vrot.slane %v604_v2, %v10253_v60  ;;  %v13287_v22 = vld [vmem:[#allocation12_spill] sm:$0xff] }
 0x37f   :  { %v1847_v13 = vcombine.low %v1825_v35, %v1832_v17  ;;  %v1116_v11 = vrot.slane %v604_v2, %v10256_v30  ;;  %v1120_v38 = vrot.slane %v604_v2, %v10259_v45  ;;  %v1124_v51 = vrot.slane %v604_v2, %v10262_v52 }
 0x380   :  { %1953 = vperm.xlu1 %9531, %v1814_v10   ;;  %v1848_v12 = vcombine.low %v1839_v61, %v1846_v23  ;;  %v1128_v27 = vrot.slane %v604_v2, %v10265_v18  ;;  %v1864_v6 = vcombine.low %v1100_v37, %v1104_v43  ;;  %v1865_v55 = vcombine.low %v1108_v40, %v1112_v33 }
 0x381   :  { %v1855_v9 = vrot.slane %v1847_v13, %v10270_v14  ;;  %v1866_v49 = vcombine.low %v1116_v11, %v1120_v38  ;;  %v12665_v35 = vsub.s32 %v1965_v19, %v13287_v22  ;;  %v1972_v23 = vadd.s32 4294967280, %v13286_v7 }
 0x382   :  { %v1862_v17 = vrot.slane %v1848_v12, %v10270_v14  ;;  %v1867_v10 = vcombine.low %v1124_v51, %v1128_v27  ;;  %v1874_v61 = vrot.slane %v1864_v6, %v10270_v14  ;;  %v1881_v2 = vrot.slane %v1865_v55, %v10270_v14 }
 0x383   :  { %v1888_v37 = vrot.slane %v1866_v49, %v10270_v14  ;;  %v7030_v43 = vrot.slane %v6546_v57, %v10244_v63  ;;  %v12675_v40 = vsub.s32 %v13286_v7, %v13287_v22  ;;  %v7034_v33 = vrot.slane %v6546_v57, %v10247_v39  ;;  %v12687_v49 = vpop.permute.xlu0 %6412 }
 0x384   :  { %v1863_v13 = vcombine.low %v1855_v9, %v1862_v17  ;;  %v1895_v19 = vrot.slane %v1867_v10, %v10270_v14  ;;  %v1896_v11 = vcombine.low %v1874_v61, %v1881_v2  ;;  %v7038_v38 = vrot.slane %v6546_v57, %v10250_v36  ;;  %v12685_v9 = vpop.permute.xlu1 %6394 }
 0x385   :  { %v7042_v12 = vrot.slane %v6546_v57, %v10253_v60  ;;  %v7046_v51 = vrot.slane %v6546_v57, %v10256_v30  ;;  %v7050_v63 = vrot.slane %v6546_v57, %v10259_v45  ;;  %v7054_v6 = vrot.slane %v6546_v57, %v10262_v52 }
 0x386   :  { %1956 = vperm.xlu1 %9531, %v1863_v13   ;;  %v1897_v27 = vcombine.low %v1888_v37, %v1895_v19  ;;  %v7058_v55 = vrot.slane %v6546_v57, %v10265_v18  ;;  %v12690_v39 = vsub.s32 %v1972_v23, %v13287_v22  ;;  %v1904_v36 = vrot.slane %v1896_v11, %v10270_v14 }
 0x387   :  { %v7794_v60 = vcombine.low %v7030_v43, %v7034_v33  ;;  %v7795_v17 = vcombine.low %v7038_v38, %v7042_v12  ;;  %v1979_v30 = vadd.s32 4294967272, %v13286_v7  ;;  %v7796_v45 = vcombine.low %v7046_v51, %v7050_v63 }
 0x388   :  { %v1911_v10 = vrot.slane %v1897_v27, %v10270_v14  ;;  %v7797_v61 = vcombine.low %v7054_v6, %v7058_v55  ;;  %vm1970_vm8 = vcmask 130112   ;;  %v1986_v52 = vadd.s32 4294967264, %v13286_v7  ;;  %v6401_v63 = vpop.permute.xlu1 %6400  ;;  %v12709_v6 = vpop.permute.xlu0 %6415 }
 0x389   :  { %v1993_v18 = vadd.s32 4294967256, %v13286_v7  ;;  %v7804_v57 = vrot.slane %v7794_v60, %v10270_v14  ;;  %v7811_v23 = vrot.slane %v7795_v17, %v10270_v14  ;;  %vm1977_vm9 = vcmask 195712  }
 0x38a   :  { %v2000_v2 = vadd.s32 4294967248, %v13286_v7  ;;  %v1912_v37 = vcombine.low %v1904_v36, %v1911_v10  ;;  %v7818_v43 = vrot.slane %v7796_v45, %v10270_v14  ;;  %v7825_v13 = vrot.slane %v7797_v61, %v10270_v14 }
 0x38b   :  { %v2007_v19 = vadd.s32 4294967240, %v13286_v7  ;;  %v2014_v33 = vadd.s32 4294967232, %v13286_v7  ;;  %v2021_v11 = vadd.s32 4294967224, %v13286_v7  ;;  %v7826_v38 = vcombine.low %v7804_v57, %v7811_v23 }
 0x38c   :  { %v12706_v12 = vsub.s32 %v1979_v30, %v13287_v22  ;;  %vm1984_vm10 = vcmask 261312   ;;  %v2028_v51 = vadd.s32 4294967216, %v13286_v7  ;;  %1959 = vperm.xlu1 %9531, %v1912_v37   ;;  %v7827_v27 = vcombine.low %v7818_v43, %v7825_v13 }
 0x38d   :  { %v12712_v55 = vsub.s32 %v1986_v52, %v13287_v22  ;;  %vm1991_vm11 = vcmask 326912   ;;  %vm1998_vm12 = vcmask 392512   ;;  %v7834_v36 = vrot.slane %v7826_v38, %v10270_v14  ;;  %v6419_v38 = vpop.permute.xlu0 %6418 }
 0x38e   :  { %v12716_v60 = vsub.s32 %v1993_v18, %v13287_v22  ;;  %v12719_v17 = vsub.s32 %v2000_v2, %v13287_v22  ;;  %vm2005_vm13 = vcmask 458112   ;;  %v7841_v30 = vrot.slane %v7827_v27, %v10270_v14 }
 0x38f   :  { %v12723_v10 = vsub.s32 %v2007_v19, %v13287_v22  ;;  %vm2012_vm14 = vcmask 523712   ;;  %v12726_v45 = vsub.s32 %v2014_v33, %v13287_v22  ;;  %v12729_v61 = vsub.s32 %v2021_v11, %v13287_v22  ;;  %v12751_v11 = vpop.permute.xlu1 %6430 }
 0x390   :  { %vm2019_vm1 = vcmask 589312   ;;  %v12732_v52 = vsub.s32 %v2028_v51, %v13287_v22  ;;  %v9370_v18 = vrot.slane %v12322_v54, %v12665_v35  ;;  %v7842_v57 = vcombine.low %v7834_v36, %v7841_v30 }
 0x391   :  { %v9366_v23 = vrot.slane %v12599_v56, %v12675_v40  ;;  %vm2026_vm2 = vcmask 654912   ;;  %v2035_v2 = vadd.s32 4294967208, %v13286_v7  ;;  %v2042_v37 = vadd.s32 4294967200, %v13286_v7 }
 0x392   :  { %v9375_v43 = vrot.slane %v12618_v3, %v12690_v39  ;;  %v9385_v13 = vrot.slane %v12637_v28, %v12712_v55  ;;  %vm2033_vm3 = vcmask 720512   ;;  %v9380_v19 = vrot.slane %v12345_v15, %v12706_v12  ;;  %7889 = vperm.xlu1 %9531, %v7842_v57  }
 0x393   :  { %v9371_v54 = vsel %vm1970_vm8, %v9370_v18, %v9366_v23  ;;  %v6442_v56 = vrot.slane %v12583_v21, %v12665_v35  ;;  %v6438_v33 = vrot.slane %v12659_v62, %v12675_v40  ;;  %v2049_v3 = vadd.s32 4294967192, %v13286_v7 }
 0x394   :  { %v9390_v28 = vrot.slane %v12370_v32, %v12716_v60  ;;  %v9376_v51 = vsel %vm1977_vm9, %v9375_v43, %v9371_v54  ;;  %v6447_v15 = vrot.slane %v12685_v9, %v12690_v39  ;;  %v6452_v21 = vrot.slane %v12601_v48, %v12706_v12 }
 0x395   :  { %v9381_v27 = vsel %vm1984_vm10, %v9380_v19, %v9376_v51  ;;  %v6443_v62 = vsel %vm1970_vm8, %v6442_v56, %v6438_v33  ;;  %v6457_v36 = vrot.slane %v6401_v63, %v12712_v55  ;;  %v2056_v30 = vadd.s32 4294967184, %v13286_v7  ;;  %v9359_v33 = vpop.permute.xlu1 %9358 }
 0x396   :  { %v9395_v18 = vrot.slane %v12391_v8, %v12719_v17  ;;  %v9386_v32 = vsel %vm1991_vm11, %v9385_v13, %v9381_v27  ;;  %v6448_v57 = vsel %vm1977_vm9, %v6447_v15, %v6443_v62  ;;  %v12770_v9 = vsub.s32 %v2035_v2, %v13287_v22 }
 0x397   :  { %v9400_v23 = vrot.slane %v12419_v20, %v12723_v10  ;;  %v9391_v48 = vsel %vm1998_vm12, %v9390_v28, %v9386_v32  ;;  %v6453_v43 = vsel %vm1984_vm10, %v6452_v21, %v6448_v57  ;;  %v9405_v63 = vrot.slane %v12444_v42, %v12726_v45  ;;  %v6422_v42 = vpop.permute.xlu0 %6421 }
 0x398   :  { %v9396_v19 = vsel %vm2005_vm13, %v9395_v18, %v9391_v48  ;;  %v6462_v8 = vrot.slane %v12620_v24, %v12716_v60  ;;  %v6458_v13 = vsel %vm1991_vm11, %v6457_v36, %v6453_v43  ;;  %v12783_v2 = vsub.s32 %v2042_v37, %v13287_v22 }
 0x399   :  { %v12786_v54 = vsub.s32 %v2049_v3, %v13287_v22  ;;  %v9410_v20 = vrot.slane %v12465_v29, %v12729_v61  ;;  %v9401_v56 = vsel %vm2012_vm14, %v9400_v23, %v9396_v19  ;;  %v12792_v28 = vsub.s32 %v2056_v30, %v13287_v22 }
 0x39a   :  { %v9415_v24 = vrot.slane %v12486_v41, %v12732_v52  ;;  %v9406_v51 = vsel %vm2019_vm1, %v9405_v63, %v9401_v56  ;;  %v6463_v37 = vsel %vm1998_vm12, %v6462_v8, %v6458_v13  ;;  %v9420_v3 = vrot.slane %v12516_v58, %v12770_v9 }
 0x39b   :  { %v6467_v29 = vrot.slane %v12639_v46, %v12719_v17  ;;  %v9411_v15 = vsel %vm2026_vm2, %v9410_v20, %v9406_v51  ;;  %vm2040_vm5 = vcmask 786112   ;;  %v9425_v27 = vrot.slane %v12538_v50, %v12783_v2  ;;  %v6425_v57 = vpop.permute.xlu0 %6424 }
 0x39c   :  { %v9416_v21 = vsel %vm2033_vm3, %v9415_v24, %v9411_v15  ;;  %v9435_v41 = vrot.slane %v9359_v33, %v12792_v28  ;;  %v9680_v62 = vmov 0.0   ;;  %vm2047_vm7 = vcmask 851712   ;;  %v1918_v24 = vpop.permute.xlu1 %1917 }
 0x39d   :  { %24 = vst [vmem:[#allocation2] sm:$0x1] %v9680_v62  ;;  %25 = vst [vmem:[#allocation3] sm:$0x1] %v9680_v62  ;;  %v9430_v58 = vrot.slane %v12563_v47, %v12786_v54  ;;  %v6468_v36 = vsel %vm2005_vm13, %v6467_v29, %v6463_v37  ;;  %v9421_v46 = vsel %vm2040_vm5, %v9420_v3, %v9416_v21  ;;  %vm2054_vm0 = vcmask 917312  }
 0x39e   :  { %v6472_v30 = vrot.slane %v12661_v34, %v12723_v10  ;;  %v9426_v50 = vsel %vm2047_vm7, %v9425_v27, %v9421_v46  ;;  %vm2061_vm4 = vcmask 982912   ;;  %v6477_v18 = vrot.slane %v12687_v49, %v12726_v45 }
 0x39f   :  { %v9431_v32 = vsel %vm2054_vm0, %v9430_v58, %v9426_v50  ;;  %v6482_v48 = vrot.slane %v12709_v6, %v12729_v61  ;;  %v6487_v43 = vrot.slane %v6419_v38, %v12732_v52  ;;  %v6492_v34 = vrot.slane %v6422_v42, %v12770_v9 }
 0x3a0   :  { %v6473_v23 = vsel %vm2012_vm14, %v6472_v30, %v6468_v36  ;;  %v12819_v47 = vsel %vm2061_vm4, %v9435_v41, %v9431_v32  ;;  %v6497_v19 = vrot.slane %v6425_v57, %v12783_v2  ;;  %v6507_v6 = vrot.slane %v12751_v11, %v12792_v28  ;;  %v1921_v51 = vpop.permute.xlu1 %1920  ;;  %v13289_v32 = vld [vmem:[#allocation39_spill] sm:$0xff] }
 0x3a1   :  { %v6478_v63 = vsel %vm2019_vm1, %v6477_v18, %v6473_v23  ;;  %v4955_v21 = vrot.slane %v12136_v0, %v12665_v35  ;;  %v4960_v41 = vrot.slane %v12166_v31, %v12690_v39  ;;  %v4951_v62 = vrot.slane %v12067_v59, %v12675_v40  ;;  %v13288_v18 = vld [vmem:[#allocation21_spill] sm:$0xff]  ;;  %v13290_v23 = vld [vmem:[#allocation32_spill] sm:$0xff] }
 0x3a2   :  { %v6483_v49 = vsel %vm2026_vm2, %v6482_v48, %v6478_v63  ;;  %v4965_v58 = vrot.slane %v12186_v26, %v12706_v12  ;;  %v3497_v50 = vrot.slane %v11939_v16, %v12675_v40  ;;  %v4975_v31 = vrot.slane %v12216_v25, %v12716_v60 }
 0x3a3   :  { %v6488_v8 = vsel %vm2033_vm3, %v6487_v43, %v6483_v49  ;;  %v4956_v36 = vsel %vm1970_vm8, %v4955_v21, %v4951_v62  ;;  %v3506_v59 = vrot.slane %v11968_v53, %v12690_v39  ;;  %v4970_v26 = vrot.slane %v13288_v18, %v12712_v55  ;;  %v13291_v53 = vld [vmem:[#allocation17_spill] sm:$0xff]  ;;  %v13292_v49 = vld [vmem:[#allocation42_spill] sm:$0xff]  ;;  %v13295_v62 = vld [vmem:[#allocation16_spill] sm:$0xff] }
 0x3a4   :  { %v6493_v20 = vsel %vm2040_vm5, %v6492_v34, %v6488_v8  ;;  %v12838_v37 = vpop.permute.xlu1 %1923  ;;  %v4961_v30 = vsel %vm1977_vm9, %v4960_v41, %v4956_v36  ;;  %v3501_v57 = vrot.slane %v13289_v32, %v12665_v35  ;;  %v3511_v48 = vrot.slane %v13290_v23, %v12706_v12  ;;  %v13297_v18 = vld [vmem:[#allocation15_spill] sm:$0xff] }
 0x3a5   :  { %v6428_v13 = vpop.permute.xlu0 %6427  ;;  %v6498_v38 = vsel %vm2047_vm7, %v6497_v19, %v6493_v20  ;;  %v4966_v0 = vsel %vm1984_vm10, %v4965_v58, %v4961_v30  ;;  %v3516_v19 = vrot.slane %v13291_v53, %v12712_v55  ;;  %v4980_v8 = vrot.slane %v13292_v49, %v12719_v17  ;;  %v13300_v53 = vld [vmem:[#allocation34_spill] sm:$0xff] }
 0x3a6   :  { %v6502_v56 = vrot.slane %v6428_v13, %v12786_v54  ;;  %v4971_v43 = vsel %vm1991_vm11, %v4970_v26, %v4966_v0  ;;  %v3502_v16 = vsel %vm1970_vm8, %v3501_v57, %v3497_v50  ;;  %v3526_v58 = vrot.slane %v13295_v62, %v12719_v17  ;;  %v13296_v50 = vld [vmem:[#allocation18_spill] sm:$0xff]  ;;  %v13298_v57 = vld [vmem:[#allocation24_spill] sm:$0xff] }
 0x3a7   :  { %v4976_v34 = vsel %vm1998_vm12, %v4975_v31, %v4971_v43  ;;  %v3507_v25 = vsel %vm1977_vm9, %v3506_v59, %v3502_v16  ;;  %v3531_v0 = vrot.slane %v13296_v50, %v12723_v10  ;;  %v3536_v26 = vrot.slane %v13297_v18, %v12726_v45  ;;  %v13299_v16 = vld [vmem:[#allocation37_spill] sm:$0xff]  ;;  %v13305_v18 = vld [vmem:[#allocation22_spill] sm:$0xff] }
 0x3a8   :  { %v6503_v33 = vsel %vm2054_vm0, %v6502_v56, %v6498_v38  ;;  %v3512_v20 = vsel %vm1984_vm10, %v3511_v48, %v3507_v25  ;;  %v13293_v56 = vld [vmem:[#allocation35_spill] sm:$0xff]  ;;  %v4981_v38 = vsel %vm2005_vm13, %v4980_v8, %v4976_v34  ;;  %v2063_v32 = vadd.s32 4294967176, %v13286_v7 }
 0x3a9   :  { %v12836_v42 = vsel %vm2061_vm4, %v6507_v6, %v6503_v33  ;;  %v3521_v6 = vrot.slane %v13293_v56, %v12716_v60  ;;  %v13294_v33 = vld [vmem:[#allocation23_spill] sm:$0xff]  ;;  %v3517_v41 = vsel %vm1991_vm11, %v3516_v19, %v3512_v20  ;;  %v4990_v23 = vrot.slane %v13298_v57, %v12726_v45 }
 0x3aa   :  { %v12840_v3 = vpop.permute.xlu1 %1926  ;;  %v4985_v21 = vrot.slane %v13294_v33, %v12723_v10  ;;  %v1969_v48 = vrot.slane %v1918_v24, %v12665_v35  ;;  %v3541_v34 = vrot.slane %v13299_v16, %v12729_v61  ;;  %v3546_v19 = vrot.slane %v13300_v53, %v12732_v52  ;;  %v13301_v20 = vld [vmem:[#allocation19_spill] sm:$0xff]  ;;  %v13302_v24 = vld [vmem:[#allocation38_spill] sm:$0xff] }
 0x3ab   :  { %v3522_v30 = vsel %vm1998_vm12, %v3521_v6, %v3517_v41  ;;  %v3551_v56 = vrot.slane %v13301_v20, %v12770_v9  ;;  %v4995_v6 = vrot.slane %v13302_v24, %v12729_v61  ;;  %v13303_v41 = vld [vmem:[#allocation36_spill] sm:$0xff]  ;;  %v1990_v20 = vrot.slane %v12840_v3, %v12712_v55  ;;  %v13311_v3 = vld [vmem:[#allocation11_spill] sm:$0xff] }
 0x3ac   :  { %v4986_v31 = vsel %vm2012_vm14, %v4985_v21, %v4981_v38  ;;  %v3527_v25 = vsel %vm2005_vm13, %v3526_v58, %v3522_v30  ;;  %v1976_v38 = vrot.slane %v1921_v51, %v12690_v39  ;;  %v12924_v21 = vsub.s32 %v2063_v32, %v13287_v22  ;;  %v13306_v32 = vld [vmem:[#allocation25_spill] sm:$0xff] }
 0x3ad   :  { %v4991_v49 = vsel %vm2019_vm1, %v4990_v23, %v4986_v31  ;;  %v3556_v62 = vrot.slane %v13303_v41, %v12783_v2  ;;  %v5000_v57 = vrot.slane %v13306_v32, %v12732_v52  ;;  %v1983_v23 = vrot.slane %v12838_v37, %v12706_v12  ;;  %v13307_v37 = vld [vmem:[#allocation43_spill] sm:$0xff] }
 0x3ae   :  { %v4996_v50 = vsel %vm2026_vm2, %v4995_v6, %v4991_v49  ;;  %vm2068_vm6 = vcmask 1048512  }
 0x3af   :  { %v5001_v53 = vsel %vm2033_vm3, %v5000_v57, %v4996_v50  ;;  %v13313_v57 = vld [vmem:[#allocation29_spill] sm:$0xff] }
 0x3b2   :  { %v1915_v13 = vpop.permute.xlu0 %1914 }
 0x3b3   :  { %v1964_v36 = vrot.slane %v1915_v13, %v12675_v40  ;;  %v3532_v13 = vsel %vm2012_vm14, %v3531_v0, %v3527_v25 }
 0x3b4   :  { %v3537_v33 = vsel %vm2019_vm1, %v3536_v26, %v3532_v13  ;;  %v3566_v26 = vrot.slane %v13305_v18, %v12792_v28  ;;  %v7898_v13 = vrot.slane %v13307_v37, %v12665_v35  ;;  %v13310_v35 = vld [vmem:[#allocation26_spill] sm:$0xff] }
 0x3b5   :  { %v1971_v8 = vsel %vm1970_vm8, %v1969_v48, %v1964_v36  ;;  %v3542_v58 = vsel %vm2026_vm2, %v3541_v34, %v3537_v33  ;;  %v13304_v36 = vld [vmem:[#allocation20_spill] sm:$0xff]  ;;  %v7894_v34 = vrot.slane %v12343_v44, %v12675_v40 }
 0x3b6   :  { %v12842_v29 = vpop.permute.xlu1 %1929  ;;  %v3561_v30 = vrot.slane %v13304_v36, %v12786_v54  ;;  %v1978_v0 = vsel %vm1977_vm9, %v1976_v38, %v1971_v8  ;;  %v3547_v51 = vsel %vm2033_vm3, %v3546_v19, %v3542_v58  ;;  %v5005_v8 = vrot.slane %v12234_v4, %v12770_v9  ;;  %v13309_v38 = vld [vmem:[#allocation28_spill] sm:$0xff] }
 0x3b7   :  { %v3552_v16 = vsel %vm2040_vm5, %v3551_v56, %v3547_v51  ;;  %v1985_v19 = vsel %vm1984_vm10, %v1983_v23, %v1978_v0  ;;  %v13308_v56 = vld [vmem:[#allocation40_spill] sm:$0xff]  ;;  %v7899_v6 = vsel %vm1970_vm8, %v7898_v13, %v7894_v34  ;;  %v7908_v33 = vrot.slane %v13309_v38, %v12706_v12  ;;  %v13314_v34 = vld [vmem:[#allocation41_spill] sm:$0xff] }
 0x3b8   :  { %v3557_v25 = vsel %vm2047_vm7, %v3556_v62, %v3552_v16  ;;  %v3571_v44 = vrot.slane %v13308_v56, %v12924_v21  ;;  %v5006_v24 = vsel %vm2040_vm5, %v5005_v8, %v5001_v53  ;;  %v1992_v4 = vsel %vm1991_vm11, %v1990_v20, %v1985_v19  ;;  %v13315_v53 = vld [vmem:[#allocation31_spill] sm:$0xff]  ;;  %v13316_v8 = vld [vmem:[#allocation33_spill] sm:$0xff] }
 0x3b9   :  { %v3562_v49 = vsel %vm2054_vm0, %v3561_v30, %v3557_v25  ;;  %v5010_v62 = vrot.slane %v13310_v35, %v12783_v2  ;;  %v7903_v58 = vrot.slane %v13311_v3, %v12690_v39  ;;  %v1997_v36 = vrot.slane %v12842_v29, %v12716_v60  ;;  %v13312_v39 = vld [vmem:[#allocation27_spill] sm:$0xff] }
 0x3ba   :  { %v3567_v40 = vsel %vm2061_vm4, %v3566_v26, %v3562_v49  ;;  %v5015_v32 = vrot.slane %v13312_v39, %v12786_v54  ;;  %v7918_v23 = vrot.slane %v13313_v57, %v12716_v60  ;;  %v7913_v25 = vrot.slane %v13314_v34, %v12712_v55 }
 0x3bb   :  { %v12972_v50 = vsel %vm2068_vm6, %v3571_v44, %v3567_v40  ;;  %v5011_v12 = vsel %vm2047_vm7, %v5010_v62, %v5006_v24  ;;  %v7904_v51 = vsel %vm1977_vm9, %v7903_v58, %v7899_v6  ;;  %v1999_v18 = vsel %vm1998_vm12, %v1997_v36, %v1992_v4 }
 0x3bc   :  { %v7909_v29 = vsel %vm1984_vm10, %v7908_v33, %v7904_v51  ;;  %v3579_v16 = vrot.slane %v12972_v50, %v10270_v14  ;;  %v5016_v49 = vsel %vm2054_vm0, %v5015_v32, %v5011_v12  ;;  %v5020_v60 = vrot.slane %v13316_v8, %v12792_v28 }
 0x3bd   :  { %v7914_v20 = vsel %vm1991_vm11, %v7913_v25, %v7909_v29  ;;  %v7928_v55 = vrot.slane %v12442_v5, %v12723_v10  ;;  %v7938_v3 = vrot.slane %v12484_v1, %v12729_v61 }
 0x3be   :  { %v7919_v44 = vsel %vm1998_vm12, %v7918_v23, %v7914_v20  ;;  %v5021_v62 = vsel %vm2061_vm4, %v5020_v60, %v5016_v49  ;;  %v3586_v8 = vrot.slane %v3579_v16, %v10270_v14 }
 0x3bf   :  { %v12907_v43 = vpop.permute.xlu0 %4946 }
 0x3c0   :  { %v5025_v40 = vrot.slane %v12907_v43, %v12924_v21 }
 0x3c2   :  { %v12844_v15 = vpop.permute.xlu1 %1932  ;;  %v5026_v50 = vsel %vm2068_vm6, %v5025_v40, %v5021_v62 }
 0x3c3   :  { %v2004_v0 = vrot.slane %v12844_v15, %v12719_v17  ;;  %v5033_v23 = vrot.slane %v5026_v50, %v10270_v14 }
 0x3c5   :  { %v2006_v37 = vsel %vm2005_vm13, %v2004_v0, %v1999_v18 }
 0x3ca   :  { %v12942_v48 = vpop.permute.xlu0 %7886 }
 0x3cb   :  { %v7963_v34 = vrot.slane %v12942_v48, %v12792_v28 }
 0x3cf   :  { %v12846_v27 = vpop.permute.xlu1 %1935 }
 0x3d0   :  { %v2011_v26 = vrot.slane %v12846_v27, %v12723_v10  ;;  %v7923_v27 = vrot.slane %v13315_v53, %v12719_v17 }
 0x3d2   :  { %v2013_v17 = vsel %vm2012_vm14, %v2011_v26, %v2006_v37  ;;  %v7924_v6 = vsel %vm2005_vm13, %v7923_v27, %v7919_v44  ;;  %v5040_v37 = vrot.slane %v5033_v23, %v10270_v14 }
 0x3d6   :  { %v6434_v30 = vpop.permute.xlu0 %6433 }
 0x3d7   :  { %v6512_v5 = vrot.slane %v6434_v30, %v12924_v21 }
 0x3d9   :  { %v6513_v51 = vsel %vm2068_vm6, %v6512_v5, %v12836_v42  ;;  %v13321_v42 = vld [vmem:[#allocation14_spill] sm:$0xff] }
 0x3da   :  { %v7958_v57 = vrot.slane %v13321_v42, %v12786_v54 }
 0x3db   :  { %v12848_v11 = vpop.permute.xlu1 %1938 }
 0x3dc   :  { %v2018_v15 = vrot.slane %v12848_v11, %v12726_v45 }
 0x3de   :  { %v2020_v24 = vsel %vm2019_vm1, %v2018_v15, %v2013_v17 }
 0x3e1   :  { %v9362_v56 = vpop.permute.xlu0 %9361 }
 0x3e2   :  { %v9440_v4 = vrot.slane %v9362_v56, %v12924_v21 }
 0x3e6   :  { %v12859_v46 = vpop.permute.xlu1 %1941 }
 0x3e7   :  { %v2025_v19 = vrot.slane %v12859_v46, %v12729_v61  ;;  %v610_v61 = vmul.u32 128, %v13287_v22 }
 0x3e9   :  { %v2027_v10 = vsel %vm2026_vm2, %v2025_v19, %v2020_v24  ;;  %v613_v27 = vadd.s32 %v610_v61, %v13286_v7  ;;  %v9462_v24 = vld [vmem:[#allocation2] sm:$0x1] }
 0x3ec   :  { %v12878_v63 = vpop.permute.xlu1 %1944 }
 0x3ed   :  { %v2032_v11 = vrot.slane %v12878_v63, %v12732_v52 }
 0x3ef   :  { %v2034_v43 = vsel %vm2033_vm3, %v2032_v11, %v2027_v10 }
 0x3f3   :  { %v12899_v59 = vpop.permute.xlu1 %1947 }
 0x3f4   :  { %v2039_v46 = vrot.slane %v12899_v59, %v12770_v9  ;;  %v13317_v59 = vld [vmem:[#allocation44_spill] sm:$0xff] }
 0x3f5   :  { %v7933_v33 = vrot.slane %v13317_v59, %v12726_v45  ;;  %v13319_v45 = vld [vmem:[#allocation30_spill] sm:$0xff] }
 0x3f6   :  { %v2041_v58 = vsel %vm2040_vm5, %v2039_v46, %v2034_v43  ;;  %v7948_v30 = vrot.slane %v13319_v45, %v12770_v9  ;;  %v9441_v9 = vsel %vm2068_vm6, %v9440_v4, %v12819_v47  ;;  %v9459_v46 = vld [vmem:[#allocation3] sm:$0x1] }
 0x3f7   :  { %v9448_v53 = vrot.slane %v9441_v9, %v10270_v14 }
 0x3f9   :  { %v12933_v31 = vpop.permute.xlu1 %1950  ;;  %v9455_v20 = vrot.slane %v9448_v53, %v10270_v14 }
 0x3fa   :  { %v2046_v63 = vrot.slane %v12933_v31, %v12783_v2  ;;  %v7929_v31 = vsel %vm2012_vm14, %v7928_v55, %v7924_v6 }
 0x3fb   :  { %v7934_v26 = vsel %vm2019_vm1, %v7933_v33, %v7929_v31  ;;  %vm9456_vm11 = vcmp.ne.s32.totalorder %v9455_v20, 0 }
 0x3fc   :  { %v2048_v0 = vsel %vm2047_vm7, %v2046_v63, %v2041_v58  ;;  %v7939_v29 = vsel %vm2026_vm2, %v7938_v3, %v7934_v26  ;;  %vm9470_vm2 = vcmask 1040384  }
 0x3ff   :  { %v1954_v41 = vpop.permute.xlu1 %1953 }
 0x400   :  { %v2053_v38 = vrot.slane %v1954_v41, %v12786_v54  ;;  %v13318_v41 = vld [vmem:[#allocation45_spill] sm:$0xff]  ;;  %v605_v54 = vld [vmem:[%s13095_s3] sm:$0x1] }
 0x401   :  { %v7943_v36 = vrot.slane %v13318_v41, %v12732_v52  ;;  %v13320_v52 = vld [vmem:[#allocation46_spill] sm:$0xff] }
 0x402   :  { %v2055_v18 = vsel %vm2054_vm0, %v2053_v38, %v2048_v0  ;;  %v7953_v39 = vrot.slane %v13320_v52, %v12783_v2  ;;  %v6520_v2 = vrot.slane %v6513_v51, %v10270_v14 }
 0x403   :  { %v7944_v22 = vsel %vm2033_vm3, %v7943_v36, %v7939_v29 }
 0x404   :  { %v7949_v25 = vsel %vm2040_vm5, %v7948_v30, %v7944_v22  ;;  %v6527_v7 = vrot.slane %v6520_v2, %v10270_v14 }
 0x405   :  { %v1957_v13 = vpop.permute.xlu1 %1956  ;;  %v7954_v19 = vsel %vm2047_vm7, %v7953_v39, %v7949_v25 }
 0x406   :  { %v2060_v35 = vrot.slane %v1957_v13, %v12792_v28  ;;  %v615_v28 = vstv %s13093_s1  ;;  %v7959_v60 = vsel %vm2054_vm0, %v7958_v57, %v7954_v19 }
 0x407   :  { %v7964_v13 = vsel %vm2061_vm4, %v7963_v34, %v7959_v60  ;;  %vm616_vm9 = vcmp.lt.s32.totalorder %v613_v27, %v615_v28 }
 0x408   :  { %v2062_v32 = vsel %vm2061_vm4, %v2060_v35, %v2055_v18 }
 0x40b   :  { %v1960_v12 = vpop.permute.xlu1 %1959 }
 0x40c   :  { %v2067_v1 = vrot.slane %v1960_v12, %v12924_v21 }
 0x40e   :  { %v2069_v15 = vsel %vm2068_vm6, %v2067_v1, %v2062_v32 }
 0x40f   :  { %v2076_v47 = vrot.slane %v2069_v15, %v10270_v14 }
 0x411   :  { %v2083_v49 = vrot.slane %v2076_v47, %v10270_v14  ;;  %v7890_v48 = vpop.permute.xlu1 %7889 }
 0x412   :  { %v7968_v11 = vrot.slane %v7890_v48, %v12924_v21 }
 0x413   :  { %vm2084_vm8 = vcmp.eq.s32.totalorder %v605_v54, %v2083_v49 }
 0x414   :  { %v5042_v55 = vsel %vm2084_vm8, %v3586_v8, %v5040_v37  ;;  %v7969_v17 = vsel %vm2068_vm6, %v7968_v11, %v7964_v13  ;;  %vm7986_vm10 = vmxor %vm2084_vm8, %vm9679_vm15 }
 0x415   :  { %v6529_v56 = vmul.f32 %v6527_v7, %v5042_v55  ;;  %v7976_v16 = vrot.slane %v7969_v17, %v10270_v14  ;;  %vm9457_vm13 = vmand %vm7986_vm10, %vm9456_vm11 }
 0x417   :  { %v6530_v21 = vsel %vm616_vm9, %v6529_v56, 0.0  ;;  %v7983_v44 = vrot.slane %v7976_v16, %v10270_v14 }
 0x418   :  { %v9460_v40 = vadd.f32 %v9459_v46, %v6530_v21 }
 0x419   :  { %vm7984_vm12 = vcmp.ne.s32.totalorder %v7983_v44, 0 }
 0x41a   :  { %vm7985_vm14 = vmand %vm2084_vm8, %vm7984_vm12  ;;  %9461 = vst [vmem:[#allocation3] sm:$0x1] %v9460_v40 }
 0x41b   :  { %vm9458_vm1 = vmor %vm7985_vm14, %vm9457_vm13 }
 0x41c   :  { %v9463_v63 = vsel %vm9458_vm1, %v6530_v21, 0.0 }
 0x41d   :  { %v9464_v6 = vadd.f32 %v9463_v63, %v9462_v24 }
 0x41f   :  { %9465 = vst [vmem:[#allocation2] sm:$0x1] %v9464_v6 }
 0x421   :  { %v9481_v5 = vld [vmem:[#allocation3] sm:$0x1] }
 0x422   :  { %v9482_v10 = vsel %vm9470_vm2, %v9481_v5, 0.0 }
 0x423   :  { %9483 = vadd.xlane.f32.xlu0 %v9482_v10 }
 0x426   :  { %v9469_v38 = vld [vmem:[#allocation2] sm:$0x1] }
 0x427   :  { %v9471_v59 = vsel %vm9470_vm2, %v9469_v38, 0.0 }
 0x428   :  { %9472 = vadd.xlane.f32.xlu1 %v9471_v59 }
 0x4b0   :  { %v9484_v14 = vpop.xlane.xlu0 %9483 }
 0x4b1   :  { %v9485_v33 = vrot.slane %v9484_v14, 4 }
 0x4b3   :  { %v9486_v4 = vadd.f32 %v9485_v33, %v9484_v14 }
 0x4b5   :  { %v9487_v43 = vrot.slane %v9486_v4, 2  ;;  %v9473_v35 = vpop.xlane.xlu1 %9472 }
 0x4b6   :  { %v9474_v62 = vrot.slane %v9473_v35, 4 }
 0x4b7   :  { %v9488_v3 = vadd.f32 %v9487_v43, %v9486_v4 }
 0x4b8   :  { %v9475_v31 = vadd.f32 %v9474_v62, %v9473_v35 }
 0x4b9   :  { %v9489_v36 = vrot.slane %v9488_v3, 1 }
 0x4ba   :  { %v9476_v58 = vrot.slane %v9475_v31, 2 }
 0x4bb   :  { %v9490_v50 = vadd.f32 %v9489_v36, %v9488_v3 }
 0x4bc   :  { %v9477_v41 = vadd.f32 %v9476_v58, %v9475_v31 }
 0x4be   :  { %v9478_v45 = vrot.slane %v9477_v41, 1 }
 0x4c0   :  { %v9479_v30 = vadd.f32 %v9478_v45, %v9477_v41 }
 0x4c2   :  { %9518 = vpush %v9479_v30 }
 0x4c3   :  { %9520 = vpush %v9490_v50 }
 0x4f3   :  { %s9519_s1 = spop %9518 }
 0x4f4   :  { %s9521_s3 = spop %9520 }
 0x4f5   :  { %s9492_s25 = sadd.f32 1e-10, %s9521_s3 }
 0x4f7   :  { %v9493_v0 = vstv %s9492_s25 }
 0x4f8   :  { %9661 = vrcp.f32 %v9493_v0 }
 0x502   :  { %v9662_v12 = vpop.eup %9661 }
 0x503   :  { %9522 = vpush %v9662_v12 }
 0x534   :  { %s9523_s26 = spop %9522 }
 0x535   :  { %s9496_s27 = smul.f32 %s9523_s26, %s9519_s1 }
 0x537   :  { %s9497_s28 = sadd.f32 1e-10, %s9496_s27 }
 0x539   :  { %v9498_v51 = vstv %s9497_s28 }
 0x53a   :  { %9663 = vlog2.f32 %v9498_v51 }
 0x544   :  { %v9664_v18 = vpop.eup %9663 }
 0x545   :  { %v9500_v1 = vmul.f32 0.6931472, %v9664_v18 }
 0x547   :  { %9524 = vpush %v9500_v1 }
 0x578   :  { %s9525_s29 = spop %9524 }
 0x579   :  { %s9502_s30 = smul.f32 -1.0, %s9525_s29 }
 0x57b   :  { %9504 = sst [smem:[#allocation6]] %s9502_s30 }
 0x57c   :  { %9674 = shalt.err (!%p9671_p2)
}
 0x57d   :  { %s9681_s12 = smov [#allocation6]  }
 0x57e   :  { %9512 = dma.smem_to_hbm %s9681_s12, 16, %s13096_s4, [#allocation7]  }
 0x57f   :  { %9675 = dma.done.wait [#allocation7], 16  }
 0x580   :  { %9676 = vsyncadd [#allocation7], 4294967280 }
 0x581   :  { %9516 = sfence }
 0x582   :  { %9517 = vsyncpa [#allocation7], 1 }

</bundles_post_ra>
